<compile_context>
chip_gen: v5e
topology: v5e:2x2
jax: 0.10.0
libtpu: 0.0.40
codegen_flags: <defaults>
</compile_context>

<pallas_src>
import math

import jax
import jax.numpy as jnp
from jax.experimental import pallas as pl
from jax.experimental.pallas import tpu as pltpu

# ----------------------------- model dims ----------------------------------
FEATURE_DIM = 16
FONT_DIM = 24
HIDDEN_DIM = 64
NHEAD = 2
D_MODEL = HIDDEN_DIM + FONT_DIM + 2          # 90
HEAD_DIM = D_MODEL // NHEAD                  # 45
FF_DIM = 2 * D_MODEL                         # 180
LN_EPS = 1e-5
ATTN_SCALE = 1.0 / math.sqrt(HEAD_DIM)

# padded (lane-dense) kernel dims
DP = 128                                     # padded d_model
HDP = 64                                     # padded per-head width (NHEAD * HDP == DP)
FFP = 256                                    # padded feed-forward width
MM_DTYPE = jnp.float32                       # set to jnp.bfloat16 on v6e/v7x if desired


# ----------------------------- in-kernel helpers ----------------------------
def _mm(a, b):
    return jnp.dot(a.astype(MM_DTYPE), b.astype(MM_DTYPE),
                   preferred_element_type=jnp.float32)


def _mm_nt(a, b):  # a @ b.T
    return jax.lax.dot_general(a.astype(MM_DTYPE), b.astype(MM_DTYPE),
                               (((1,), (1,)), ((), ())),
                               preferred_element_type=jnp.float32)


def _layernorm(x, g, b, cmask):
    """LayerNorm over the real D_MODEL channels of a DP-padded activation."""
    inv_n = 1.0 / D_MODEL
    mu = jnp.sum(x * cmask, axis=-1, keepdims=True) * inv_n
    d = (x - mu) * cmask
    var = jnp.sum(d * d, axis=-1, keepdims=True) * inv_n
    return d * jax.lax.rsqrt(var + LN_EPS) * g + b


def _softmax_rows(s):
    s = s - jnp.max(s, axis=-1, keepdims=True)
    e = jnp.exp(s)
    return e * pl.reciprocal(jnp.sum(e, axis=-1, keepdims=True), approx=True)


def _attend(q, k, v, wo, bo, mask=None):
    """q:(Lq, NHEAD*HDP)  k,v:(Lk, NHEAD*HDP)  ->  (Lq, DP)."""
    outs = []
    for h in range(NHEAD):
        sl = slice(h * HDP, (h + 1) * HDP)
        s = _mm_nt(q[:, sl], k[:, sl]) * ATTN_SCALE        # f32 scores
        if mask is not None:
            s = s + mask                                   # mask added in f32
        a = _softmax_rows(s)
        outs.append(_mm(a, v[:, sl]))
    o = jnp.concatenate(outs, axis=-1)                      # (Lq, DP)
    return _mm(o, wo) + bo


def _self_attn(x, wqkv, bqkv, wo, bo, mask=None):
    qkv = _mm(x, wqkv) + bqkv                               # (L, 3*DP)
    return _attend(qkv[:, :DP], qkv[:, DP:2 * DP], qkv[:, 2 * DP:], wo, bo, mask)


def _cross_attn(x, mem, wq, bq, wkv, bkv, wo, bo):
    q = _mm(x, wq) + bq                                     # (Lq, DP)
    kv = _mm(mem, wkv) + bkv                                # (Lk, 2*DP)
    return _attend(q, kv[:, :DP], kv[:, DP:], wo, bo)


def _ffn(x, w1, b1, w2, b2):
    h = jnp.maximum(_mm(x, w1) + b1, 0.0)
    return _mm(h, w2) + b2


# ----------------------------- fused kernel ---------------------------------
def _grouper_fused_kernel(
        qid_ref, tid_ref, tlen_ref,            # scalar prefetch (SMEM)
        src_ref, font_ref,
        wpre,
        e_wqkv, e_bqkv, e_wo, e_bo, e_g1, e_b1, e_w1, e_fb1, e_w2, e_fb2, e_g2, e_b2,
        wred_t, wred_q,
        d_wqkv, d_bqkv, d_wo, d_bo, d_g1, d_b1,
        c_wq, c_bq, c_wkv, c_bkv, c_wo, c_bo, d_g2, d_b2,
        d_w1, d_fb1, d_w2, d_fb2, d_g3, d_b3,
        p_w1, p_w2, p_v,
        out_ref):
    f32 = jnp.float32
    b = pl.program_id(0)
    S = src_ref.shape[1]
    T = out_ref.shape[1]
    SP = out_ref.shape[2]
    S2 = S + 2

    cmask = (jax.lax.broadcasted_iota(jnp.int32, (1, DP), 1) < D_MODEL).astype(f32)

    # ---- encoder input assembly (built in registers, no HBM round trip) ----
    src_p = _mm(src_ref[0], wpre[...])                                     # (S, 64)
    x_main = jnp.concatenate(
        [src_p, font_ref[0].astype(f32),
         jnp.zeros((S, DP - HIDDEN_DIM - FONT_DIM), f32)], axis=-1)         # (S, DP)
    r2 = jax.lax.broadcasted_iota(jnp.int32, (2, DP), 0)
    c2 = jax.lax.broadcasted_iota(jnp.int32, (2, DP), 1)
    flag = HIDDEN_DIM + FONT_DIM
    special = (((r2 == 0) & (c2 == flag)) |
               ((r2 == 1) & (c2 == flag + 1))).astype(f32)                  # (2, DP)
    x = jnp.concatenate([x_main, special], axis=0)                          # (S2, DP)

    # ---- encoder layer (post-LN) ----
    x = _layernorm(x + _self_attn(x, e_wqkv[...], e_bqkv[...], e_wo[...], e_bo[...]),
                   e_g1[...], e_b1[...], cmask)
    x = _layernorm(x + _ffn(x, e_w1[...], e_fb1[...], e_w2[...], e_fb2[...]),
                   e_g2[...], e_b2[...], cmask)
    memory = x                                                              # (S2, DP)

    # ---- decoder input: gather tgt/query rows via one-hot matmuls ----
    col = jax.lax.broadcasted_iota(jnp.int32, (1, S2), 1)
    oh_rows = [(col == tid_ref[b * T + t]).astype(f32) for t in range(T)]
    oh = jnp.concatenate(oh_rows, axis=0)                                   # (T, S2); id==S2 -> zero row
    tgt = _mm(oh, memory)                                                   # (T, DP)
    q_oh = (col == qid_ref[b]).astype(f32)                                  # (1, S2)
    qrow = _mm(q_oh, memory)                                                # (1, DP)
    dec = _mm(tgt, wred_t[...]) + _mm(qrow, wred_q[...])                    # (T, DP)

    # ---- causal + key-padding additive mask (from tgt_len, in-kernel) ----
    rr = jax.lax.broadcasted_iota(jnp.int32, (T, T), 0)
    cc = jax.lax.broadcasted_iota(jnp.int32, (T, T), 1)
    bad = (cc > rr) | (cc > tlen_ref[b])
    mask = jnp.where(bad, jnp.float32(-1e30), jnp.float32(0.0))

    # ---- decoder layer (post-LN) ----
    y = _layernorm(dec + _self_attn(dec, d_wqkv[...], d_bqkv[...], d_wo[...], d_bo[...],
                                    mask=mask),
                   d_g1[...], d_b1[...], cmask)
    y = _layernorm(y + _cross_attn(y, memory, c_wq[...], c_bq[...], c_wkv[...],
                                   c_bkv[...], c_wo[...], c_bo[...]),
                   d_g2[...], d_b2[...], cmask)
    y = _layernorm(y + _ffn(y, d_w1[...], d_fb1[...], d_w2[...], d_fb2[...]),
                   d_g3[...], d_b3[...], cmask)

    # ---- pointer head + log_softmax over encoder positions (lane-dense out) ----
    enc_t = _mm(memory, p_w1[...])                                          # (S2, DP)
    dec_t = _mm(y, p_w2[...])                                               # (T, DP)
    th = jnp.tanh(enc_t[None, :, :] + dec_t[:, None, :])                    # (T, S2, DP)
    logits = jnp.sum(th * p_v[...][None, :, :], axis=-1)                    # (T, S2)
    if SP > S2:
        logits = jnp.concatenate(
            [logits, jnp.full((T, SP - S2), -1e30, f32)], axis=-1)          # (T, SP)
    m = jnp.max(logits, axis=-1, keepdims=True)
    lse = m + jnp.log(jnp.sum(jnp.exp(logits - m), axis=-1, keepdims=True))
    out_ref[0] = logits - lse


# ----------------------------- pallas_call wrapper ---------------------------
def forward(kern_weights, src, font, query_id, tgt_ids, tgt_len):
    """Training-path forward (tgt_ids is not None).  Returns (B, T, S+2) log-scores."""
    B, S, F = src.shape
    FONT = font.shape[2]
    S2 = S + 2
    T = tgt_ids.shape[1]
    SP = ((S2 + 127) // 128) * 128

    qid = query_id.astype(jnp.int32)
    tid = tgt_ids.astype(jnp.int32).reshape(-1)
    tln = tgt_len.astype(jnp.int32)

    def _bmap(b, *_):
        return (b, 0, 0)

    def _wmap(b, *_):
        return (0, 0)

    grid_spec = pltpu.PrefetchScalarGridSpec(
        num_scalar_prefetch=3,
        grid=(B,),
        in_specs=([pl.BlockSpec((1, S, F), _bmap),
                   pl.BlockSpec((1, S, FONT), _bmap)]
                  + [pl.BlockSpec(w.shape, _wmap) for w in kern_weights]),
        out_specs=pl.BlockSpec((1, T, SP), _bmap),
    )
    out = pl.pallas_call(
        _grouper_fused_kernel,
        grid_spec=grid_spec,
        out_shape=jax.ShapeDtypeStruct((B, T, SP), jnp.float32),
        compiler_params=pltpu.CompilerParams(dimension_semantics=("parallel",)),
    )(qid, tid, tln, src.astype(jnp.float32), font.astype(jnp.float32), *kern_weights)
    return out[:, :, :S2]
    # TODO(synk): the tgt_ids=None autoregressive greedy-decode branch (growing decoder
    # length + argmax loop with dynamic shapes) is not implemented.


# ----------------------------- parameters (logical, PyTorch layout) ----------
def init_params(key):
    ks = iter(jax.random.split(key, 48))

    def nrm(shape, scale=0.08):
        return (scale * jax.random.normal(next(ks), shape)).astype(jnp.float32)

    def mha():  # (in_proj_weight (3D,D), in_proj_bias (3D,), out_proj.weight (D,D), bias (D,))
        return (nrm((3 * D_MODEL, D_MODEL)), nrm((3 * D_MODEL,), 0.02),
                nrm((D_MODEL, D_MODEL)), nrm((D_MODEL,), 0.02))

    def ln():
        return (jnp.ones((D_MODEL,), jnp.float32), jnp.zeros((D_MODEL,), jnp.float32))

    def ff():   # (linear1.weight (FF,D), bias (FF,), linear2.weight (D,FF), bias (D,))
        return (nrm((FF_DIM, D_MODEL)), nrm((FF_DIM,), 0.02),
                nrm((D_MODEL, FF_DIM)), nrm((D_MODEL,), 0.02))

    return {
        "wpre_t": nrm((FEATURE_DIM, HIDDEN_DIM)),                 # pre_project.weight.T
        "enc": {"attn": mha(), "ln1": ln(), "ff": ff(), "ln2": ln()},
        "reduce_t": nrm((2 * D_MODEL, D_MODEL)),                  # reduce_decoder_input_dim.weight.T
        "dec": {"sa": mha(), "ln1": ln(), "ca": mha(), "ln2": ln(), "ff": ff(), "ln3": ln()},
        "ptr": (nrm((D_MODEL, D_MODEL)), nrm((D_MODEL, D_MODEL)), nrm((1, D_MODEL))),
    }


# ----------------------------- weight packing (padded kernel layout) ---------
def _pad2(a, shape):
    a = jnp.asarray(a, jnp.float32)
    if a.ndim == 1:
        a = a[None, :]
    return jnp.zeros(shape, jnp.float32).at[:a.shape[0], :a.shape[1]].set(a)


def _pack_inproj(w_in, b_in, sections):
    """Pack selected q/k/v sections of an MHA in_proj into one lane-padded matmul weight."""
    w = jnp.zeros((DP, len(sections) * NHEAD * HDP), jnp.float32)
    bvec = jnp.zeros((1, len(sections) * NHEAD * HDP), jnp.float32)
    for si, sec in enumerate(sections):
        wt = w_in[sec * D_MODEL:(sec + 1) * D_MODEL].T        # (D, D): x @ wt = projection
        bb = b_in[sec * D_MODEL:(sec + 1) * D_MODEL]
        for h in range(NHEAD):
            c0 = si * NHEAD * HDP + h * HDP
            w = w.at[:D_MODEL, c0:c0 + HEAD_DIM].set(wt[:, h * HEAD_DIM:(h + 1) * HEAD_DIM])
            bvec = bvec.at[0, c0:c0 + HEAD_DIM].set(bb[h * HEAD_DIM:(h + 1) * HEAD_DIM])
    return w, bvec


def _pack_outproj(w_out, b_out):
    w = jnp.zeros((DP, DP), jnp.float32)
    wt = w_out.T                                               # (D, D)
    for h in range(NHEAD):
        w = w.at[h * HDP:h * HDP + HEAD_DIM, :D_MODEL].set(
            wt[h * HEAD_DIM:(h + 1) * HEAD_DIM, :])
    return w, _pad2(b_out, (1, DP))


def _pack_attn(attn):
    w_in, b_in, w_out, b_out = attn
    wqkv, bqkv = _pack_inproj(w_in, b_in, [0, 1, 2])
    wo, bo = _pack_outproj(w_out, b_out)
    return wqkv, bqkv, wo, bo


def _pack_ff(ffp):
    w1, b1, w2, b2 = ffp
    return (_pad2(w1.T, (DP, FFP)), _pad2(b1, (1, FFP)),
            _pad2(w2.T, (FFP, DP)), _pad2(b2, (1, DP)))


def _pack_ln(lnp):
    g, b = lnp
    return _pad2(g, (1, DP)), _pad2(b, (1, DP))


def build_kernel_weights(lp):
    e, d = lp["enc"], lp["dec"]
    e_wqkv, e_bqkv, e_wo, e_bo = _pack_attn(e["attn"])
    e_g1, e_b1 = _pack_ln(e["ln1"])
    e_w1, e_fb1, e_w2, e_fb2 = _pack_ff(e["ff"])
    e_g2, e_b2 = _pack_ln(e["ln2"])
    wred_t = _pad2(lp["reduce_t"][:D_MODEL], (DP, DP))
    wred_q = _pad2(lp["reduce_t"][D_MODEL:], (DP, DP))
    d_wqkv, d_bqkv, d_wo, d_bo = _pack_attn(d["sa"])
    d_g1, d_b1 = _pack_ln(d["ln1"])
    ca_w_in, ca_b_in, ca_w_out, ca_b_out = d["ca"]
    c_wq, c_bq = _pack_inproj(ca_w_in, ca_b_in, [0])
    c_wkv, c_bkv = _pack_inproj(ca_w_in, ca_b_in, [1, 2])
    c_wo, c_bo = _pack_outproj(ca_w_out, ca_b_out)
    d_g2, d_b2 = _pack_ln(d["ln2"])
    d_w1, d_fb1, d_w2, d_fb2 = _pack_ff(d["ff"])
    d_g3, d_b3 = _pack_ln(d["ln3"])
    pw1, pw2, pv = lp["ptr"]
    p_w1, p_w2, p_v = _pad2(pw1.T, (DP, DP)), _pad2(pw2.T, (DP, DP)), _pad2(pv, (1, DP))
    return (lp["wpre_t"],
            e_wqkv, e_bqkv, e_wo, e_bo, e_g1, e_b1, e_w1, e_fb1, e_w2, e_fb2, e_g2, e_b2,
            wred_t, wred_q,
            d_wqkv, d_bqkv, d_wo, d_bo, d_g1, d_b1,
            c_wq, c_bq, c_wkv, c_bkv, c_wo, c_bo, d_g2, d_b2,
            d_w1, d_fb1, d_w2, d_fb2, d_g3, d_b3,
            p_w1, p_w2, p_v)


# ----------------------------- pure-JAX reference (unpadded) -----------------
def _ref_layernorm(x, g, b):
    mu = x.mean(-1, keepdims=True)
    var = ((x - mu) ** 2).mean(-1, keepdims=True)
    return (x - mu) * jax.lax.rsqrt(var + LN_EPS) * g + b


def _ref_mha(q_in, kv_in, w_in, b_in, w_out, b_out, mask=None):
    B, Lq, D = q_in.shape
    Lk = kv_in.shape[1]
    hd = D // NHEAD
    q = (q_in @ w_in[:D].T + b_in[:D]).reshape(B, Lq, NHEAD, hd)
    k = (kv_in @ w_in[D:2 * D].T + b_in[D:2 * D]).reshape(B, Lk, NHEAD, hd)
    v = (kv_in @ w_in[2 * D:].T + b_in[2 * D:]).reshape(B, Lk, NHEAD, hd)
    s = jnp.einsum("bqhd,bkhd->bhqk", q, k) / math.sqrt(hd)
    if mask is not None:
        s = s + mask[:, None, :, :]
    a = jax.nn.softmax(s, axis=-1)
    o = jnp.einsum("bhqk,bkhd->bqhd", a, v).reshape(B, Lq, D)
    return o @ w_out.T + b_out


def _ref_ffn(x, w1, b1, w2, b2):
    return jnp.maximum(x @ w1.T + b1, 0.0) @ w2.T + b2


def ref_forward(lp, src, font, query_id, tgt_ids, tgt_len):
    B, S, _ = src.shape
    S2, T = S + 2, tgt_ids.shape[1]
    x = jnp.zeros((B, S2, D_MODEL), jnp.float32)
    x = x.at[:, S, HIDDEN_DIM + FONT_DIM].set(1.0)
    x = x.at[:, S + 1, HIDDEN_DIM + FONT_DIM + 1].set(1.0)
    x = x.at[:, :S, :HIDDEN_DIM].set(src @ lp["wpre_t"])
    x = x.at[:, :S, HIDDEN_DIM:HIDDEN_DIM + FONT_DIM].set(font)

    e = lp["enc"]
    x = _ref_layernorm(x + _ref_mha(x, x, *e["attn"]), *e["ln1"])
    x = _ref_layernorm(x + _ref_ffn(x, *e["ff"]), *e["ln2"])
    memory = x

    mem_pad = jnp.concatenate([memory, jnp.zeros((B, 1, D_MODEL), jnp.float32)], axis=1)
    tgt = mem_pad[jnp.arange(B)[:, None], tgt_ids]
    qv = memory[jnp.arange(B), query_id][:, None, :]
    dec = jnp.concatenate([tgt, jnp.broadcast_to(qv, tgt.shape)], axis=-1) @ lp["reduce_t"]

    pos = jnp.arange(T)
    bad = (pos[None, None, :] > pos[None, :, None]) | (pos[None, None, :] > tgt_len[:, None, None])
    mask = jnp.where(bad, -1e30, 0.0).astype(jnp.float32)

    d = lp["dec"]
    y = _ref_layernorm(dec + _ref_mha(dec, dec, *d["sa"], mask=mask), *d["ln1"])
    y = _ref_layernorm(y + _ref_mha(y, memory, *d["ca"]), *d["ln2"])
    y = _ref_layernorm(y + _ref_ffn(y, *d["ff"]), *d["ln3"])

    w1, w2, v = lp["ptr"]
    th = jnp.tanh((memory @ w1.T)[:, None, :, :] + (y @ w2.T)[:, :, None, :])
    logits = jnp.einsum("btsd,d->bts", th, v[0])
    return jax.nn.log_softmax(logits, axis=-1)


# ----------------------------- main ------------------------------------------
if __name__ == "__main__":
    key = jax.random.PRNGKey(0)
    kp, k1, k2, k3, k4 = jax.random.split(key, 5)
    lp = init_params(kp)
    kw = build_kernel_weights(lp)

    B, S, T = 2, 8, 5
    src = jax.random.normal(k1, (B, S, FEATURE_DIM), jnp.float32)
    font = jax.random.normal(k2, (B, S, FONT_DIM), jnp.float32)
    query_id = jax.random.randint(k3, (B,), 0, S + 2)        # indexes memory (S+2 rows)
    tgt_ids = jax.random.randint(k4, (B, T), 0, S + 3)       # indexes memory_padded (S+3 rows)
    tgt_len = jnp.array([3, 2], dtype=jnp.int32)

    out = jax.jit(forward)(kw, src, font, query_id, tgt_ids, tgt_len)
    out = jax.block_until_ready(out)

    ref = ref_forward(lp, src, font, query_id, tgt_ids, tgt_len)

    assert out.shape == (B, T, S + 2) and out.dtype == jnp.float32
    assert bool(jnp.all(jnp.isfinite(out)))
    # log-softmax rows must normalise over the real S+2 keys
    assert bool(jnp.all(jnp.abs(jnp.sum(jnp.exp(out), axis=-1) - 1.0) < 1e-3))
    assert bool(jnp.allclose(out, ref, atol=5e-2, rtol=5e-2))
    print("KERNEL_OK")
</pallas_src>

<mosaic_0001>
module attributes {stable_mosaic.version = 11 : i64} {
  func.func @_grouper_fused_kernel(%arg0: i32, %arg1: memref<2xi32, #tpu.memory_space<smem>>, %arg2: memref<10xi32, #tpu.memory_space<smem>>, %arg3: memref<2xi32, #tpu.memory_space<smem>>, %arg4: memref<1x8x16xf32, #tpu.memory_space<vmem>>, %arg5: memref<1x8x24xf32, #tpu.memory_space<vmem>>, %arg6: memref<16x64xf32, #tpu.memory_space<vmem>>, %arg7: memref<128x384xf32, #tpu.memory_space<vmem>>, %arg8: memref<1x384xf32, #tpu.memory_space<vmem>>, %arg9: memref<128x128xf32, #tpu.memory_space<vmem>>, %arg10: memref<1x128xf32, #tpu.memory_space<vmem>>, %arg11: memref<1x128xf32, #tpu.memory_space<vmem>>, %arg12: memref<1x128xf32, #tpu.memory_space<vmem>>, %arg13: memref<128x256xf32, #tpu.memory_space<vmem>>, %arg14: memref<1x256xf32, #tpu.memory_space<vmem>>, %arg15: memref<256x128xf32, #tpu.memory_space<vmem>>, %arg16: memref<1x128xf32, #tpu.memory_space<vmem>>, %arg17: memref<1x128xf32, #tpu.memory_space<vmem>>, %arg18: memref<1x128xf32, #tpu.memory_space<vmem>>, %arg19: memref<128x128xf32, #tpu.memory_space<vmem>>, %arg20: memref<128x128xf32, #tpu.memory_space<vmem>>, %arg21: memref<128x384xf32, #tpu.memory_space<vmem>>, %arg22: memref<1x384xf32, #tpu.memory_space<vmem>>, %arg23: memref<128x128xf32, #tpu.memory_space<vmem>>, %arg24: memref<1x128xf32, #tpu.memory_space<vmem>>, %arg25: memref<1x128xf32, #tpu.memory_space<vmem>>, %arg26: memref<1x128xf32, #tpu.memory_space<vmem>>, %arg27: memref<128x128xf32, #tpu.memory_space<vmem>>, %arg28: memref<1x128xf32, #tpu.memory_space<vmem>>, %arg29: memref<128x256xf32, #tpu.memory_space<vmem>>, %arg30: memref<1x256xf32, #tpu.memory_space<vmem>>, %arg31: memref<128x128xf32, #tpu.memory_space<vmem>>, %arg32: memref<1x128xf32, #tpu.memory_space<vmem>>, %arg33: memref<1x128xf32, #tpu.memory_space<vmem>>, %arg34: memref<1x128xf32, #tpu.memory_space<vmem>>, %arg35: memref<128x256xf32, #tpu.memory_space<vmem>>, %arg36: memref<1x256xf32, #tpu.memory_space<vmem>>, %arg37: memref<256x128xf32, #tpu.memory_space<vmem>>, %arg38: memref<1x128xf32, #tpu.memory_space<vmem>>, %arg39: memref<1x128xf32, #tpu.memory_space<vmem>>, %arg40: memref<1x128xf32, #tpu.memory_space<vmem>>, %arg41: memref<128x128xf32, #tpu.memory_space<vmem>>, %arg42: memref<128x128xf32, #tpu.memory_space<vmem>>, %arg43: memref<1x128xf32, #tpu.memory_space<vmem>>, %arg44: memref<1x5x128xf32, #tpu.memory_space<vmem>>) attributes {dimension_semantics = [#tpu.dimension_semantics<parallel>], iteration_bounds = array<i64: 2>, scalar_prefetch = 3 : i64, scratch_operands = 0 : i64, tpu.core_type = #tpu.core_type<tc>, window_params = [{transform_indices = @transform_0, window_bounds = array<i64: 1, 8, 16>}, {transform_indices = @transform_1, window_bounds = array<i64: 1, 8, 24>}, {pipeline_mode = #tpu.pipeline_mode<synchronous>, transform_indices = @transform_2, window_bounds = array<i64: 16, 64>}, {pipeline_mode = #tpu.pipeline_mode<synchronous>, transform_indices = @transform_3, window_bounds = array<i64: 128, 384>}, {pipeline_mode = #tpu.pipeline_mode<synchronous>, transform_indices = @transform_4, window_bounds = array<i64: 1, 384>}, {pipeline_mode = #tpu.pipeline_mode<synchronous>, transform_indices = @transform_5, window_bounds = array<i64: 128, 128>}, {pipeline_mode = #tpu.pipeline_mode<synchronous>, transform_indices = @transform_6, window_bounds = array<i64: 1, 128>}, {pipeline_mode = #tpu.pipeline_mode<synchronous>, transform_indices = @transform_7, window_bounds = array<i64: 1, 128>}, {pipeline_mode = #tpu.pipeline_mode<synchronous>, transform_indices = @transform_8, window_bounds = array<i64: 1, 128>}, {pipeline_mode = #tpu.pipeline_mode<synchronous>, transform_indices = @transform_9, window_bounds = array<i64: 128, 256>}, {pipeline_mode = #tpu.pipeline_mode<synchronous>, transform_indices = @transform_10, window_bounds = array<i64: 1, 256>}, {pipeline_mode = #tpu.pipeline_mode<synchronous>, transform_indices = @transform_11, window_bounds = array<i64: 256, 128>}, {pipeline_mode = #tpu.pipeline_mode<synchronous>, transform_indices = @transform_12, window_bounds = array<i64: 1, 128>}, {pipeline_mode = #tpu.pipeline_mode<synchronous>, transform_indices = @transform_13, window_bounds = array<i64: 1, 128>}, {pipeline_mode = #tpu.pipeline_mode<synchronous>, transform_indices = @transform_14, window_bounds = array<i64: 1, 128>}, {pipeline_mode = #tpu.pipeline_mode<synchronous>, transform_indices = @transform_15, window_bounds = array<i64: 128, 128>}, {pipeline_mode = #tpu.pipeline_mode<synchronous>, transform_indices = @transform_16, window_bounds = array<i64: 128, 128>}, {pipeline_mode = #tpu.pipeline_mode<synchronous>, transform_indices = @transform_17, window_bounds = array<i64: 128, 384>}, {pipeline_mode = #tpu.pipeline_mode<synchronous>, transform_indices = @transform_18, window_bounds = array<i64: 1, 384>}, {pipeline_mode = #tpu.pipeline_mode<synchronous>, transform_indices = @transform_19, window_bounds = array<i64: 128, 128>}, {pipeline_mode = #tpu.pipeline_mode<synchronous>, transform_indices = @transform_20, window_bounds = array<i64: 1, 128>}, {pipeline_mode = #tpu.pipeline_mode<synchronous>, transform_indices = @transform_21, window_bounds = array<i64: 1, 128>}, {pipeline_mode = #tpu.pipeline_mode<synchronous>, transform_indices = @transform_22, window_bounds = array<i64: 1, 128>}, {pipeline_mode = #tpu.pipeline_mode<synchronous>, transform_indices = @transform_23, window_bounds = array<i64: 128, 128>}, {pipeline_mode = #tpu.pipeline_mode<synchronous>, transform_indices = @transform_24, window_bounds = array<i64: 1, 128>}, {pipeline_mode = #tpu.pipeline_mode<synchronous>, transform_indices = @transform_25, window_bounds = array<i64: 128, 256>}, {pipeline_mode = #tpu.pipeline_mode<synchronous>, transform_indices = @transform_26, window_bounds = array<i64: 1, 256>}, {pipeline_mode = #tpu.pipeline_mode<synchronous>, transform_indices = @transform_27, window_bounds = array<i64: 128, 128>}, {pipeline_mode = #tpu.pipeline_mode<synchronous>, transform_indices = @transform_28, window_bounds = array<i64: 1, 128>}, {pipeline_mode = #tpu.pipeline_mode<synchronous>, transform_indices = @transform_29, window_bounds = array<i64: 1, 128>}, {pipeline_mode = #tpu.pipeline_mode<synchronous>, transform_indices = @transform_30, window_bounds = array<i64: 1, 128>}, {pipeline_mode = #tpu.pipeline_mode<synchronous>, transform_indices = @transform_31, window_bounds = array<i64: 128, 256>}, {pipeline_mode = #tpu.pipeline_mode<synchronous>, transform_indices = @transform_32, window_bounds = array<i64: 1, 256>}, {pipeline_mode = #tpu.pipeline_mode<synchronous>, transform_indices = @transform_33, window_bounds = array<i64: 256, 128>}, {pipeline_mode = #tpu.pipeline_mode<synchronous>, transform_indices = @transform_34, window_bounds = array<i64: 1, 128>}, {pipeline_mode = #tpu.pipeline_mode<synchronous>, transform_indices = @transform_35, window_bounds = array<i64: 1, 128>}, {pipeline_mode = #tpu.pipeline_mode<synchronous>, transform_indices = @transform_36, window_bounds = array<i64: 1, 128>}, {pipeline_mode = #tpu.pipeline_mode<synchronous>, transform_indices = @transform_37, window_bounds = array<i64: 128, 128>}, {pipeline_mode = #tpu.pipeline_mode<synchronous>, transform_indices = @transform_38, window_bounds = array<i64: 128, 128>}, {pipeline_mode = #tpu.pipeline_mode<synchronous>, transform_indices = @transform_39, window_bounds = array<i64: 1, 128>}, {transform_indices = @transform_40, window_bounds = array<i64: 1, 5, 128>}]} {
    %0 = tpu.iota {dimensions = array<i32: 1>} : vector<1x128xi32>
    %c90_i32 = arith.constant 90 : i32
    %1 = vector.broadcast %c90_i32 : i32 to vector<1x128xi32>
    %2 = arith.cmpi slt, %0, %1 : vector<1x128xi32>
    %3 = arith.extui %2 : vector<1x128xi1> to vector<1x128xi32>
    %4 = arith.sitofp %3 : vector<1x128xi32> to vector<1x128xf32>
    %c0 = arith.constant 0 : index
    %c0_0 = arith.constant 0 : index
    %c0_1 = arith.constant 0 : index
    %5 = vector.load %arg4[%c0, %c0_0, %c0_1] : memref<1x8x16xf32, #tpu.memory_space<vmem>>, vector<1x8x16xf32>
    %6 = vector.shape_cast %5 : vector<1x8x16xf32> to vector<8x16xf32>
    %c0_2 = arith.constant 0 : index
    %c0_3 = arith.constant 0 : index
    %7 = vector.load %arg6[%c0_2, %c0_3] : memref<16x64xf32, #tpu.memory_space<vmem>>, vector<16x64xf32>
    %cst = arith.constant dense<0.000000e+00> : vector<8x64xf32>
    %8 = tpu.matmul %6, %7, %cst {dimension_numbers = #tpu.dot_dimension_numbers<[1], [0], [0], [1], [0, 0, 1, 1], [], []>} : vector<8x16xf32>, vector<16x64xf32>, vector<8x64xf32> -> vector<8x64xf32>
    %c0_4 = arith.constant 0 : index
    %c0_5 = arith.constant 0 : index
    %c0_6 = arith.constant 0 : index
    %9 = vector.load %arg5[%c0_4, %c0_5, %c0_6] : memref<1x8x24xf32, #tpu.memory_space<vmem>>, vector<1x8x24xf32>
    %10 = vector.shape_cast %9 : vector<1x8x24xf32> to vector<8x24xf32>
    %cst_7 = arith.constant 0.000000e+00 : f32
    %11 = vector.broadcast %cst_7 : f32 to vector<8x40xf32>
    %12 = tpu.concatenate %8, %10, %11 in 1 : vector<8x64xf32>, vector<8x24xf32>, vector<8x40xf32> -> vector<8x128xf32>
    %13 = tpu.iota {dimensions = array<i32: 0>} : vector<2x128xi32>
    %14 = tpu.iota {dimensions = array<i32: 1>} : vector<2x128xi32>
    %c0_i32 = arith.constant 0 : i32
    %15 = vector.broadcast %c0_i32 : i32 to vector<2x128xi32>
    %16 = arith.cmpi eq, %13, %15 : vector<2x128xi32>
    %c88_i32 = arith.constant 88 : i32
    %17 = vector.broadcast %c88_i32 : i32 to vector<2x128xi32>
    %18 = arith.cmpi eq, %14, %17 : vector<2x128xi32>
    %19 = arith.andi %16, %18 : vector<2x128xi1>
    %c1_i32 = arith.constant 1 : i32
    %20 = vector.broadcast %c1_i32 : i32 to vector<2x128xi32>
    %21 = arith.cmpi eq, %13, %20 : vector<2x128xi32>
    %c89_i32 = arith.constant 89 : i32
    %22 = vector.broadcast %c89_i32 : i32 to vector<2x128xi32>
    %23 = arith.cmpi eq, %14, %22 : vector<2x128xi32>
    %24 = arith.andi %21, %23 : vector<2x128xi1>
    %25 = arith.ori %19, %24 : vector<2x128xi1>
    %26 = arith.extui %25 : vector<2x128xi1> to vector<2x128xi32>
    %27 = arith.sitofp %26 : vector<2x128xi32> to vector<2x128xf32>
    %28 = tpu.concatenate %12, %27 in 0 : vector<8x128xf32>, vector<2x128xf32> -> vector<10x128xf32>
    %c0_8 = arith.constant 0 : index
    %c0_9 = arith.constant 0 : index
    %29 = vector.load %arg7[%c0_8, %c0_9] : memref<128x384xf32, #tpu.memory_space<vmem>>, vector<128x384xf32>
    %c0_10 = arith.constant 0 : index
    %c0_11 = arith.constant 0 : index
    %30 = vector.load %arg8[%c0_10, %c0_11] : memref<1x384xf32, #tpu.memory_space<vmem>>, vector<1x384xf32>
    %c0_12 = arith.constant 0 : index
    %c0_13 = arith.constant 0 : index
    %31 = vector.load %arg9[%c0_12, %c0_13] : memref<128x128xf32, #tpu.memory_space<vmem>>, vector<128x128xf32>
    %c0_14 = arith.constant 0 : index
    %c0_15 = arith.constant 0 : index
    %32 = vector.load %arg10[%c0_14, %c0_15] : memref<1x128xf32, #tpu.memory_space<vmem>>, vector<1x128xf32>
    %cst_16 = arith.constant dense<0.000000e+00> : vector<10x384xf32>
    %33 = tpu.matmul %28, %29, %cst_16 {dimension_numbers = #tpu.dot_dimension_numbers<[1], [0], [0], [1], [0, 0, 1, 1], [], []>} : vector<10x128xf32>, vector<128x384xf32>, vector<10x384xf32> -> vector<10x384xf32>
    %34 = vector.broadcast %30 : vector<1x384xf32> to vector<10x384xf32>
    %35 = arith.addf %33, %34 : vector<10x384xf32>
    %36 = vector.extract_strided_slice %35 {offsets = [0, 0], sizes = [10, 128], strides = [1, 1]} : vector<10x384xf32> to vector<10x128xf32>
    %37 = vector.extract_strided_slice %35 {offsets = [0, 128], sizes = [10, 128], strides = [1, 1]} : vector<10x384xf32> to vector<10x128xf32>
    %38 = vector.extract_strided_slice %35 {offsets = [0, 256], sizes = [10, 128], strides = [1, 1]} : vector<10x384xf32> to vector<10x128xf32>
    %39 = vector.extract_strided_slice %36 {offsets = [0, 0], sizes = [10, 64], strides = [1, 1]} : vector<10x128xf32> to vector<10x64xf32>
    %40 = vector.extract_strided_slice %37 {offsets = [0, 0], sizes = [10, 64], strides = [1, 1]} : vector<10x128xf32> to vector<10x64xf32>
    %cst_17 = arith.constant dense<0.000000e+00> : vector<10x10xf32>
    %41 = tpu.matmul %39, %40, %cst_17 {dimension_numbers = #tpu.dot_dimension_numbers<[1], [1], [0], [0], [0, 0, 1, 0], [], []>} : vector<10x64xf32>, vector<10x64xf32>, vector<10x10xf32> -> vector<10x10xf32>
    %cst_18 = arith.constant 0.149071202 : f32
    %42 = vector.broadcast %cst_18 : f32 to vector<10x10xf32>
    %43 = arith.mulf %41, %42 : vector<10x10xf32>
    %cst_19 = arith.constant dense<0xFF800000> : vector<10xf32>
    %44 = vector.multi_reduction <maximumf>, %43, %cst_19 [1] : vector<10x10xf32> to vector<10xf32>
    %45 = vector.shape_cast %44 : vector<10xf32> to vector<10x1xf32>
    %46 = vector.broadcast %45 : vector<10x1xf32> to vector<10x10xf32>
    %47 = arith.subf %43, %46 : vector<10x10xf32>
    %48 = math.exp %47 : vector<10x10xf32>
    %cst_20 = arith.constant dense<0.000000e+00> : vector<10xf32>
    %49 = vector.multi_reduction <add>, %48, %cst_20 [1] : vector<10x10xf32> to vector<10xf32>
    %50 = vector.shape_cast %49 : vector<10xf32> to vector<10x1xf32>
    %51 = tpu.reciprocal %50 {approx = true} : vector<10x1xf32> -> vector<10x1xf32>
    %52 = vector.broadcast %51 : vector<10x1xf32> to vector<10x10xf32>
    %53 = arith.mulf %48, %52 : vector<10x10xf32>
    %54 = vector.extract_strided_slice %38 {offsets = [0, 0], sizes = [10, 64], strides = [1, 1]} : vector<10x128xf32> to vector<10x64xf32>
    %cst_21 = arith.constant dense<0.000000e+00> : vector<10x64xf32>
    %55 = tpu.matmul %53, %54, %cst_21 {dimension_numbers = #tpu.dot_dimension_numbers<[1], [0], [0], [1], [0, 0, 1, 1], [], []>} : vector<10x10xf32>, vector<10x64xf32>, vector<10x64xf32> -> vector<10x64xf32>
    %56 = vector.extract_strided_slice %36 {offsets = [0, 64], sizes = [10, 64], strides = [1, 1]} : vector<10x128xf32> to vector<10x64xf32>
    %57 = vector.extract_strided_slice %37 {offsets = [0, 64], sizes = [10, 64], strides = [1, 1]} : vector<10x128xf32> to vector<10x64xf32>
    %cst_22 = arith.constant dense<0.000000e+00> : vector<10x10xf32>
    %58 = tpu.matmul %56, %57, %cst_22 {dimension_numbers = #tpu.dot_dimension_numbers<[1], [1], [0], [0], [0, 0, 1, 0], [], []>} : vector<10x64xf32>, vector<10x64xf32>, vector<10x10xf32> -> vector<10x10xf32>
    %cst_23 = arith.constant 0.149071202 : f32
    %59 = vector.broadcast %cst_23 : f32 to vector<10x10xf32>
    %60 = arith.mulf %58, %59 : vector<10x10xf32>
    %cst_24 = arith.constant dense<0xFF800000> : vector<10xf32>
    %61 = vector.multi_reduction <maximumf>, %60, %cst_24 [1] : vector<10x10xf32> to vector<10xf32>
    %62 = vector.shape_cast %61 : vector<10xf32> to vector<10x1xf32>
    %63 = vector.broadcast %62 : vector<10x1xf32> to vector<10x10xf32>
    %64 = arith.subf %60, %63 : vector<10x10xf32>
    %65 = math.exp %64 : vector<10x10xf32>
    %cst_25 = arith.constant dense<0.000000e+00> : vector<10xf32>
    %66 = vector.multi_reduction <add>, %65, %cst_25 [1] : vector<10x10xf32> to vector<10xf32>
    %67 = vector.shape_cast %66 : vector<10xf32> to vector<10x1xf32>
    %68 = tpu.reciprocal %67 {approx = true} : vector<10x1xf32> -> vector<10x1xf32>
    %69 = vector.broadcast %68 : vector<10x1xf32> to vector<10x10xf32>
    %70 = arith.mulf %65, %69 : vector<10x10xf32>
    %71 = vector.extract_strided_slice %38 {offsets = [0, 64], sizes = [10, 64], strides = [1, 1]} : vector<10x128xf32> to vector<10x64xf32>
    %cst_26 = arith.constant dense<0.000000e+00> : vector<10x64xf32>
    %72 = tpu.matmul %70, %71, %cst_26 {dimension_numbers = #tpu.dot_dimension_numbers<[1], [0], [0], [1], [0, 0, 1, 1], [], []>} : vector<10x10xf32>, vector<10x64xf32>, vector<10x64xf32> -> vector<10x64xf32>
    %73 = tpu.concatenate %55, %72 in 1 : vector<10x64xf32>, vector<10x64xf32> -> vector<10x128xf32>
    %cst_27 = arith.constant dense<0.000000e+00> : vector<10x128xf32>
    %74 = tpu.matmul %73, %31, %cst_27 {dimension_numbers = #tpu.dot_dimension_numbers<[1], [0], [0], [1], [0, 0, 1, 1], [], []>} : vector<10x128xf32>, vector<128x128xf32>, vector<10x128xf32> -> vector<10x128xf32>
    %75 = vector.broadcast %32 : vector<1x128xf32> to vector<10x128xf32>
    %76 = arith.addf %74, %75 : vector<10x128xf32>
    %77 = arith.addf %28, %76 : vector<10x128xf32>
    %c0_28 = arith.constant 0 : index
    %c0_29 = arith.constant 0 : index
    %78 = vector.load %arg11[%c0_28, %c0_29] : memref<1x128xf32, #tpu.memory_space<vmem>>, vector<1x128xf32>
    %c0_30 = arith.constant 0 : index
    %c0_31 = arith.constant 0 : index
    %79 = vector.load %arg12[%c0_30, %c0_31] : memref<1x128xf32, #tpu.memory_space<vmem>>, vector<1x128xf32>
    %80 = vector.broadcast %4 : vector<1x128xf32> to vector<10x128xf32>
    %81 = arith.mulf %77, %80 : vector<10x128xf32>
    %cst_32 = arith.constant dense<0.000000e+00> : vector<10xf32>
    %82 = vector.multi_reduction <add>, %81, %cst_32 [1] : vector<10x128xf32> to vector<10xf32>
    %83 = vector.shape_cast %82 : vector<10xf32> to vector<10x1xf32>
    %cst_33 = arith.constant 0.0111111114 : f32
    %84 = vector.broadcast %cst_33 : f32 to vector<10x1xf32>
    %85 = arith.mulf %83, %84 : vector<10x1xf32>
    %86 = vector.broadcast %85 : vector<10x1xf32> to vector<10x128xf32>
    %87 = arith.subf %77, %86 : vector<10x128xf32>
    %88 = vector.broadcast %4 : vector<1x128xf32> to vector<10x128xf32>
    %89 = arith.mulf %87, %88 : vector<10x128xf32>
    %90 = arith.mulf %89, %89 : vector<10x128xf32>
    %cst_34 = arith.constant dense<0.000000e+00> : vector<10xf32>
    %91 = vector.multi_reduction <add>, %90, %cst_34 [1] : vector<10x128xf32> to vector<10xf32>
    %92 = vector.shape_cast %91 : vector<10xf32> to vector<10x1xf32>
    %cst_35 = arith.constant 0.0111111114 : f32
    %93 = vector.broadcast %cst_35 : f32 to vector<10x1xf32>
    %94 = arith.mulf %92, %93 : vector<10x1xf32>
    %cst_36 = arith.constant 9.99999974E-6 : f32
    %95 = vector.broadcast %cst_36 : f32 to vector<10x1xf32>
    %96 = arith.addf %94, %95 : vector<10x1xf32>
    %97 = math.rsqrt %96 : vector<10x1xf32>
    %98 = vector.broadcast %97 : vector<10x1xf32> to vector<10x128xf32>
    %99 = arith.mulf %89, %98 : vector<10x128xf32>
    %100 = vector.broadcast %78 : vector<1x128xf32> to vector<10x128xf32>
    %101 = arith.mulf %99, %100 : vector<10x128xf32>
    %102 = vector.broadcast %79 : vector<1x128xf32> to vector<10x128xf32>
    %103 = arith.addf %101, %102 : vector<10x128xf32>
    %c0_37 = arith.constant 0 : index
    %c0_38 = arith.constant 0 : index
    %104 = vector.load %arg13[%c0_37, %c0_38] : memref<128x256xf32, #tpu.memory_space<vmem>>, vector<128x256xf32>
    %c0_39 = arith.constant 0 : index
    %c0_40 = arith.constant 0 : index
    %105 = vector.load %arg14[%c0_39, %c0_40] : memref<1x256xf32, #tpu.memory_space<vmem>>, vector<1x256xf32>
    %c0_41 = arith.constant 0 : index
    %c0_42 = arith.constant 0 : index
    %106 = vector.load %arg15[%c0_41, %c0_42] : memref<256x128xf32, #tpu.memory_space<vmem>>, vector<256x128xf32>
    %c0_43 = arith.constant 0 : index
    %c0_44 = arith.constant 0 : index
    %107 = vector.load %arg16[%c0_43, %c0_44] : memref<1x128xf32, #tpu.memory_space<vmem>>, vector<1x128xf32>
    %cst_45 = arith.constant dense<0.000000e+00> : vector<10x256xf32>
    %108 = tpu.matmul %103, %104, %cst_45 {dimension_numbers = #tpu.dot_dimension_numbers<[1], [0], [0], [1], [0, 0, 1, 1], [], []>} : vector<10x128xf32>, vector<128x256xf32>, vector<10x256xf32> -> vector<10x256xf32>
    %109 = vector.broadcast %105 : vector<1x256xf32> to vector<10x256xf32>
    %110 = arith.addf %108, %109 : vector<10x256xf32>
    %cst_46 = arith.constant 0.000000e+00 : f32
    %111 = vector.broadcast %cst_46 : f32 to vector<10x256xf32>
    %112 = arith.maximumf %110, %111 : vector<10x256xf32>
    %cst_47 = arith.constant dense<0.000000e+00> : vector<10x128xf32>
    %113 = tpu.matmul %112, %106, %cst_47 {dimension_numbers = #tpu.dot_dimension_numbers<[1], [0], [0], [1], [0, 0, 1, 1], [], []>} : vector<10x256xf32>, vector<256x128xf32>, vector<10x128xf32> -> vector<10x128xf32>
    %114 = vector.broadcast %107 : vector<1x128xf32> to vector<10x128xf32>
    %115 = arith.addf %113, %114 : vector<10x128xf32>
    %116 = arith.addf %103, %115 : vector<10x128xf32>
    %c0_48 = arith.constant 0 : index
    %c0_49 = arith.constant 0 : index
    %117 = vector.load %arg17[%c0_48, %c0_49] : memref<1x128xf32, #tpu.memory_space<vmem>>, vector<1x128xf32>
    %c0_50 = arith.constant 0 : index
    %c0_51 = arith.constant 0 : index
    %118 = vector.load %arg18[%c0_50, %c0_51] : memref<1x128xf32, #tpu.memory_space<vmem>>, vector<1x128xf32>
    %119 = vector.broadcast %4 : vector<1x128xf32> to vector<10x128xf32>
    %120 = arith.mulf %116, %119 : vector<10x128xf32>
    %cst_52 = arith.constant dense<0.000000e+00> : vector<10xf32>
    %121 = vector.multi_reduction <add>, %120, %cst_52 [1] : vector<10x128xf32> to vector<10xf32>
    %122 = vector.shape_cast %121 : vector<10xf32> to vector<10x1xf32>
    %cst_53 = arith.constant 0.0111111114 : f32
    %123 = vector.broadcast %cst_53 : f32 to vector<10x1xf32>
    %124 = arith.mulf %122, %123 : vector<10x1xf32>
    %125 = vector.broadcast %124 : vector<10x1xf32> to vector<10x128xf32>
    %126 = arith.subf %116, %125 : vector<10x128xf32>
    %127 = vector.broadcast %4 : vector<1x128xf32> to vector<10x128xf32>
    %128 = arith.mulf %126, %127 : vector<10x128xf32>
    %129 = arith.mulf %128, %128 : vector<10x128xf32>
    %cst_54 = arith.constant dense<0.000000e+00> : vector<10xf32>
    %130 = vector.multi_reduction <add>, %129, %cst_54 [1] : vector<10x128xf32> to vector<10xf32>
    %131 = vector.shape_cast %130 : vector<10xf32> to vector<10x1xf32>
    %cst_55 = arith.constant 0.0111111114 : f32
    %132 = vector.broadcast %cst_55 : f32 to vector<10x1xf32>
    %133 = arith.mulf %131, %132 : vector<10x1xf32>
    %cst_56 = arith.constant 9.99999974E-6 : f32
    %134 = vector.broadcast %cst_56 : f32 to vector<10x1xf32>
    %135 = arith.addf %133, %134 : vector<10x1xf32>
    %136 = math.rsqrt %135 : vector<10x1xf32>
    %137 = vector.broadcast %136 : vector<10x1xf32> to vector<10x128xf32>
    %138 = arith.mulf %128, %137 : vector<10x128xf32>
    %139 = vector.broadcast %117 : vector<1x128xf32> to vector<10x128xf32>
    %140 = arith.mulf %138, %139 : vector<10x128xf32>
    %141 = vector.broadcast %118 : vector<1x128xf32> to vector<10x128xf32>
    %142 = arith.addf %140, %141 : vector<10x128xf32>
    %143 = tpu.iota {dimensions = array<i32: 1>} : vector<1x10xi32>
    %c5_i32 = arith.constant 5 : i32
    %144 = arith.muli %arg0, %c5_i32 : i32
    %c0_i32_57 = arith.constant 0 : i32
    %145 = arith.addi %144, %c0_i32_57 : i32
    %146 = arith.index_cast %145 : i32 to index
    %147 = memref.load %arg2[%146] : memref<10xi32, #tpu.memory_space<smem>>
    %148 = vector.broadcast %147 : i32 to vector<1x10xi32>
    %149 = arith.cmpi eq, %143, %148 : vector<1x10xi32>
    %150 = arith.extui %149 : vector<1x10xi1> to vector<1x10xi32>
    %151 = arith.sitofp %150 : vector<1x10xi32> to vector<1x10xf32>
    %c5_i32_58 = arith.constant 5 : i32
    %152 = arith.muli %arg0, %c5_i32_58 : i32
    %c1_i32_59 = arith.constant 1 : i32
    %153 = arith.addi %152, %c1_i32_59 : i32
    %154 = arith.index_cast %153 : i32 to index
    %155 = memref.load %arg2[%154] : memref<10xi32, #tpu.memory_space<smem>>
    %156 = vector.broadcast %155 : i32 to vector<1x10xi32>
    %157 = arith.cmpi eq, %143, %156 : vector<1x10xi32>
    %158 = arith.extui %157 : vector<1x10xi1> to vector<1x10xi32>
    %159 = arith.sitofp %158 : vector<1x10xi32> to vector<1x10xf32>
    %c5_i32_60 = arith.constant 5 : i32
    %160 = arith.muli %arg0, %c5_i32_60 : i32
    %c2_i32 = arith.constant 2 : i32
    %161 = arith.addi %160, %c2_i32 : i32
    %162 = arith.index_cast %161 : i32 to index
    %163 = memref.load %arg2[%162] : memref<10xi32, #tpu.memory_space<smem>>
    %164 = vector.broadcast %163 : i32 to vector<1x10xi32>
    %165 = arith.cmpi eq, %143, %164 : vector<1x10xi32>
    %166 = arith.extui %165 : vector<1x10xi1> to vector<1x10xi32>
    %167 = arith.sitofp %166 : vector<1x10xi32> to vector<1x10xf32>
    %c5_i32_61 = arith.constant 5 : i32
    %168 = arith.muli %arg0, %c5_i32_61 : i32
    %c3_i32 = arith.constant 3 : i32
    %169 = arith.addi %168, %c3_i32 : i32
    %170 = arith.index_cast %169 : i32 to index
    %171 = memref.load %arg2[%170] : memref<10xi32, #tpu.memory_space<smem>>
    %172 = vector.broadcast %171 : i32 to vector<1x10xi32>
    %173 = arith.cmpi eq, %143, %172 : vector<1x10xi32>
    %174 = arith.extui %173 : vector<1x10xi1> to vector<1x10xi32>
    %175 = arith.sitofp %174 : vector<1x10xi32> to vector<1x10xf32>
    %c5_i32_62 = arith.constant 5 : i32
    %176 = arith.muli %arg0, %c5_i32_62 : i32
    %c4_i32 = arith.constant 4 : i32
    %177 = arith.addi %176, %c4_i32 : i32
    %178 = arith.index_cast %177 : i32 to index
    %179 = memref.load %arg2[%178] : memref<10xi32, #tpu.memory_space<smem>>
    %180 = vector.broadcast %179 : i32 to vector<1x10xi32>
    %181 = arith.cmpi eq, %143, %180 : vector<1x10xi32>
    %182 = arith.extui %181 : vector<1x10xi1> to vector<1x10xi32>
    %183 = arith.sitofp %182 : vector<1x10xi32> to vector<1x10xf32>
    %184 = tpu.concatenate %151, %159, %167, %175, %183 in 0 : vector<1x10xf32>, vector<1x10xf32>, vector<1x10xf32>, vector<1x10xf32>, vector<1x10xf32> -> vector<5x10xf32>
    %cst_63 = arith.constant dense<0.000000e+00> : vector<5x128xf32>
    %185 = tpu.matmul %184, %142, %cst_63 {dimension_numbers = #tpu.dot_dimension_numbers<[1], [0], [0], [1], [0, 0, 1, 1], [], []>} : vector<5x10xf32>, vector<10x128xf32>, vector<5x128xf32> -> vector<5x128xf32>
    %186 = arith.index_cast %arg0 : i32 to index
    %187 = memref.load %arg1[%186] : memref<2xi32, #tpu.memory_space<smem>>
    %188 = vector.broadcast %187 : i32 to vector<1x10xi32>
    %189 = arith.cmpi eq, %143, %188 : vector<1x10xi32>
    %190 = arith.extui %189 : vector<1x10xi1> to vector<1x10xi32>
    %191 = arith.sitofp %190 : vector<1x10xi32> to vector<1x10xf32>
    %cst_64 = arith.constant dense<0.000000e+00> : vector<1x128xf32>
    %192 = tpu.matmul %191, %142, %cst_64 {dimension_numbers = #tpu.dot_dimension_numbers<[1], [0], [0], [1], [0, 0, 1, 1], [], []>} : vector<1x10xf32>, vector<10x128xf32>, vector<1x128xf32> -> vector<1x128xf32>
    %c0_65 = arith.constant 0 : index
    %c0_66 = arith.constant 0 : index
    %193 = vector.load %arg19[%c0_65, %c0_66] : memref<128x128xf32, #tpu.memory_space<vmem>>, vector<128x128xf32>
    %cst_67 = arith.constant dense<0.000000e+00> : vector<5x128xf32>
    %194 = tpu.matmul %185, %193, %cst_67 {dimension_numbers = #tpu.dot_dimension_numbers<[1], [0], [0], [1], [0, 0, 1, 1], [], []>} : vector<5x128xf32>, vector<128x128xf32>, vector<5x128xf32> -> vector<5x128xf32>
    %c0_68 = arith.constant 0 : index
    %c0_69 = arith.constant 0 : index
    %195 = vector.load %arg20[%c0_68, %c0_69] : memref<128x128xf32, #tpu.memory_space<vmem>>, vector<128x128xf32>
    %cst_70 = arith.constant dense<0.000000e+00> : vector<1x128xf32>
    %196 = tpu.matmul %192, %195, %cst_70 {dimension_numbers = #tpu.dot_dimension_numbers<[1], [0], [0], [1], [0, 0, 1, 1], [], []>} : vector<1x128xf32>, vector<128x128xf32>, vector<1x128xf32> -> vector<1x128xf32>
    %197 = vector.broadcast %196 : vector<1x128xf32> to vector<5x128xf32>
    %198 = arith.addf %194, %197 : vector<5x128xf32>
    %199 = tpu.iota {dimensions = array<i32: 0>} : vector<5x5xi32>
    %200 = tpu.iota {dimensions = array<i32: 1>} : vector<5x5xi32>
    %201 = arith.cmpi sgt, %200, %199 : vector<5x5xi32>
    %202 = arith.index_cast %arg0 : i32 to index
    %203 = memref.load %arg3[%202] : memref<2xi32, #tpu.memory_space<smem>>
    %204 = vector.broadcast %203 : i32 to vector<5x5xi32>
    %205 = arith.cmpi sgt, %200, %204 : vector<5x5xi32>
    %206 = arith.ori %201, %205 : vector<5x5xi1>
    %cst_71 = arith.constant -1.000000e+30 : f32
    %cst_72 = arith.constant 0.000000e+00 : f32
    %207 = vector.broadcast %cst_71 : f32 to vector<5x5xf32>
    %208 = vector.broadcast %cst_72 : f32 to vector<5x5xf32>
    %209 = arith.select %206, %207, %208 : vector<5x5xi1>, vector<5x5xf32>
    %c0_73 = arith.constant 0 : index
    %c0_74 = arith.constant 0 : index
    %210 = vector.load %arg21[%c0_73, %c0_74] : memref<128x384xf32, #tpu.memory_space<vmem>>, vector<128x384xf32>
    %c0_75 = arith.constant 0 : index
    %c0_76 = arith.constant 0 : index
    %211 = vector.load %arg22[%c0_75, %c0_76] : memref<1x384xf32, #tpu.memory_space<vmem>>, vector<1x384xf32>
    %c0_77 = arith.constant 0 : index
    %c0_78 = arith.constant 0 : index
    %212 = vector.load %arg23[%c0_77, %c0_78] : memref<128x128xf32, #tpu.memory_space<vmem>>, vector<128x128xf32>
    %c0_79 = arith.constant 0 : index
    %c0_80 = arith.constant 0 : index
    %213 = vector.load %arg24[%c0_79, %c0_80] : memref<1x128xf32, #tpu.memory_space<vmem>>, vector<1x128xf32>
    %cst_81 = arith.constant dense<0.000000e+00> : vector<5x384xf32>
    %214 = tpu.matmul %198, %210, %cst_81 {dimension_numbers = #tpu.dot_dimension_numbers<[1], [0], [0], [1], [0, 0, 1, 1], [], []>} : vector<5x128xf32>, vector<128x384xf32>, vector<5x384xf32> -> vector<5x384xf32>
    %215 = vector.broadcast %211 : vector<1x384xf32> to vector<5x384xf32>
    %216 = arith.addf %214, %215 : vector<5x384xf32>
    %217 = vector.extract_strided_slice %216 {offsets = [0, 0], sizes = [5, 128], strides = [1, 1]} : vector<5x384xf32> to vector<5x128xf32>
    %218 = vector.extract_strided_slice %216 {offsets = [0, 128], sizes = [5, 128], strides = [1, 1]} : vector<5x384xf32> to vector<5x128xf32>
    %219 = vector.extract_strided_slice %216 {offsets = [0, 256], sizes = [5, 128], strides = [1, 1]} : vector<5x384xf32> to vector<5x128xf32>
    %220 = vector.extract_strided_slice %217 {offsets = [0, 0], sizes = [5, 64], strides = [1, 1]} : vector<5x128xf32> to vector<5x64xf32>
    %221 = vector.extract_strided_slice %218 {offsets = [0, 0], sizes = [5, 64], strides = [1, 1]} : vector<5x128xf32> to vector<5x64xf32>
    %cst_82 = arith.constant dense<0.000000e+00> : vector<5x5xf32>
    %222 = tpu.matmul %220, %221, %cst_82 {dimension_numbers = #tpu.dot_dimension_numbers<[1], [1], [0], [0], [0, 0, 1, 0], [], []>} : vector<5x64xf32>, vector<5x64xf32>, vector<5x5xf32> -> vector<5x5xf32>
    %cst_83 = arith.constant 0.149071202 : f32
    %223 = vector.broadcast %cst_83 : f32 to vector<5x5xf32>
    %224 = arith.mulf %222, %223 : vector<5x5xf32>
    %225 = arith.addf %224, %209 : vector<5x5xf32>
    %cst_84 = arith.constant dense<0xFF800000> : vector<5xf32>
    %226 = vector.multi_reduction <maximumf>, %225, %cst_84 [1] : vector<5x5xf32> to vector<5xf32>
    %227 = vector.shape_cast %226 : vector<5xf32> to vector<5x1xf32>
    %228 = vector.broadcast %227 : vector<5x1xf32> to vector<5x5xf32>
    %229 = arith.subf %225, %228 : vector<5x5xf32>
    %230 = math.exp %229 : vector<5x5xf32>
    %cst_85 = arith.constant dense<0.000000e+00> : vector<5xf32>
    %231 = vector.multi_reduction <add>, %230, %cst_85 [1] : vector<5x5xf32> to vector<5xf32>
    %232 = vector.shape_cast %231 : vector<5xf32> to vector<5x1xf32>
    %233 = tpu.reciprocal %232 {approx = true} : vector<5x1xf32> -> vector<5x1xf32>
    %234 = vector.broadcast %233 : vector<5x1xf32> to vector<5x5xf32>
    %235 = arith.mulf %230, %234 : vector<5x5xf32>
    %236 = vector.extract_strided_slice %219 {offsets = [0, 0], sizes = [5, 64], strides = [1, 1]} : vector<5x128xf32> to vector<5x64xf32>
    %cst_86 = arith.constant dense<0.000000e+00> : vector<5x64xf32>
    %237 = tpu.matmul %235, %236, %cst_86 {dimension_numbers = #tpu.dot_dimension_numbers<[1], [0], [0], [1], [0, 0, 1, 1], [], []>} : vector<5x5xf32>, vector<5x64xf32>, vector<5x64xf32> -> vector<5x64xf32>
    %238 = vector.extract_strided_slice %217 {offsets = [0, 64], sizes = [5, 64], strides = [1, 1]} : vector<5x128xf32> to vector<5x64xf32>
    %239 = vector.extract_strided_slice %218 {offsets = [0, 64], sizes = [5, 64], strides = [1, 1]} : vector<5x128xf32> to vector<5x64xf32>
    %cst_87 = arith.constant dense<0.000000e+00> : vector<5x5xf32>
    %240 = tpu.matmul %238, %239, %cst_87 {dimension_numbers = #tpu.dot_dimension_numbers<[1], [1], [0], [0], [0, 0, 1, 0], [], []>} : vector<5x64xf32>, vector<5x64xf32>, vector<5x5xf32> -> vector<5x5xf32>
    %cst_88 = arith.constant 0.149071202 : f32
    %241 = vector.broadcast %cst_88 : f32 to vector<5x5xf32>
    %242 = arith.mulf %240, %241 : vector<5x5xf32>
    %243 = arith.addf %242, %209 : vector<5x5xf32>
    %cst_89 = arith.constant dense<0xFF800000> : vector<5xf32>
    %244 = vector.multi_reduction <maximumf>, %243, %cst_89 [1] : vector<5x5xf32> to vector<5xf32>
    %245 = vector.shape_cast %244 : vector<5xf32> to vector<5x1xf32>
    %246 = vector.broadcast %245 : vector<5x1xf32> to vector<5x5xf32>
    %247 = arith.subf %243, %246 : vector<5x5xf32>
    %248 = math.exp %247 : vector<5x5xf32>
    %cst_90 = arith.constant dense<0.000000e+00> : vector<5xf32>
    %249 = vector.multi_reduction <add>, %248, %cst_90 [1] : vector<5x5xf32> to vector<5xf32>
    %250 = vector.shape_cast %249 : vector<5xf32> to vector<5x1xf32>
    %251 = tpu.reciprocal %250 {approx = true} : vector<5x1xf32> -> vector<5x1xf32>
    %252 = vector.broadcast %251 : vector<5x1xf32> to vector<5x5xf32>
    %253 = arith.mulf %248, %252 : vector<5x5xf32>
    %254 = vector.extract_strided_slice %219 {offsets = [0, 64], sizes = [5, 64], strides = [1, 1]} : vector<5x128xf32> to vector<5x64xf32>
    %cst_91 = arith.constant dense<0.000000e+00> : vector<5x64xf32>
    %255 = tpu.matmul %253, %254, %cst_91 {dimension_numbers = #tpu.dot_dimension_numbers<[1], [0], [0], [1], [0, 0, 1, 1], [], []>} : vector<5x5xf32>, vector<5x64xf32>, vector<5x64xf32> -> vector<5x64xf32>
    %256 = tpu.concatenate %237, %255 in 1 : vector<5x64xf32>, vector<5x64xf32> -> vector<5x128xf32>
    %cst_92 = arith.constant dense<0.000000e+00> : vector<5x128xf32>
    %257 = tpu.matmul %256, %212, %cst_92 {dimension_numbers = #tpu.dot_dimension_numbers<[1], [0], [0], [1], [0, 0, 1, 1], [], []>} : vector<5x128xf32>, vector<128x128xf32>, vector<5x128xf32> -> vector<5x128xf32>
    %258 = vector.broadcast %213 : vector<1x128xf32> to vector<5x128xf32>
    %259 = arith.addf %257, %258 : vector<5x128xf32>
    %260 = arith.addf %198, %259 : vector<5x128xf32>
    %c0_93 = arith.constant 0 : index
    %c0_94 = arith.constant 0 : index
    %261 = vector.load %arg25[%c0_93, %c0_94] : memref<1x128xf32, #tpu.memory_space<vmem>>, vector<1x128xf32>
    %c0_95 = arith.constant 0 : index
    %c0_96 = arith.constant 0 : index
    %262 = vector.load %arg26[%c0_95, %c0_96] : memref<1x128xf32, #tpu.memory_space<vmem>>, vector<1x128xf32>
    %263 = vector.broadcast %4 : vector<1x128xf32> to vector<5x128xf32>
    %264 = arith.mulf %260, %263 : vector<5x128xf32>
    %cst_97 = arith.constant dense<0.000000e+00> : vector<5xf32>
    %265 = vector.multi_reduction <add>, %264, %cst_97 [1] : vector<5x128xf32> to vector<5xf32>
    %266 = vector.shape_cast %265 : vector<5xf32> to vector<5x1xf32>
    %cst_98 = arith.constant 0.0111111114 : f32
    %267 = vector.broadcast %cst_98 : f32 to vector<5x1xf32>
    %268 = arith.mulf %266, %267 : vector<5x1xf32>
    %269 = vector.broadcast %268 : vector<5x1xf32> to vector<5x128xf32>
    %270 = arith.subf %260, %269 : vector<5x128xf32>
    %271 = vector.broadcast %4 : vector<1x128xf32> to vector<5x128xf32>
    %272 = arith.mulf %270, %271 : vector<5x128xf32>
    %273 = arith.mulf %272, %272 : vector<5x128xf32>
    %cst_99 = arith.constant dense<0.000000e+00> : vector<5xf32>
    %274 = vector.multi_reduction <add>, %273, %cst_99 [1] : vector<5x128xf32> to vector<5xf32>
    %275 = vector.shape_cast %274 : vector<5xf32> to vector<5x1xf32>
    %cst_100 = arith.constant 0.0111111114 : f32
    %276 = vector.broadcast %cst_100 : f32 to vector<5x1xf32>
    %277 = arith.mulf %275, %276 : vector<5x1xf32>
    %cst_101 = arith.constant 9.99999974E-6 : f32
    %278 = vector.broadcast %cst_101 : f32 to vector<5x1xf32>
    %279 = arith.addf %277, %278 : vector<5x1xf32>
    %280 = math.rsqrt %279 : vector<5x1xf32>
    %281 = vector.broadcast %280 : vector<5x1xf32> to vector<5x128xf32>
    %282 = arith.mulf %272, %281 : vector<5x128xf32>
    %283 = vector.broadcast %261 : vector<1x128xf32> to vector<5x128xf32>
    %284 = arith.mulf %282, %283 : vector<5x128xf32>
    %285 = vector.broadcast %262 : vector<1x128xf32> to vector<5x128xf32>
    %286 = arith.addf %284, %285 : vector<5x128xf32>
    %c0_102 = arith.constant 0 : index
    %c0_103 = arith.constant 0 : index
    %287 = vector.load %arg27[%c0_102, %c0_103] : memref<128x128xf32, #tpu.memory_space<vmem>>, vector<128x128xf32>
    %c0_104 = arith.constant 0 : index
    %c0_105 = arith.constant 0 : index
    %288 = vector.load %arg28[%c0_104, %c0_105] : memref<1x128xf32, #tpu.memory_space<vmem>>, vector<1x128xf32>
    %c0_106 = arith.constant 0 : index
    %c0_107 = arith.constant 0 : index
    %289 = vector.load %arg29[%c0_106, %c0_107] : memref<128x256xf32, #tpu.memory_space<vmem>>, vector<128x256xf32>
    %c0_108 = arith.constant 0 : index
    %c0_109 = arith.constant 0 : index
    %290 = vector.load %arg30[%c0_108, %c0_109] : memref<1x256xf32, #tpu.memory_space<vmem>>, vector<1x256xf32>
    %c0_110 = arith.constant 0 : index
    %c0_111 = arith.constant 0 : index
    %291 = vector.load %arg31[%c0_110, %c0_111] : memref<128x128xf32, #tpu.memory_space<vmem>>, vector<128x128xf32>
    %c0_112 = arith.constant 0 : index
    %c0_113 = arith.constant 0 : index
    %292 = vector.load %arg32[%c0_112, %c0_113] : memref<1x128xf32, #tpu.memory_space<vmem>>, vector<1x128xf32>
    %cst_114 = arith.constant dense<0.000000e+00> : vector<5x128xf32>
    %293 = tpu.matmul %286, %287, %cst_114 {dimension_numbers = #tpu.dot_dimension_numbers<[1], [0], [0], [1], [0, 0, 1, 1], [], []>} : vector<5x128xf32>, vector<128x128xf32>, vector<5x128xf32> -> vector<5x128xf32>
    %294 = vector.broadcast %288 : vector<1x128xf32> to vector<5x128xf32>
    %295 = arith.addf %293, %294 : vector<5x128xf32>
    %cst_115 = arith.constant dense<0.000000e+00> : vector<10x256xf32>
    %296 = tpu.matmul %142, %289, %cst_115 {dimension_numbers = #tpu.dot_dimension_numbers<[1], [0], [0], [1], [0, 0, 1, 1], [], []>} : vector<10x128xf32>, vector<128x256xf32>, vector<10x256xf32> -> vector<10x256xf32>
    %297 = vector.broadcast %290 : vector<1x256xf32> to vector<10x256xf32>
    %298 = arith.addf %296, %297 : vector<10x256xf32>
    %299 = vector.extract_strided_slice %298 {offsets = [0, 0], sizes = [10, 128], strides = [1, 1]} : vector<10x256xf32> to vector<10x128xf32>
    %300 = vector.extract_strided_slice %298 {offsets = [0, 128], sizes = [10, 128], strides = [1, 1]} : vector<10x256xf32> to vector<10x128xf32>
    %301 = vector.extract_strided_slice %295 {offsets = [0, 0], sizes = [5, 64], strides = [1, 1]} : vector<5x128xf32> to vector<5x64xf32>
    %302 = vector.extract_strided_slice %299 {offsets = [0, 0], sizes = [10, 64], strides = [1, 1]} : vector<10x128xf32> to vector<10x64xf32>
    %cst_116 = arith.constant dense<0.000000e+00> : vector<5x10xf32>
    %303 = tpu.matmul %301, %302, %cst_116 {dimension_numbers = #tpu.dot_dimension_numbers<[1], [1], [0], [0], [0, 0, 1, 0], [], []>} : vector<5x64xf32>, vector<10x64xf32>, vector<5x10xf32> -> vector<5x10xf32>
    %cst_117 = arith.constant 0.149071202 : f32
    %304 = vector.broadcast %cst_117 : f32 to vector<5x10xf32>
    %305 = arith.mulf %303, %304 : vector<5x10xf32>
    %cst_118 = arith.constant dense<0xFF800000> : vector<5xf32>
    %306 = vector.multi_reduction <maximumf>, %305, %cst_118 [1] : vector<5x10xf32> to vector<5xf32>
    %307 = vector.shape_cast %306 : vector<5xf32> to vector<5x1xf32>
    %308 = vector.broadcast %307 : vector<5x1xf32> to vector<5x10xf32>
    %309 = arith.subf %305, %308 : vector<5x10xf32>
    %310 = math.exp %309 : vector<5x10xf32>
    %cst_119 = arith.constant dense<0.000000e+00> : vector<5xf32>
    %311 = vector.multi_reduction <add>, %310, %cst_119 [1] : vector<5x10xf32> to vector<5xf32>
    %312 = vector.shape_cast %311 : vector<5xf32> to vector<5x1xf32>
    %313 = tpu.reciprocal %312 {approx = true} : vector<5x1xf32> -> vector<5x1xf32>
    %314 = vector.broadcast %313 : vector<5x1xf32> to vector<5x10xf32>
    %315 = arith.mulf %310, %314 : vector<5x10xf32>
    %316 = vector.extract_strided_slice %300 {offsets = [0, 0], sizes = [10, 64], strides = [1, 1]} : vector<10x128xf32> to vector<10x64xf32>
    %cst_120 = arith.constant dense<0.000000e+00> : vector<5x64xf32>
    %317 = tpu.matmul %315, %316, %cst_120 {dimension_numbers = #tpu.dot_dimension_numbers<[1], [0], [0], [1], [0, 0, 1, 1], [], []>} : vector<5x10xf32>, vector<10x64xf32>, vector<5x64xf32> -> vector<5x64xf32>
    %318 = vector.extract_strided_slice %295 {offsets = [0, 64], sizes = [5, 64], strides = [1, 1]} : vector<5x128xf32> to vector<5x64xf32>
    %319 = vector.extract_strided_slice %299 {offsets = [0, 64], sizes = [10, 64], strides = [1, 1]} : vector<10x128xf32> to vector<10x64xf32>
    %cst_121 = arith.constant dense<0.000000e+00> : vector<5x10xf32>
    %320 = tpu.matmul %318, %319, %cst_121 {dimension_numbers = #tpu.dot_dimension_numbers<[1], [1], [0], [0], [0, 0, 1, 0], [], []>} : vector<5x64xf32>, vector<10x64xf32>, vector<5x10xf32> -> vector<5x10xf32>
    %cst_122 = arith.constant 0.149071202 : f32
    %321 = vector.broadcast %cst_122 : f32 to vector<5x10xf32>
    %322 = arith.mulf %320, %321 : vector<5x10xf32>
    %cst_123 = arith.constant dense<0xFF800000> : vector<5xf32>
    %323 = vector.multi_reduction <maximumf>, %322, %cst_123 [1] : vector<5x10xf32> to vector<5xf32>
    %324 = vector.shape_cast %323 : vector<5xf32> to vector<5x1xf32>
    %325 = vector.broadcast %324 : vector<5x1xf32> to vector<5x10xf32>
    %326 = arith.subf %322, %325 : vector<5x10xf32>
    %327 = math.exp %326 : vector<5x10xf32>
    %cst_124 = arith.constant dense<0.000000e+00> : vector<5xf32>
    %328 = vector.multi_reduction <add>, %327, %cst_124 [1] : vector<5x10xf32> to vector<5xf32>
    %329 = vector.shape_cast %328 : vector<5xf32> to vector<5x1xf32>
    %330 = tpu.reciprocal %329 {approx = true} : vector<5x1xf32> -> vector<5x1xf32>
    %331 = vector.broadcast %330 : vector<5x1xf32> to vector<5x10xf32>
    %332 = arith.mulf %327, %331 : vector<5x10xf32>
    %333 = vector.extract_strided_slice %300 {offsets = [0, 64], sizes = [10, 64], strides = [1, 1]} : vector<10x128xf32> to vector<10x64xf32>
    %cst_125 = arith.constant dense<0.000000e+00> : vector<5x64xf32>
    %334 = tpu.matmul %332, %333, %cst_125 {dimension_numbers = #tpu.dot_dimension_numbers<[1], [0], [0], [1], [0, 0, 1, 1], [], []>} : vector<5x10xf32>, vector<10x64xf32>, vector<5x64xf32> -> vector<5x64xf32>
    %335 = tpu.concatenate %317, %334 in 1 : vector<5x64xf32>, vector<5x64xf32> -> vector<5x128xf32>
    %cst_126 = arith.constant dense<0.000000e+00> : vector<5x128xf32>
    %336 = tpu.matmul %335, %291, %cst_126 {dimension_numbers = #tpu.dot_dimension_numbers<[1], [0], [0], [1], [0, 0, 1, 1], [], []>} : vector<5x128xf32>, vector<128x128xf32>, vector<5x128xf32> -> vector<5x128xf32>
    %337 = vector.broadcast %292 : vector<1x128xf32> to vector<5x128xf32>
    %338 = arith.addf %336, %337 : vector<5x128xf32>
    %339 = arith.addf %286, %338 : vector<5x128xf32>
    %c0_127 = arith.constant 0 : index
    %c0_128 = arith.constant 0 : index
    %340 = vector.load %arg33[%c0_127, %c0_128] : memref<1x128xf32, #tpu.memory_space<vmem>>, vector<1x128xf32>
    %c0_129 = arith.constant 0 : index
    %c0_130 = arith.constant 0 : index
    %341 = vector.load %arg34[%c0_129, %c0_130] : memref<1x128xf32, #tpu.memory_space<vmem>>, vector<1x128xf32>
    %342 = vector.broadcast %4 : vector<1x128xf32> to vector<5x128xf32>
    %343 = arith.mulf %339, %342 : vector<5x128xf32>
    %cst_131 = arith.constant dense<0.000000e+00> : vector<5xf32>
    %344 = vector.multi_reduction <add>, %343, %cst_131 [1] : vector<5x128xf32> to vector<5xf32>
    %345 = vector.shape_cast %344 : vector<5xf32> to vector<5x1xf32>
    %cst_132 = arith.constant 0.0111111114 : f32
    %346 = vector.broadcast %cst_132 : f32 to vector<5x1xf32>
    %347 = arith.mulf %345, %346 : vector<5x1xf32>
    %348 = vector.broadcast %347 : vector<5x1xf32> to vector<5x128xf32>
    %349 = arith.subf %339, %348 : vector<5x128xf32>
    %350 = vector.broadcast %4 : vector<1x128xf32> to vector<5x128xf32>
    %351 = arith.mulf %349, %350 : vector<5x128xf32>
    %352 = arith.mulf %351, %351 : vector<5x128xf32>
    %cst_133 = arith.constant dense<0.000000e+00> : vector<5xf32>
    %353 = vector.multi_reduction <add>, %352, %cst_133 [1] : vector<5x128xf32> to vector<5xf32>
    %354 = vector.shape_cast %353 : vector<5xf32> to vector<5x1xf32>
    %cst_134 = arith.constant 0.0111111114 : f32
    %355 = vector.broadcast %cst_134 : f32 to vector<5x1xf32>
    %356 = arith.mulf %354, %355 : vector<5x1xf32>
    %cst_135 = arith.constant 9.99999974E-6 : f32
    %357 = vector.broadcast %cst_135 : f32 to vector<5x1xf32>
    %358 = arith.addf %356, %357 : vector<5x1xf32>
    %359 = math.rsqrt %358 : vector<5x1xf32>
    %360 = vector.broadcast %359 : vector<5x1xf32> to vector<5x128xf32>
    %361 = arith.mulf %351, %360 : vector<5x128xf32>
    %362 = vector.broadcast %340 : vector<1x128xf32> to vector<5x128xf32>
    %363 = arith.mulf %361, %362 : vector<5x128xf32>
    %364 = vector.broadcast %341 : vector<1x128xf32> to vector<5x128xf32>
    %365 = arith.addf %363, %364 : vector<5x128xf32>
    %c0_136 = arith.constant 0 : index
    %c0_137 = arith.constant 0 : index
    %366 = vector.load %arg35[%c0_136, %c0_137] : memref<128x256xf32, #tpu.memory_space<vmem>>, vector<128x256xf32>
    %c0_138 = arith.constant 0 : index
    %c0_139 = arith.constant 0 : index
    %367 = vector.load %arg36[%c0_138, %c0_139] : memref<1x256xf32, #tpu.memory_space<vmem>>, vector<1x256xf32>
    %c0_140 = arith.constant 0 : index
    %c0_141 = arith.constant 0 : index
    %368 = vector.load %arg37[%c0_140, %c0_141] : memref<256x128xf32, #tpu.memory_space<vmem>>, vector<256x128xf32>
    %c0_142 = arith.constant 0 : index
    %c0_143 = arith.constant 0 : index
    %369 = vector.load %arg38[%c0_142, %c0_143] : memref<1x128xf32, #tpu.memory_space<vmem>>, vector<1x128xf32>
    %cst_144 = arith.constant dense<0.000000e+00> : vector<5x256xf32>
    %370 = tpu.matmul %365, %366, %cst_144 {dimension_numbers = #tpu.dot_dimension_numbers<[1], [0], [0], [1], [0, 0, 1, 1], [], []>} : vector<5x128xf32>, vector<128x256xf32>, vector<5x256xf32> -> vector<5x256xf32>
    %371 = vector.broadcast %367 : vector<1x256xf32> to vector<5x256xf32>
    %372 = arith.addf %370, %371 : vector<5x256xf32>
    %cst_145 = arith.constant 0.000000e+00 : f32
    %373 = vector.broadcast %cst_145 : f32 to vector<5x256xf32>
    %374 = arith.maximumf %372, %373 : vector<5x256xf32>
    %cst_146 = arith.constant dense<0.000000e+00> : vector<5x128xf32>
    %375 = tpu.matmul %374, %368, %cst_146 {dimension_numbers = #tpu.dot_dimension_numbers<[1], [0], [0], [1], [0, 0, 1, 1], [], []>} : vector<5x256xf32>, vector<256x128xf32>, vector<5x128xf32> -> vector<5x128xf32>
    %376 = vector.broadcast %369 : vector<1x128xf32> to vector<5x128xf32>
    %377 = arith.addf %375, %376 : vector<5x128xf32>
    %378 = arith.addf %365, %377 : vector<5x128xf32>
    %c0_147 = arith.constant 0 : index
    %c0_148 = arith.constant 0 : index
    %379 = vector.load %arg39[%c0_147, %c0_148] : memref<1x128xf32, #tpu.memory_space<vmem>>, vector<1x128xf32>
    %c0_149 = arith.constant 0 : index
    %c0_150 = arith.constant 0 : index
    %380 = vector.load %arg40[%c0_149, %c0_150] : memref<1x128xf32, #tpu.memory_space<vmem>>, vector<1x128xf32>
    %381 = vector.broadcast %4 : vector<1x128xf32> to vector<5x128xf32>
    %382 = arith.mulf %378, %381 : vector<5x128xf32>
    %cst_151 = arith.constant dense<0.000000e+00> : vector<5xf32>
    %383 = vector.multi_reduction <add>, %382, %cst_151 [1] : vector<5x128xf32> to vector<5xf32>
    %384 = vector.shape_cast %383 : vector<5xf32> to vector<5x1xf32>
    %cst_152 = arith.constant 0.0111111114 : f32
    %385 = vector.broadcast %cst_152 : f32 to vector<5x1xf32>
    %386 = arith.mulf %384, %385 : vector<5x1xf32>
    %387 = vector.broadcast %386 : vector<5x1xf32> to vector<5x128xf32>
    %388 = arith.subf %378, %387 : vector<5x128xf32>
    %389 = vector.broadcast %4 : vector<1x128xf32> to vector<5x128xf32>
    %390 = arith.mulf %388, %389 : vector<5x128xf32>
    %391 = arith.mulf %390, %390 : vector<5x128xf32>
    %cst_153 = arith.constant dense<0.000000e+00> : vector<5xf32>
    %392 = vector.multi_reduction <add>, %391, %cst_153 [1] : vector<5x128xf32> to vector<5xf32>
    %393 = vector.shape_cast %392 : vector<5xf32> to vector<5x1xf32>
    %cst_154 = arith.constant 0.0111111114 : f32
    %394 = vector.broadcast %cst_154 : f32 to vector<5x1xf32>
    %395 = arith.mulf %393, %394 : vector<5x1xf32>
    %cst_155 = arith.constant 9.99999974E-6 : f32
    %396 = vector.broadcast %cst_155 : f32 to vector<5x1xf32>
    %397 = arith.addf %395, %396 : vector<5x1xf32>
    %398 = math.rsqrt %397 : vector<5x1xf32>
    %399 = vector.broadcast %398 : vector<5x1xf32> to vector<5x128xf32>
    %400 = arith.mulf %390, %399 : vector<5x128xf32>
    %401 = vector.broadcast %379 : vector<1x128xf32> to vector<5x128xf32>
    %402 = arith.mulf %400, %401 : vector<5x128xf32>
    %403 = vector.broadcast %380 : vector<1x128xf32> to vector<5x128xf32>
    %404 = arith.addf %402, %403 : vector<5x128xf32>
    %c0_156 = arith.constant 0 : index
    %c0_157 = arith.constant 0 : index
    %405 = vector.load %arg41[%c0_156, %c0_157] : memref<128x128xf32, #tpu.memory_space<vmem>>, vector<128x128xf32>
    %cst_158 = arith.constant dense<0.000000e+00> : vector<10x128xf32>
    %406 = tpu.matmul %142, %405, %cst_158 {dimension_numbers = #tpu.dot_dimension_numbers<[1], [0], [0], [1], [0, 0, 1, 1], [], []>} : vector<10x128xf32>, vector<128x128xf32>, vector<10x128xf32> -> vector<10x128xf32>
    %c0_159 = arith.constant 0 : index
    %c0_160 = arith.constant 0 : index
    %407 = vector.load %arg42[%c0_159, %c0_160] : memref<128x128xf32, #tpu.memory_space<vmem>>, vector<128x128xf32>
    %cst_161 = arith.constant dense<0.000000e+00> : vector<5x128xf32>
    %408 = tpu.matmul %404, %407, %cst_161 {dimension_numbers = #tpu.dot_dimension_numbers<[1], [0], [0], [1], [0, 0, 1, 1], [], []>} : vector<5x128xf32>, vector<128x128xf32>, vector<5x128xf32> -> vector<5x128xf32>
    %409 = vector.shape_cast %406 : vector<10x128xf32> to vector<1x10x128xf32>
    %410 = vector.shape_cast %408 : vector<5x128xf32> to vector<5x1x128xf32>
    %411 = vector.broadcast %409 : vector<1x10x128xf32> to vector<5x10x128xf32>
    %412 = vector.broadcast %410 : vector<5x1x128xf32> to vector<5x10x128xf32>
    %413 = arith.addf %411, %412 : vector<5x10x128xf32>
    %414 = math.tanh %413 : vector<5x10x128xf32>
    %c0_162 = arith.constant 0 : index
    %c0_163 = arith.constant 0 : index
    %415 = vector.load %arg43[%c0_162, %c0_163] : memref<1x128xf32, #tpu.memory_space<vmem>>, vector<1x128xf32>
    %416 = vector.shape_cast %415 : vector<1x128xf32> to vector<1x1x128xf32>
    %417 = vector.broadcast %416 : vector<1x1x128xf32> to vector<5x10x128xf32>
    %418 = arith.mulf %414, %417 : vector<5x10x128xf32>
    %cst_164 = arith.constant dense<0.000000e+00> : vector<5x10xf32>
    %419 = vector.multi_reduction <add>, %418, %cst_164 [2] : vector<5x10x128xf32> to vector<5x10xf32>
    %cst_165 = arith.constant -1.000000e+30 : f32
    %420 = vector.broadcast %cst_165 : f32 to vector<5x118xf32>
    %421 = tpu.concatenate %419, %420 in 1 : vector<5x10xf32>, vector<5x118xf32> -> vector<5x128xf32>
    %cst_166 = arith.constant dense<0xFF800000> : vector<5xf32>
    %422 = vector.multi_reduction <maximumf>, %421, %cst_166 [1] : vector<5x128xf32> to vector<5xf32>
    %423 = vector.shape_cast %422 : vector<5xf32> to vector<5x1xf32>
    %424 = vector.broadcast %423 : vector<5x1xf32> to vector<5x128xf32>
    %425 = arith.subf %421, %424 : vector<5x128xf32>
    %426 = math.exp %425 : vector<5x128xf32>
    %cst_167 = arith.constant dense<0.000000e+00> : vector<5xf32>
    %427 = vector.multi_reduction <add>, %426, %cst_167 [1] : vector<5x128xf32> to vector<5xf32>
    %428 = vector.shape_cast %427 : vector<5xf32> to vector<5x1xf32>
    %429 = math.log %428 : vector<5x1xf32>
    %430 = arith.addf %423, %429 : vector<5x1xf32>
    %431 = vector.broadcast %430 : vector<5x1xf32> to vector<5x128xf32>
    %432 = arith.subf %421, %431 : vector<5x128xf32>
    %c0_168 = arith.constant 0 : index
    %c0_169 = arith.constant 0 : index
    %c0_170 = arith.constant 0 : index
    %433 = vector.load %arg44[%c0_168, %c0_169, %c0_170] : memref<1x5x128xf32, #tpu.memory_space<vmem>>, vector<1x5x128xf32>
    %434 = vector.shape_cast %433 : vector<1x5x128xf32> to vector<5x128xf32>
    %435 = vector.shape_cast %432 : vector<5x128xf32> to vector<1x5x128xf32>
    tpu.vector_store %arg44[%c0_168, %c0_169, %c0_170], %435 {strides = array<i32>} : memref<1x5x128xf32, #tpu.memory_space<vmem>>, vector<1x5x128xf32>,
    return
  }
  func.func @transform_0(%arg0: i32, %arg1: memref<2xi32, #tpu.memory_space<smem>>, %arg2: memref<10xi32, #tpu.memory_space<smem>>, %arg3: memref<2xi32, #tpu.memory_space<smem>>) -> (i32, i32, i32) {
    %c0_i32 = arith.constant 0 : i32
    %c0_i32_0 = arith.constant 0 : i32
    %c0_i32_1 = arith.constant 0 : i32
    return %arg0, %c0_i32, %c0_i32_0 : i32, i32, i32
  }
  func.func @transform_1(%arg0: i32, %arg1: memref<2xi32, #tpu.memory_space<smem>>, %arg2: memref<10xi32, #tpu.memory_space<smem>>, %arg3: memref<2xi32, #tpu.memory_space<smem>>) -> (i32, i32, i32) {
    %c0_i32 = arith.constant 0 : i32
    %c0_i32_0 = arith.constant 0 : i32
    %c0_i32_1 = arith.constant 0 : i32
    return %arg0, %c0_i32, %c0_i32_0 : i32, i32, i32
  }
  func.func @transform_2(%arg0: i32, %arg1: memref<2xi32, #tpu.memory_space<smem>>, %arg2: memref<10xi32, #tpu.memory_space<smem>>, %arg3: memref<2xi32, #tpu.memory_space<smem>>) -> (i32, i32) {
    %c0_i32 = arith.constant 0 : i32
    %c0_i32_0 = arith.constant 0 : i32
    %c0_i32_1 = arith.constant 0 : i32
    return %c0_i32, %c0_i32_0 : i32, i32
  }
  func.func @transform_3(%arg0: i32, %arg1: memref<2xi32, #tpu.memory_space<smem>>, %arg2: memref<10xi32, #tpu.memory_space<smem>>, %arg3: memref<2xi32, #tpu.memory_space<smem>>) -> (i32, i32) {
    %c0_i32 = arith.constant 0 : i32
    %c0_i32_0 = arith.constant 0 : i32
    %c0_i32_1 = arith.constant 0 : i32
    return %c0_i32, %c0_i32_0 : i32, i32
  }
  func.func @transform_4(%arg0: i32, %arg1: memref<2xi32, #tpu.memory_space<smem>>, %arg2: memref<10xi32, #tpu.memory_space<smem>>, %arg3: memref<2xi32, #tpu.memory_space<smem>>) -> (i32, i32) {
    %c0_i32 = arith.constant 0 : i32
    %c0_i32_0 = arith.constant 0 : i32
    %c0_i32_1 = arith.constant 0 : i32
    return %c0_i32, %c0_i32_0 : i32, i32
  }
  func.func @transform_5(%arg0: i32, %arg1: memref<2xi32, #tpu.memory_space<smem>>, %arg2: memref<10xi32, #tpu.memory_space<smem>>, %arg3: memref<2xi32, #tpu.memory_space<smem>>) -> (i32, i32) {
    %c0_i32 = arith.constant 0 : i32
    %c0_i32_0 = arith.constant 0 : i32
    %c0_i32_1 = arith.constant 0 : i32
    return %c0_i32, %c0_i32_0 : i32, i32
  }
  func.func @transform_6(%arg0: i32, %arg1: memref<2xi32, #tpu.memory_space<smem>>, %arg2: memref<10xi32, #tpu.memory_space<smem>>, %arg3: memref<2xi32, #tpu.memory_space<smem>>) -> (i32, i32) {
    %c0_i32 = arith.constant 0 : i32
    %c0_i32_0 = arith.constant 0 : i32
    %c0_i32_1 = arith.constant 0 : i32
    return %c0_i32, %c0_i32_0 : i32, i32
  }
  func.func @transform_7(%arg0: i32, %arg1: memref<2xi32, #tpu.memory_space<smem>>, %arg2: memref<10xi32, #tpu.memory_space<smem>>, %arg3: memref<2xi32, #tpu.memory_space<smem>>) -> (i32, i32) {
    %c0_i32 = arith.constant 0 : i32
    %c0_i32_0 = arith.constant 0 : i32
    %c0_i32_1 = arith.constant 0 : i32
    return %c0_i32, %c0_i32_0 : i32, i32
  }
  func.func @transform_8(%arg0: i32, %arg1: memref<2xi32, #tpu.memory_space<smem>>, %arg2: memref<10xi32, #tpu.memory_space<smem>>, %arg3: memref<2xi32, #tpu.memory_space<smem>>) -> (i32, i32) {
    %c0_i32 = arith.constant 0 : i32
    %c0_i32_0 = arith.constant 0 : i32
    %c0_i32_1 = arith.constant 0 : i32
    return %c0_i32, %c0_i32_0 : i32, i32
  }
  func.func @transform_9(%arg0: i32, %arg1: memref<2xi32, #tpu.memory_space<smem>>, %arg2: memref<10xi32, #tpu.memory_space<smem>>, %arg3: memref<2xi32, #tpu.memory_space<smem>>) -> (i32, i32) {
    %c0_i32 = arith.constant 0 : i32
    %c0_i32_0 = arith.constant 0 : i32
    %c0_i32_1 = arith.constant 0 : i32
    return %c0_i32, %c0_i32_0 : i32, i32
  }
  func.func @transform_10(%arg0: i32, %arg1: memref<2xi32, #tpu.memory_space<smem>>, %arg2: memref<10xi32, #tpu.memory_space<smem>>, %arg3: memref<2xi32, #tpu.memory_space<smem>>) -> (i32, i32) {
    %c0_i32 = arith.constant 0 : i32
    %c0_i32_0 = arith.constant 0 : i32
    %c0_i32_1 = arith.constant 0 : i32
    return %c0_i32, %c0_i32_0 : i32, i32
  }
  func.func @transform_11(%arg0: i32, %arg1: memref<2xi32, #tpu.memory_space<smem>>, %arg2: memref<10xi32, #tpu.memory_space<smem>>, %arg3: memref<2xi32, #tpu.memory_space<smem>>) -> (i32, i32) {
    %c0_i32 = arith.constant 0 : i32
    %c0_i32_0 = arith.constant 0 : i32
    %c0_i32_1 = arith.constant 0 : i32
    return %c0_i32, %c0_i32_0 : i32, i32
  }
  func.func @transform_12(%arg0: i32, %arg1: memref<2xi32, #tpu.memory_space<smem>>, %arg2: memref<10xi32, #tpu.memory_space<smem>>, %arg3: memref<2xi32, #tpu.memory_space<smem>>) -> (i32, i32) {
    %c0_i32 = arith.constant 0 : i32
    %c0_i32_0 = arith.constant 0 : i32
    %c0_i32_1 = arith.constant 0 : i32
    return %c0_i32, %c0_i32_0 : i32, i32
  }
  func.func @transform_13(%arg0: i32, %arg1: memref<2xi32, #tpu.memory_space<smem>>, %arg2: memref<10xi32, #tpu.memory_space<smem>>, %arg3: memref<2xi32, #tpu.memory_space<smem>>) -> (i32, i32) {
    %c0_i32 = arith.constant 0 : i32
    %c0_i32_0 = arith.constant 0 : i32
    %c0_i32_1 = arith.constant 0 : i32
    return %c0_i32, %c0_i32_0 : i32, i32
  }
  func.func @transform_14(%arg0: i32, %arg1: memref<2xi32, #tpu.memory_space<smem>>, %arg2: memref<10xi32, #tpu.memory_space<smem>>, %arg3: memref<2xi32, #tpu.memory_space<smem>>) -> (i32, i32) {
    %c0_i32 = arith.constant 0 : i32
    %c0_i32_0 = arith.constant 0 : i32
    %c0_i32_1 = arith.constant 0 : i32
    return %c0_i32, %c0_i32_0 : i32, i32
  }
  func.func @transform_15(%arg0: i32, %arg1: memref<2xi32, #tpu.memory_space<smem>>, %arg2: memref<10xi32, #tpu.memory_space<smem>>, %arg3: memref<2xi32, #tpu.memory_space<smem>>) -> (i32, i32) {
    %c0_i32 = arith.constant 0 : i32
    %c0_i32_0 = arith.constant 0 : i32
    %c0_i32_1 = arith.constant 0 : i32
    return %c0_i32, %c0_i32_0 : i32, i32
  }
  func.func @transform_16(%arg0: i32, %arg1: memref<2xi32, #tpu.memory_space<smem>>, %arg2: memref<10xi32, #tpu.memory_space<smem>>, %arg3: memref<2xi32, #tpu.memory_space<smem>>) -> (i32, i32) {
    %c0_i32 = arith.constant 0 : i32
    %c0_i32_0 = arith.constant 0 : i32
    %c0_i32_1 = arith.constant 0 : i32
    return %c0_i32, %c0_i32_0 : i32, i32
  }
  func.func @transform_17(%arg0: i32, %arg1: memref<2xi32, #tpu.memory_space<smem>>, %arg2: memref<10xi32, #tpu.memory_space<smem>>, %arg3: memref<2xi32, #tpu.memory_space<smem>>) -> (i32, i32) {
    %c0_i32 = arith.constant 0 : i32
    %c0_i32_0 = arith.constant 0 : i32
    %c0_i32_1 = arith.constant 0 : i32
    return %c0_i32, %c0_i32_0 : i32, i32
  }
  func.func @transform_18(%arg0: i32, %arg1: memref<2xi32, #tpu.memory_space<smem>>, %arg2: memref<10xi32, #tpu.memory_space<smem>>, %arg3: memref<2xi32, #tpu.memory_space<smem>>) -> (i32, i32) {
    %c0_i32 = arith.constant 0 : i32
    %c0_i32_0 = arith.constant 0 : i32
    %c0_i32_1 = arith.constant 0 : i32
    return %c0_i32, %c0_i32_0 : i32, i32
  }
  func.func @transform_19(%arg0: i32, %arg1: memref<2xi32, #tpu.memory_space<smem>>, %arg2: memref<10xi32, #tpu.memory_space<smem>>, %arg3: memref<2xi32, #tpu.memory_space<smem>>) -> (i32, i32) {
    %c0_i32 = arith.constant 0 : i32
    %c0_i32_0 = arith.constant 0 : i32
    %c0_i32_1 = arith.constant 0 : i32
    return %c0_i32, %c0_i32_0 : i32, i32
  }
  func.func @transform_20(%arg0: i32, %arg1: memref<2xi32, #tpu.memory_space<smem>>, %arg2: memref<10xi32, #tpu.memory_space<smem>>, %arg3: memref<2xi32, #tpu.memory_space<smem>>) -> (i32, i32) {
    %c0_i32 = arith.constant 0 : i32
    %c0_i32_0 = arith.constant 0 : i32
    %c0_i32_1 = arith.constant 0 : i32
    return %c0_i32, %c0_i32_0 : i32, i32
  }
  func.func @transform_21(%arg0: i32, %arg1: memref<2xi32, #tpu.memory_space<smem>>, %arg2: memref<10xi32, #tpu.memory_space<smem>>, %arg3: memref<2xi32, #tpu.memory_space<smem>>) -> (i32, i32) {
    %c0_i32 = arith.constant 0 : i32
    %c0_i32_0 = arith.constant 0 : i32
    %c0_i32_1 = arith.constant 0 : i32
    return %c0_i32, %c0_i32_0 : i32, i32
  }
  func.func @transform_22(%arg0: i32, %arg1: memref<2xi32, #tpu.memory_space<smem>>, %arg2: memref<10xi32, #tpu.memory_space<smem>>, %arg3: memref<2xi32, #tpu.memory_space<smem>>) -> (i32, i32) {
    %c0_i32 = arith.constant 0 : i32
    %c0_i32_0 = arith.constant 0 : i32
    %c0_i32_1 = arith.constant 0 : i32
    return %c0_i32, %c0_i32_0 : i32, i32
  }
  func.func @transform_23(%arg0: i32, %arg1: memref<2xi32, #tpu.memory_space<smem>>, %arg2: memref<10xi32, #tpu.memory_space<smem>>, %arg3: memref<2xi32, #tpu.memory_space<smem>>) -> (i32, i32) {
    %c0_i32 = arith.constant 0 : i32
    %c0_i32_0 = arith.constant 0 : i32
    %c0_i32_1 = arith.constant 0 : i32
    return %c0_i32, %c0_i32_0 : i32, i32
  }
  func.func @transform_24(%arg0: i32, %arg1: memref<2xi32, #tpu.memory_space<smem>>, %arg2: memref<10xi32, #tpu.memory_space<smem>>, %arg3: memref<2xi32, #tpu.memory_space<smem>>) -> (i32, i32) {
    %c0_i32 = arith.constant 0 : i32
    %c0_i32_0 = arith.constant 0 : i32
    %c0_i32_1 = arith.constant 0 : i32
    return %c0_i32, %c0_i32_0 : i32, i32
  }
  func.func @transform_25(%arg0: i32, %arg1: memref<2xi32, #tpu.memory_space<smem>>, %arg2: memref<10xi32, #tpu.memory_space<smem>>, %arg3: memref<2xi32, #tpu.memory_space<smem>>) -> (i32, i32) {
    %c0_i32 = arith.constant 0 : i32
    %c0_i32_0 = arith.constant 0 : i32
    %c0_i32_1 = arith.constant 0 : i32
    return %c0_i32, %c0_i32_0 : i32, i32
  }
  func.func @transform_26(%arg0: i32, %arg1: memref<2xi32, #tpu.memory_space<smem>>, %arg2: memref<10xi32, #tpu.memory_space<smem>>, %arg3: memref<2xi32, #tpu.memory_space<smem>>) -> (i32, i32) {
    %c0_i32 = arith.constant 0 : i32
    %c0_i32_0 = arith.constant 0 : i32
    %c0_i32_1 = arith.constant 0 : i32
    return %c0_i32, %c0_i32_0 : i32, i32
  }
  func.func @transform_27(%arg0: i32, %arg1: memref<2xi32, #tpu.memory_space<smem>>, %arg2: memref<10xi32, #tpu.memory_space<smem>>, %arg3: memref<2xi32, #tpu.memory_space<smem>>) -> (i32, i32) {
    %c0_i32 = arith.constant 0 : i32
    %c0_i32_0 = arith.constant 0 : i32
    %c0_i32_1 = arith.constant 0 : i32
    return %c0_i32, %c0_i32_0 : i32, i32
  }
  func.func @transform_28(%arg0: i32, %arg1: memref<2xi32, #tpu.memory_space<smem>>, %arg2: memref<10xi32, #tpu.memory_space<smem>>, %arg3: memref<2xi32, #tpu.memory_space<smem>>) -> (i32, i32) {
    %c0_i32 = arith.constant 0 : i32
    %c0_i32_0 = arith.constant 0 : i32
    %c0_i32_1 = arith.constant 0 : i32
    return %c0_i32, %c0_i32_0 : i32, i32
  }
  func.func @transform_29(%arg0: i32, %arg1: memref<2xi32, #tpu.memory_space<smem>>, %arg2: memref<10xi32, #tpu.memory_space<smem>>, %arg3: memref<2xi32, #tpu.memory_space<smem>>) -> (i32, i32) {
    %c0_i32 = arith.constant 0 : i32
    %c0_i32_0 = arith.constant 0 : i32
    %c0_i32_1 = arith.constant 0 : i32
    return %c0_i32, %c0_i32_0 : i32, i32
  }
  func.func @transform_30(%arg0: i32, %arg1: memref<2xi32, #tpu.memory_space<smem>>, %arg2: memref<10xi32, #tpu.memory_space<smem>>, %arg3: memref<2xi32, #tpu.memory_space<smem>>) -> (i32, i32) {
    %c0_i32 = arith.constant 0 : i32
    %c0_i32_0 = arith.constant 0 : i32
    %c0_i32_1 = arith.constant 0 : i32
    return %c0_i32, %c0_i32_0 : i32, i32
  }
  func.func @transform_31(%arg0: i32, %arg1: memref<2xi32, #tpu.memory_space<smem>>, %arg2: memref<10xi32, #tpu.memory_space<smem>>, %arg3: memref<2xi32, #tpu.memory_space<smem>>) -> (i32, i32) {
    %c0_i32 = arith.constant 0 : i32
    %c0_i32_0 = arith.constant 0 : i32
    %c0_i32_1 = arith.constant 0 : i32
    return %c0_i32, %c0_i32_0 : i32, i32
  }
  func.func @transform_32(%arg0: i32, %arg1: memref<2xi32, #tpu.memory_space<smem>>, %arg2: memref<10xi32, #tpu.memory_space<smem>>, %arg3: memref<2xi32, #tpu.memory_space<smem>>) -> (i32, i32) {
    %c0_i32 = arith.constant 0 : i32
    %c0_i32_0 = arith.constant 0 : i32
    %c0_i32_1 = arith.constant 0 : i32
    return %c0_i32, %c0_i32_0 : i32, i32
  }
  func.func @transform_33(%arg0: i32, %arg1: memref<2xi32, #tpu.memory_space<smem>>, %arg2: memref<10xi32, #tpu.memory_space<smem>>, %arg3: memref<2xi32, #tpu.memory_space<smem>>) -> (i32, i32) {
    %c0_i32 = arith.constant 0 : i32
    %c0_i32_0 = arith.constant 0 : i32
    %c0_i32_1 = arith.constant 0 : i32
    return %c0_i32, %c0_i32_0 : i32, i32
  }
  func.func @transform_34(%arg0: i32, %arg1: memref<2xi32, #tpu.memory_space<smem>>, %arg2: memref<10xi32, #tpu.memory_space<smem>>, %arg3: memref<2xi32, #tpu.memory_space<smem>>) -> (i32, i32) {
    %c0_i32 = arith.constant 0 : i32
    %c0_i32_0 = arith.constant 0 : i32
    %c0_i32_1 = arith.constant 0 : i32
    return %c0_i32, %c0_i32_0 : i32, i32
  }
  func.func @transform_35(%arg0: i32, %arg1: memref<2xi32, #tpu.memory_space<smem>>, %arg2: memref<10xi32, #tpu.memory_space<smem>>, %arg3: memref<2xi32, #tpu.memory_space<smem>>) -> (i32, i32) {
    %c0_i32 = arith.constant 0 : i32
    %c0_i32_0 = arith.constant 0 : i32
    %c0_i32_1 = arith.constant 0 : i32
    return %c0_i32, %c0_i32_0 : i32, i32
  }
  func.func @transform_36(%arg0: i32, %arg1: memref<2xi32, #tpu.memory_space<smem>>, %arg2: memref<10xi32, #tpu.memory_space<smem>>, %arg3: memref<2xi32, #tpu.memory_space<smem>>) -> (i32, i32) {
    %c0_i32 = arith.constant 0 : i32
    %c0_i32_0 = arith.constant 0 : i32
    %c0_i32_1 = arith.constant 0 : i32
    return %c0_i32, %c0_i32_0 : i32, i32
  }
  func.func @transform_37(%arg0: i32, %arg1: memref<2xi32, #tpu.memory_space<smem>>, %arg2: memref<10xi32, #tpu.memory_space<smem>>, %arg3: memref<2xi32, #tpu.memory_space<smem>>) -> (i32, i32) {
    %c0_i32 = arith.constant 0 : i32
    %c0_i32_0 = arith.constant 0 : i32
    %c0_i32_1 = arith.constant 0 : i32
    return %c0_i32, %c0_i32_0 : i32, i32
  }
  func.func @transform_38(%arg0: i32, %arg1: memref<2xi32, #tpu.memory_space<smem>>, %arg2: memref<10xi32, #tpu.memory_space<smem>>, %arg3: memref<2xi32, #tpu.memory_space<smem>>) -> (i32, i32) {
    %c0_i32 = arith.constant 0 : i32
    %c0_i32_0 = arith.constant 0 : i32
    %c0_i32_1 = arith.constant 0 : i32
    return %c0_i32, %c0_i32_0 : i32, i32
  }
  func.func @transform_39(%arg0: i32, %arg1: memref<2xi32, #tpu.memory_space<smem>>, %arg2: memref<10xi32, #tpu.memory_space<smem>>, %arg3: memref<2xi32, #tpu.memory_space<smem>>) -> (i32, i32) {
    %c0_i32 = arith.constant 0 : i32
    %c0_i32_0 = arith.constant 0 : i32
    %c0_i32_1 = arith.constant 0 : i32
    return %c0_i32, %c0_i32_0 : i32, i32
  }
  func.func @transform_40(%arg0: i32, %arg1: memref<2xi32, #tpu.memory_space<smem>>, %arg2: memref<10xi32, #tpu.memory_space<smem>>, %arg3: memref<2xi32, #tpu.memory_space<smem>>) -> (i32, i32, i32) {
    %c0_i32 = arith.constant 0 : i32
    %c0_i32_0 = arith.constant 0 : i32
    %c0_i32_1 = arith.constant 0 : i32
    return %arg0, %c0_i32, %c0_i32_0 : i32, i32, i32
  }
}

</mosaic_0001>

<bundles_post_ra>
// kernel: forward.1
= control target key start
LH: loop header
LB: loop body
LE: loop exit
PB: predicated region body
PF: predicated region fallthrough
CT: control target
= control target key end

     0   :  { %s5934_s6 = smov 3   ;;  %s5935_s10 = smov 4   ;;  %s7079_s0 = inlined_call_operand.smem [shape: u32[44], index: -1, kind: input, shape index: {}] }
   0x1   :  { %s6034_s5 = sld [smem:[%s7079_s0]]   ;;  %s5936_s14 = smov 5  }
   0x2   :  { %s6039_s9 = sld [smem:[%s7079_s0 + %s5934_s6]]   ;;  %s5937_s18 = smov 6  }
   0x3   :  { %s6044_s13 = sld [smem:[%s7079_s0 + %s5935_s10]]   ;;  %s5938_s22 = smov 7  }
   0x4   :  { %s6049_s17 = sld [smem:[%s7079_s0 + %s5936_s14]]   ;;  %s5939_s26 = smov 8  }
   0x5   :  { %s6054_s21 = sld [smem:[%s7079_s0 + %s5937_s18]]   ;;  %s5940_s30 = smov 9  }
   0x6   :  { %s6059_s25 = sld [smem:[%s7079_s0 + %s5938_s22]]   ;;  %s5941_s4 = smov 10  }
   0x7   :  { %s6064_s29 = sld [smem:[%s7079_s0 + %s5939_s26]]   ;;  %s5942_s10 = smov 11  }
   0x8   :  { %7134 = sst [smem:[#allocation82_spill]] %s6039_s9  ;;  %s5943_s15 = smov 12  }
   0x9   :  { %7135 = sst [smem:[#allocation83_spill]] %s6044_s13  ;;  %s5944_s20 = smov 13  }
   0xa   :  { %7136 = sst [smem:[#allocation84_spill]] %s6049_s17  ;;  %s5945_s26 = smov 14  }
   0xb   :  { %s6069_s3 = sld [smem:[%s7079_s0 + %s5940_s30]]   ;;  %s5946_s1 = smov 15  }
   0xc   :  { %7137 = sst [smem:[#allocation85_spill]] %s6059_s25  ;;  %s5947_s7 = smov 16  }
   0xd   :  { %7138 = sst [smem:[#allocation86_spill]] %s6064_s29  ;;  %s5949_s22 = smov 18  }
   0xe   :  { %s6074_s8 = sld [smem:[%s7079_s0 + %s5941_s4]]   ;;  %s5950_s28 = smov 19  }
   0xf   :  { %s6079_s14 = sld [smem:[%s7079_s0 + %s5942_s10]]   ;;  %s5974_s2 = smov 43  }
  0x10   :  { %s6084_s19 = sld [smem:[%s7079_s0 + %s5943_s15]]   ;;  %s5948_s15 = smov 17  }
  0x11   :  { %7139 = sst [smem:[#allocation87_spill]] %s6069_s3 }
  0x12   :  { %s6089_s24 = sld [smem:[%s7079_s0 + %s5944_s20]]  }
  0x13   :  { %s6094_s30 = sld [smem:[%s7079_s0 + %s5945_s26]]   ;;  %s5973_s26 = smov 42  }
  0x14   :  { %7140 = sst [smem:[#allocation88_spill]] %s6074_s8 }
  0x15   :  { %s6099_s6 = sld [smem:[%s7079_s0 + %s5946_s1]]  }
  0x16   :  { %7141 = sst [smem:[#allocation89_spill]] %s6084_s19 }
  0x17   :  { %s6104_s12 = sld [smem:[%s7079_s0 + %s5947_s7]]   ;;  %s5951_s7 = smov 20  }
  0x18   :  { %s6109_s20 = sld [smem:[%s7079_s0 + %s5948_s15]]   ;;  %s5952_s15 = smov 21  }
  0x19   :  { %7142 = sst [smem:[#allocation90_spill]] %s6094_s30 }
  0x1a   :  { %s6114_s27 = sld [smem:[%s7079_s0 + %s5949_s22]]   ;;  %s5953_s22 = smov 22  }
  0x1b   :  { %7143 = sst [smem:[#allocation91_spill]] %s6099_s6 }
  0x1c   :  { %s6119_s4 = sld [smem:[%s7079_s0 + %s5950_s28]]   ;;  %s5954_s28 = smov 23  }
  0x1d   :  { %7144 = sst [smem:[#allocation92_spill]] %s6104_s12 }
  0x1e   :  { %s6124_s25 = sld [smem:[%s7079_s0 + %s5951_s7]]   ;;  %s5955_s7 = smov 24  }
  0x1f   :  { %s6129_s13 = sld [smem:[%s7079_s0 + %s5952_s15]]   ;;  %s5956_s15 = smov 25  }
  0x20   :  { %7145 = sst [smem:[#allocation93_spill]] %s6114_s27 }
  0x21   :  { %s6134_s9 = sld [smem:[%s7079_s0 + %s5953_s22]]   ;;  %s5957_s22 = smov 26  }
  0x22   :  { %7146 = sst [smem:[#allocation94_spill]] %s6119_s4 }
  0x23   :  { %s6139_s27 = sld [smem:[%s7079_s0 + %s5954_s28]]   ;;  %s5958_s28 = smov 27  }
  0x24   :  { %7147 = sst [smem:[#allocation95_spill]] %s6124_s25 }
  0x25   :  { %s6144_s25 = sld [smem:[%s7079_s0 + %s5955_s7]]   ;;  %s5959_s7 = smov 28  }
  0x26   :  { %s6149_s12 = sld [smem:[%s7079_s0 + %s5956_s15]]   ;;  %s5960_s15 = smov 29  }
  0x27   :  { %7148 = sst [smem:[#allocation96_spill]] %s6134_s9 }
  0x28   :  { %s6154_s9 = sld [smem:[%s7079_s0 + %s5957_s22]]   ;;  %s5961_s22 = smov 30  }
  0x29   :  { %s6159_s30 = sld [smem:[%s7079_s0 + %s5958_s28]]   ;;  %s5962_s28 = smov 31  }
  0x2a   :  { %s6169_s19 = sld [smem:[%s7079_s0 + %s5960_s15]]   ;;  %s5964_s15 = smov 33  }
  0x2b   :  { %7149 = sst [smem:[#allocation97_spill]] %s6144_s25 }
  0x2c   :  { %s6164_s25 = sld [smem:[%s7079_s0 + %s5959_s7]]   ;;  %s5963_s7 = smov 32  }
  0x2d   :  { %s6179_s8 = sld [smem:[%s7079_s0 + %s5962_s28]]   ;;  %s5966_s28 = smov 35  }
  0x2e   :  { %7150 = sst [smem:[#allocation98_spill]] %s6154_s9 }
  0x2f   :  { %s6174_s9 = sld [smem:[%s7079_s0 + %s5961_s22]]   ;;  %s5965_s22 = smov 34  }
  0x30   :  { %s6189_s29 = sld [smem:[%s7079_s0 + %s5964_s15]]   ;;  %s5968_s15 = smov 37  }
  0x31   :  { %s6194_s1 = sld [smem:[%s7079_s0 + %s5965_s22]]   ;;  %s5969_s22 = smov 38  }
  0x32   :  { %7151 = sst [smem:[#allocation99_spill]] %s6164_s25 }
  0x33   :  { %7153 = sst [smem:[#allocation101_spill]] %s6179_s8 }
  0x34   :  { %s6184_s25 = sld [smem:[%s7079_s0 + %s5963_s7]]   ;;  %s5967_s7 = smov 36  }
  0x35   :  { %7152 = sst [smem:[#allocation100_spill]] %s6174_s9  ;;  %s5970_s9 = smov 39  }
  0x36   :  { %7155 = sst [smem:[#allocation103_spill]] %s6189_s29 }
  0x37   :  { %7156 = sst [smem:[#allocation104_spill]] %s6194_s1 }
  0x38   :  { %s6199_s10 = sld [smem:[%s7079_s0 + %s5966_s28]]  }
  0x39   :  { %s6204_s16 = sld [smem:[%s7079_s0 + %s5967_s7]]   ;;  %s5971_s7 = smov 40  }
  0x3a   :  { %7154 = sst [smem:[#allocation102_spill]] %s6184_s25 }
  0x3b   :  { %s6209_s23 = sld [smem:[%s7079_s0 + %s5968_s15]]   ;;  %s5972_s15 = smov 41  }
  0x3c   :  { %s6214_s29 = sld [smem:[%s7079_s0 + %s5969_s22]]   ;;  %s93_s22 = sshll.u32 %s6034_s5, 4  ;;  %s94_s22 = int_to_ptr.vmem [resolvable:$true] %s93_s22 }
  0x3d   :  { %s6219_s25 = sld [smem:[%s7079_s0 + %s5970_s9]]  }
  0x3e   :  { %7157 = sst [smem:[#allocation105_spill]] %s6199_s10 }
  0x3f   :  { %7158 = sst [smem:[#allocation106_spill]] %s6204_s16 }
  0x40   :  { %s6224_s17 = sld [smem:[%s7079_s0 + %s5971_s7]]   ;;  %s4776_s7 = sshra.s32 %s94_s22, 4  ;;  %s4777_s7 = int_to_ptr.vmem [resolvable:$true] %s4776_s7 }
  0x41   :  { %7159 = sst [smem:[#allocation107_spill]] %s6209_s23  ;;  %s4778_s11 = scalar_lea.vmem %s4777_s7, 1 }
  0x42   :  { %7160 = sst [smem:[#allocation108_spill]] %s6214_s29  ;;  %p4779_p0 = scmp.ne.s32.totalorder %s4777_s7, %s4778_s11 }
  0x43   :  { %7161 = sst [smem:[#allocation109_spill]] %s6219_s25  ;;  %s4780_s23 = scalar_lea.vmem %s6034_s5, 1 }
  0x44   :  { %s6229_s1 = sld [smem:[%s7079_s0 + %s5972_s15]]   ;;  %p4781_p1 = scmp.lt.s32.totalorder %s4777_s7, %s6034_s5 }
  0x45   :  { %s6235_s9 = sld [smem:[%s7079_s0 + %s5973_s26]]   ;;  %p4782_p2 = scmp.lt.s32.totalorder %s4780_s23, %s4778_s11 }
  0x46   :  { %7162 = sst [smem:[#allocation110_spill]] %s6224_s17 }
  0x47   :  { %s6240_s16 = sld [smem:[%s7079_s0 + %s5974_s2]]   ;;  %p4783_p3 = por %p4782_p2, %p4781_p1 }
  0x49   :  { %p4784_p4 = pnand %p4783_p3, %p4779_p0 }
  0x4a   :  { %7163 = sst [smem:[#allocation111_spill]] %s6229_s1 }
  0x4b   :  { %7164 = sst [smem:[#allocation112_spill]] %s6235_s9 }
  0x4d   :  { %7165 = sst [smem:[#allocation113_spill]] %s6240_s16 }
  0x4e   :  { %4787 = shalt.err (!%p4784_p4)  }
  0x4f   :  { %s5975_s29 = smov [#allocation3]   ;;  %s5976_s15 = smov 1  }
  0x50   :  { %96 = dma.vmem_to_smem %s94_s22, 16, %s5975_s29, [#allocation2] }
  0x51   :  { %s4189_s28 = sld [smem:[%s7079_s0 + %s5976_s15]]   ;;  %s5977_s10 = smov 2  }
  0x52   :  { %s4190_s16 = sld [smem:[%s7079_s0 + %s5977_s10]]  }
  0x57   :  { %s98_s9 = sshll.u32 %s4189_s28, 4  ;;  %s4792_s11 = scalar_lea.vmem %s4189_s28, 1  ;;  %s99_s9 = int_to_ptr.vmem [resolvable:$true] %s98_s9 }
  0x58   :  { %s103_s17 = sshll.u32 %s4190_s16, 4  ;;  %s4788_s5 = sshra.s32 %s99_s9, 4  ;;  %s4789_s5 = int_to_ptr.vmem [resolvable:$true] %s4788_s5  ;;  %s104_s17 = int_to_ptr.vmem [resolvable:$true] %s103_s17 }
  0x59   :  { %s4790_s7 = scalar_lea.vmem %s4789_s5, 1  ;;  %p4793_p6 = scmp.lt.s32.totalorder %s4789_s5, %s4189_s28 }
  0x5a   :  { %p4791_p5 = scmp.ne.s32.totalorder %s4789_s5, %s4790_s7  ;;  %p4794_p7 = scmp.lt.s32.totalorder %s4792_s11, %s4790_s7 }
  0x5c   :  { %p4795_p8 = por %p4794_p7, %p4793_p6 }
  0x5e   :  { %p4796_p9 = pnand %p4795_p8, %p4791_p5 }
  0x60   :  { %4799 = shalt.err (!%p4796_p9)  }
  0x61   :  { %s5978_s22 = smov [#allocation4]   ;;  %s4800_s23 = sshra.s32 %s104_s17, 4  ;;  %s4801_s23 = int_to_ptr.vmem [resolvable:$true] %s4800_s23 }
  0x62   :  { %101 = dma.vmem_to_smem %s99_s9, 16, %s5978_s22, [#allocation2] }
  0x63   :  { %s4802_s29 = scalar_lea.vmem %s4801_s23, 1  ;;  %s4804_s0 = scalar_lea.vmem %s4190_s16, 1 }
  0x64   :  { %p4803_p10 = scmp.ne.s32.totalorder %s4801_s23, %s4802_s29  ;;  %p4805_p11 = scmp.lt.s32.totalorder %s4801_s23, %s4190_s16 }
  0x65   :  { %p4806_p12 = scmp.lt.s32.totalorder %s4804_s0, %s4802_s29 }
  0x67   :  { %p4807_p13 = por %p4806_p12, %p4805_p11 }
  0x69   :  { %p4808_p0 = pnand %p4807_p13, %p4803_p10 }
  0x6b   :  { %4811 = shalt.err (!%p4808_p0)  }
  0x6c   :  { %s5979_s15 = smov [#allocation5]  }
  0x6d   :  { %106 = dma.vmem_to_smem %s104_s17, 16, %s5979_s15, [#allocation2] }
  0x6e   :  { %5852 = dma.done.wait [#allocation2], 48 }
  0x6f   :  { %5853 = vsyncadd [#allocation2], 4294967248 }
  0x70   :  { %109 = sfence }
  0x71   :  { %110 = vsyncpa [#allocation7], 0 }
  0x72   :  { %111 = vsyncpa [#allocation9], 0 }
  0x73   :  { %112 = vsyncpa [#allocation12], 0 }
  0x74   :  { %113 = vsyncpa [#allocation15], 0 }
  0x75   :  { %114 = vsyncpa [#allocation18], 0 }
  0x76   :  { %115 = vsyncpa [#allocation21], 0 }
  0x77   :  { %116 = vsyncpa [#allocation24], 0 }
  0x78   :  { %117 = vsyncpa [#allocation27], 0 }
  0x79   :  { %118 = vsyncpa [#allocation30], 0 }
  0x7a   :  { %119 = vsyncpa [#allocation33], 0 }
  0x7b   :  { %120 = vsyncpa [#allocation36], 0 }
  0x7c   :  { %121 = vsyncpa [#allocation39], 0 }
  0x7d   :  { %122 = vsyncpa [#allocation42], 0 }
  0x7e   :  { %123 = vsyncpa [#allocation45], 0 }
  0x7f   :  { %124 = vsyncpa [#allocation48], 0 }
  0x80   :  { %125 = vsyncpa [#allocation51], 0 }
  0x81   :  { %126 = vsyncpa [#allocation54], 0 }
  0x82   :  { %127 = vsyncpa [#allocation57], 0 }
  0x83   :  { %128 = vsyncpa [#allocation60], 0  ;;  %s6250_s17 = smov 0  }
  0x84 LB: > { %s7166_s8 = sld [smem:[#allocation101_spill]]  ;;  %s6256_s9 = sadd.s32 4294967295, %s5932_s17   ;;  %s5932_s17 = sphi %s6250_s17, %s134_s17  }
  0x85   : > { %s7167_s6 = sld [smem:[#allocation91_spill]]  ;;  %p4234_p1 = scmp.ge.s32.totalorder %s5932_s17, 1 }
  0x86   : > { %s7168_s1 = sld [smem:[#allocation111_spill]]  ;;  %p1015_p2 = scmp.lt.s32.totalorder %s5932_s17, 3 }
  0x87   : > { %s7169_s4 = sld [smem:[#allocation94_spill]] }
  0x88   : > { %s7170_s3 = sld [smem:[#allocation87_spill]]  ;;  %p6260_p3 = pnand %p4234_p1, %p1015_p2 }
  0x89   : > { %p4515_p4 = scmp.eq.s32.totalorder (!%p6260_p3), %s6256_s9, 0  ;;  %s1040_s18 = sshll.u32 (!%p6260_p3), %s6054_s21, 4  ;;  %s1041_s18 = int_to_ptr.hbm [resolvable:$true] %s1040_s18 }
  0x8a   : > { %1019 = sbr.rel (%p6260_p3) target bundleno = 628 (0x274), region = 12  ;;  %s5980_s26 = smov (!%p6260_p3), [#allocation8]  }
  0x8b   : > { %s1042_s28 = sshll.u32 (!%p6260_p3), %s5980_s26, 4  ;;  %s4812_s10 = sshra.s32 (!%p6260_p3), %s1041_s18, 4  ;;  %s1043_s28 = int_to_ptr.vmem [resolvable:$true] %s1042_s28  ;;  %s4813_s10 = int_to_ptr.hbm [resolvable:$true] %s4812_s10 }
  0x8c   : > { %s4814_s25 = scalar_lea.hbm (!%p6260_p3), %s4813_s10, 384  ;;  %s4818_s2 = scalar_lea.hbm (!%p6260_p3), %s6054_s21, 384 }
  0x8d   : > { %p4815_p5 = scmp.ne.s32.totalorder (!%p6260_p3), %s4813_s10, %s4814_s25  ;;  %p4819_p8 = scmp.lt.s32.totalorder (!%p6260_p3), %s4813_s10, %s6054_s21 }
  0x8e   : > { %p4820_p9 = scmp.lt.s32.totalorder (!%p6260_p3), %s4818_s2, %s4814_s25 }
  0x8f   : > { %p4816_p6 = pnand %p4815_p5, %p4515_p4 }
  0x90   : > { %p4821_p10 = por %p4820_p9, %p4819_p8 }
  0x91   : > { %p4817_p7 = pneg %p4816_p6 }
  0x93   : > { %p4822_p11 = pnand %p4821_p10, %p4817_p7 }
  0x95   : > { %4825 = shalt.err (!%p4822_p11)
}
  0x96   : > { %s7103_s5 = smov 384   ;;  %s7104_s7 = smov 24  }
  0x97   : > { %4370 = dma.hbm_to_vmem [thread:$0]  (%p4515_p4), %s1041_s18, 6144, %s1043_s28, [#allocation9], %s7103_s5, %s7103_s5, %s7104_s7  }
  0x98   : > { %s1072_s11 = sshll.u32 %s7170_s3, 4  ;;  %s5983_s22 = smov [#allocation11]   ;;  %s1073_s11 = int_to_ptr.hbm [resolvable:$true] %s1072_s11 }
  0x99   : > { %s1074_s23 = sshll.u32 %s5983_s22, 4  ;;  %s1096_s29 = sshll.u32 %s6079_s14, 4  ;;  %s1075_s23 = int_to_ptr.vmem [resolvable:$true] %s1074_s23  ;;  %s1097_s29 = int_to_ptr.hbm [resolvable:$true] %s1096_s29 }
  0x9a   : > { %s4840_s0 = sshra.s32 %s1073_s11, 4  ;;  %s4846_s26 = scalar_lea.hbm %s7170_s3, 1  ;;  %s4841_s0 = int_to_ptr.hbm [resolvable:$true] %s4840_s0 }
  0x9b   : > { %s4842_s15 = scalar_lea.hbm %s4841_s0, 1  ;;  %p4847_p1 = scmp.lt.s32.totalorder %s4841_s0, %s7170_s3 }
  0x9c   : > { %p4843_p12 = scmp.ne.s32.totalorder %s4841_s0, %s4842_s15  ;;  %p4848_p2 = scmp.lt.s32.totalorder %s4846_s26, %s4842_s15 }
  0x9e   : > { %p4844_p13 = pnand %p4843_p12, %p4515_p4  ;;  %p4849_p5 = por %p4848_p2, %p4847_p1 }
  0xa0   : > { %p4845_p0 = pneg %p4844_p13 }
  0xa2   : > { %p4850_p6 = pnand %p4849_p5, %p4845_p0 }
  0xa4   : > { %4853 = shalt.err (!%p4850_p6)
}
  0xa5   : > { %4374 = dma.hbm_to_vmem [thread:$0]  (%p4515_p4), %s1073_s11, 16, %s1075_s23, [#allocation12]  }
  0xa6   : > { %s5984_s18 = smov [#allocation14]   ;;  %s1122_s10 = sshll.u32 %s6089_s24, 4  ;;  %s6286_s10 = int_to_ptr.hbm [resolvable:$true] %s1122_s10 }
  0xa7   : > { %s1098_s28 = sshll.u32 %s5984_s18, 4  ;;  %s4868_s25 = sshra.s32 %s1097_s29, 4  ;;  %s1099_s28 = int_to_ptr.vmem [resolvable:$true] %s1098_s28  ;;  %s4869_s25 = int_to_ptr.hbm [resolvable:$true] %s4868_s25 }
  0xa8   : > { %s4870_s2 = scalar_lea.hbm %s4869_s25, 1  ;;  %s4874_s22 = scalar_lea.hbm %s6079_s14, 1 }
  0xa9   : > { %p4871_p7 = scmp.ne.s32.totalorder %s4869_s25, %s4870_s2  ;;  %p4875_p10 = scmp.lt.s32.totalorder %s4869_s25, %s6079_s14 }
  0xaa   : > { %p4876_p11 = scmp.lt.s32.totalorder %s4874_s22, %s4870_s2 }
  0xab   : > { %p4872_p8 = pnand %p4871_p7, %p4515_p4 }
  0xac   : > { %p4877_p12 = por %p4876_p11, %p4875_p10 }
  0xad   : > { %p4873_p9 = pneg %p4872_p8 }
  0xaf   : > { %p4878_p13 = pnand %p4877_p12, %p4873_p9 }
  0xb1   : > { %4881 = shalt.err (!%p4878_p13)
}
  0xb2   : > { %4378 = dma.hbm_to_vmem [thread:$0]  (%p4515_p4), %s1097_s29, 16, %s1099_s28, [#allocation15]  }
  0xb3   : > { %s1148_s11 = sshll.u32 %s7167_s6, 4  ;;  %s5985_s23 = smov [#allocation17]   ;;  %s6295_s11 = int_to_ptr.hbm [resolvable:$true] %s1148_s11 }
  0xb4   : > { %s1124_s0 = sshll.u32 %s5985_s23, 4  ;;  %s4896_s15 = sshra.s32 %s6286_s10, 4  ;;  %s1125_s0 = int_to_ptr.vmem [resolvable:$true] %s1124_s0  ;;  %s4897_s15 = int_to_ptr.hbm [resolvable:$true] %s4896_s15 }
  0xb5   : > { %s4898_s26 = scalar_lea.hbm %s4897_s15, 2  ;;  %s4902_s18 = scalar_lea.hbm %s6089_s24, 2 }
  0xb6   : > { %p4899_p0 = scmp.ne.s32.totalorder %s4897_s15, %s4898_s26  ;;  %p4903_p5 = scmp.lt.s32.totalorder %s4897_s15, %s6089_s24 }
  0xb7   : > { %p4904_p6 = scmp.lt.s32.totalorder %s4902_s18, %s4898_s26 }
  0xb8   : > { %p4900_p1 = pnand %p4899_p0, %p4515_p4 }
  0xb9   : > { %p4905_p7 = por %p4904_p6, %p4903_p5 }
  0xba   : > { %p4901_p2 = pneg %p4900_p1 }
  0xbc   : > { %p4906_p8 = pnand %p4905_p7, %p4901_p2 }
  0xbe   : > { %4909 = shalt.err (!%p4906_p8)
}
  0xbf   : > { %4382 = dma.hbm_to_vmem [thread:$0]  (%p4515_p4), %s6286_s10, 32, %s1125_s0, [#allocation18]  }
  0xc0   : > { %s5986_s29 = smov [#allocation20]   ;;  %s1172_s25 = sshll.u32 %s6109_s20, 4  ;;  %s6306_s25 = int_to_ptr.hbm [resolvable:$true] %s1172_s25 }
  0xc1   : > { %s1150_s28 = sshll.u32 %s5986_s29, 4  ;;  %s4924_s2 = sshra.s32 %s6295_s11, 4  ;;  %s1151_s28 = int_to_ptr.vmem [resolvable:$true] %s1150_s28  ;;  %s4925_s2 = int_to_ptr.hbm [resolvable:$true] %s4924_s2 }
  0xc2   : > { %s4926_s22 = scalar_lea.hbm %s4925_s2, 1  ;;  %s4930_s23 = scalar_lea.hbm %s7167_s6, 1 }
  0xc3   : > { %p4927_p9 = scmp.ne.s32.totalorder %s4925_s2, %s4926_s22  ;;  %p4931_p12 = scmp.lt.s32.totalorder %s4925_s2, %s7167_s6 }
  0xc4   : > { %p4932_p13 = scmp.lt.s32.totalorder %s4930_s23, %s4926_s22 }
  0xc5   : > { %p4928_p10 = pnand %p4927_p9, %p4515_p4 }
  0xc6   : > { %p4933_p0 = por %p4932_p13, %p4931_p12 }
  0xc7   : > { %p4929_p11 = pneg %p4928_p10 }
  0xc9   : > { %p4934_p1 = pnand %p4933_p0, %p4929_p11 }
  0xcb   : > { %4937 = shalt.err (!%p4934_p1)
}
  0xcc   : > { %4386 = dma.hbm_to_vmem [thread:$0]  (%p4515_p4), %s6295_s11, 16, %s1151_s28, [#allocation21]  }
  0xcd   : > { %s5987_s10 = smov [#allocation23]   ;;  %s1197_s15 = sshll.u32 %s7169_s4, 4  ;;  %s1198_s15 = int_to_ptr.hbm [resolvable:$true] %s1197_s15 }
  0xce   : > { %s1174_s0 = sshll.u32 %s5987_s10, 4  ;;  %s4952_s26 = sshra.s32 %s6306_s25, 4  ;;  %s1175_s0 = int_to_ptr.vmem [resolvable:$true] %s1174_s0  ;;  %s4953_s26 = int_to_ptr.hbm [resolvable:$true] %s4952_s26 }
  0xcf   : > { %s4954_s18 = scalar_lea.hbm %s4953_s26, 1  ;;  %s4958_s29 = scalar_lea.hbm %s6109_s20, 1 }
  0xd0   : > { %p4955_p2 = scmp.ne.s32.totalorder %s4953_s26, %s4954_s18  ;;  %p4959_p7 = scmp.lt.s32.totalorder %s4953_s26, %s6109_s20 }
  0xd1   : > { %p4960_p8 = scmp.lt.s32.totalorder %s4958_s29, %s4954_s18 }
  0xd2   : > { %p4956_p5 = pnand %p4955_p2, %p4515_p4 }
  0xd3   : > { %p4961_p9 = por %p4960_p8, %p4959_p7 }
  0xd4   : > { %p4957_p6 = pneg %p4956_p5 }
  0xd6   : > { %p4962_p10 = pnand %p4961_p9, %p4957_p6 }
  0xd8   : > { %4965 = shalt.err (!%p4962_p10)
}
  0xd9   : > { %4390 = dma.hbm_to_vmem [thread:$0]  (%p4515_p4), %s6306_s25, 16, %s1175_s0, [#allocation24]  }
  0xda   : > { %s5988_s11 = smov [#allocation26]   ;;  %s1226_s2 = sshll.u32 %s6129_s13, 4  ;;  %s6326_s2 = int_to_ptr.hbm [resolvable:$true] %s1226_s2 }
  0xdb   : > { %s1199_s28 = sshll.u32 %s5988_s11, 4  ;;  %s4980_s22 = sshra.s32 %s1198_s15, 4  ;;  %s1200_s28 = int_to_ptr.vmem [resolvable:$true] %s1199_s28  ;;  %s4981_s22 = int_to_ptr.hbm [resolvable:$true] %s4980_s22 }
  0xdc   : > { %s4982_s23 = scalar_lea.hbm %s4981_s22, 128  ;;  %s4986_s10 = scalar_lea.hbm %s7169_s4, 128 }
  0xdd   : > { %p4983_p11 = scmp.ne.s32.totalorder %s4981_s22, %s4982_s23  ;;  %p4987_p0 = scmp.lt.s32.totalorder %s4981_s22, %s7169_s4 }
  0xde   : > { %p4988_p1 = scmp.lt.s32.totalorder %s4986_s10, %s4982_s23 }
  0xdf   : > { %p4984_p12 = pnand %p4983_p11, %p4515_p4 }
  0xe0   : > { %p4989_p2 = por %p4988_p1, %p4987_p0 }
  0xe1   : > { %p4985_p13 = pneg %p4984_p12 }
  0xe3   : > { %p4990_p5 = pnand %p4989_p2, %p4985_p13 }
  0xe5   : > { %4993 = shalt.err (!%p4990_p5)
}
  0xe6   : > { %s7105_s25 = smov 128   ;;  %s7107_s0 = smov 8  }
  0xe7   : > { %4394 = dma.hbm_to_vmem [thread:$0]  (%p4515_p4), %s1198_s15, 2048, %s1200_s28, [#allocation27], %s7105_s25, %s7105_s25, %s7107_s0  }
  0xe8   : > { %s1252_s26 = sshll.u32 %s6139_s27, 4  ;;  %s5991_s18 = smov [#allocation29]   ;;  %s6338_s26 = int_to_ptr.hbm [resolvable:$true] %s1252_s26 }
  0xe9   : > { %s1228_s29 = sshll.u32 %s5991_s18, 4  ;;  %s5008_s11 = sshra.s32 %s6326_s2, 4  ;;  %s1229_s29 = int_to_ptr.vmem [resolvable:$true] %s1228_s29  ;;  %s5009_s11 = int_to_ptr.hbm [resolvable:$true] %s5008_s11 }
  0xea   : > { %s5010_s22 = scalar_lea.hbm %s5009_s11, 3  ;;  %s5014_s23 = scalar_lea.hbm %s6129_s13, 3 }
  0xeb   : > { %p5011_p6 = scmp.ne.s32.totalorder %s5009_s11, %s5010_s22  ;;  %p5015_p9 = scmp.lt.s32.totalorder %s5009_s11, %s6129_s13 }
  0xec   : > { %p5016_p10 = scmp.lt.s32.totalorder %s5014_s23, %s5010_s22 }
  0xed   : > { %p5012_p7 = pnand %p5011_p6, %p4515_p4 }
  0xee   : > { %p5017_p11 = por %p5016_p10, %p5015_p9 }
  0xef   : > { %p5013_p8 = pneg %p5012_p7 }
  0xf1   : > { %p5018_p12 = pnand %p5017_p11, %p5013_p8 }
  0xf3   : > { %5021 = shalt.err (!%p5018_p12)
}
  0xf4   : > { %4398 = dma.hbm_to_vmem [thread:$0]  (%p4515_p4), %s6326_s2, 48, %s1229_s29, [#allocation30]  }
  0xf5   : > { %s5992_s15 = smov [#allocation32]   ;;  %s1276_s10 = sshll.u32 %s6149_s12, 4  ;;  %s6349_s10 = int_to_ptr.hbm [resolvable:$true] %s1276_s10 }
  0xf6   : > { %s1254_s28 = sshll.u32 %s5992_s15, 4  ;;  %s5036_s18 = sshra.s32 %s6338_s26, 4  ;;  %s1255_s28 = int_to_ptr.vmem [resolvable:$true] %s1254_s28  ;;  %s5037_s18 = int_to_ptr.hbm [resolvable:$true] %s5036_s18 }
  0xf7   : > { %s5038_s11 = scalar_lea.hbm %s5037_s18, 1  ;;  %s5042_s22 = scalar_lea.hbm %s6139_s27, 1 }
  0xf8   : > { %p5039_p13 = scmp.ne.s32.totalorder %s5037_s18, %s5038_s11  ;;  %p5043_p2 = scmp.lt.s32.totalorder %s5037_s18, %s6139_s27 }
  0xf9   : > { %p5044_p5 = scmp.lt.s32.totalorder %s5042_s22, %s5038_s11 }
  0xfa   : > { %p5040_p0 = pnand %p5039_p13, %p4515_p4 }
  0xfb   : > { %p5045_p6 = por %p5044_p5, %p5043_p2 }
  0xfc   : > { %p5041_p1 = pneg %p5040_p0 }
  0xfe   : > { %p5046_p7 = pnand %p5045_p6, %p5041_p1 }
 0x100   : > { %5049 = shalt.err (!%p5046_p7)
}
 0x101   : > { %4402 = dma.hbm_to_vmem [thread:$0]  (%p4515_p4), %s6338_s26, 16, %s1255_s28, [#allocation33]  }
 0x102   : > { %s1302_s2 = sshll.u32 %s6159_s30, 4  ;;  %s5993_s29 = smov [#allocation35]   ;;  %s6360_s2 = int_to_ptr.hbm [resolvable:$true] %s1302_s2 }
 0x103   : > { %s1278_s23 = sshll.u32 %s5993_s29, 4  ;;  %s5064_s15 = sshra.s32 %s6349_s10, 4  ;;  %s1279_s23 = int_to_ptr.vmem [resolvable:$true] %s1278_s23  ;;  %s5065_s15 = int_to_ptr.hbm [resolvable:$true] %s5064_s15 }
 0x104   : > { %s5066_s18 = scalar_lea.hbm %s5065_s15, 1  ;;  %s5070_s11 = scalar_lea.hbm %s6149_s12, 1 }
 0x105   : > { %p5067_p8 = scmp.ne.s32.totalorder %s5065_s15, %s5066_s18  ;;  %p5071_p11 = scmp.lt.s32.totalorder %s5065_s15, %s6149_s12 }
 0x106   : > { %p5072_p12 = scmp.lt.s32.totalorder %s5070_s11, %s5066_s18 }
 0x107   : > { %p5068_p9 = pnand %p5067_p8, %p4515_p4 }
 0x108   : > { %p5073_p13 = por %p5072_p12, %p5071_p11 }
 0x109   : > { %p5069_p10 = pneg %p5068_p9 }
 0x10b   : > { %p5074_p0 = pnand %p5073_p13, %p5069_p10 }
 0x10d   : > { %5077 = shalt.err (!%p5074_p0)
}
 0x10e   : > { %4406 = dma.hbm_to_vmem [thread:$0]  (%p4515_p4), %s6349_s10, 16, %s1279_s23, [#allocation36]  }
 0x10f   : > { %s5994_s26 = smov [#allocation38]   ;;  %s1328_s22 = sshll.u32 %s6169_s19, 4  ;;  %s6371_s22 = int_to_ptr.hbm [resolvable:$true] %s1328_s22 }
 0x110   : > { %s1304_s28 = sshll.u32 %s5994_s26, 4  ;;  %s5092_s29 = sshra.s32 %s6360_s2, 4  ;;  %s1305_s28 = int_to_ptr.vmem [resolvable:$true] %s1304_s28  ;;  %s5093_s29 = int_to_ptr.hbm [resolvable:$true] %s5092_s29 }
 0x111   : > { %s5094_s15 = scalar_lea.hbm %s5093_s29, 1  ;;  %s5098_s18 = scalar_lea.hbm %s6159_s30, 1 }
 0x112   : > { %p5095_p1 = scmp.ne.s32.totalorder %s5093_s29, %s5094_s15  ;;  %p5099_p6 = scmp.lt.s32.totalorder %s5093_s29, %s6159_s30 }
 0x113   : > { %p5100_p7 = scmp.lt.s32.totalorder %s5098_s18, %s5094_s15 }
 0x114   : > { %p5096_p2 = pnand %p5095_p1, %p4515_p4 }
 0x115   : > { %p5101_p8 = por %p5100_p7, %p5099_p6 }
 0x116   : > { %p5097_p5 = pneg %p5096_p2 }
 0x118   : > { %p5102_p9 = pnand %p5101_p8, %p5097_p5 }
 0x11a   : > { %5105 = shalt.err (!%p5102_p9)
}
 0x11b   : > { %4410 = dma.hbm_to_vmem [thread:$0]  (%p4515_p4), %s6360_s2, 16, %s1305_s28, [#allocation39]  }
 0x11c   : > { %s1354_s10 = sshll.u32 %s7166_s8, 4  ;;  %s5995_s23 = smov [#allocation41]   ;;  %s6382_s10 = int_to_ptr.hbm [resolvable:$true] %s1354_s10 }
 0x11d   : > { %s1330_s11 = sshll.u32 %s5995_s23, 4  ;;  %s5120_s26 = sshra.s32 %s6371_s22, 4  ;;  %s1331_s11 = int_to_ptr.vmem [resolvable:$true] %s1330_s11  ;;  %s5121_s26 = int_to_ptr.hbm [resolvable:$true] %s5120_s26 }
 0x11e   : > { %s5122_s29 = scalar_lea.hbm %s5121_s26, 2  ;;  %s5126_s15 = scalar_lea.hbm %s6169_s19, 2 }
 0x11f   : > { %p5123_p10 = scmp.ne.s32.totalorder %s5121_s26, %s5122_s29  ;;  %p5127_p13 = scmp.lt.s32.totalorder %s5121_s26, %s6169_s19 }
 0x120   : > { %p5128_p0 = scmp.lt.s32.totalorder %s5126_s15, %s5122_s29 }
 0x121   : > { %p5124_p11 = pnand %p5123_p10, %p4515_p4 }
 0x122   : > { %p5129_p1 = por %p5128_p0, %p5127_p13 }
 0x123   : > { %p5125_p12 = pneg %p5124_p11 }
 0x125   : > { %p5130_p2 = pnand %p5129_p1, %p5125_p12 }
 0x127   : > { %5133 = shalt.err (!%p5130_p2)
}
 0x128   : > { %s7172_s2 = sld [smem:[#allocation103_spill]]  ;;  %s5996_s28 = smov [#allocation44]  }
 0x129   : > { %4414 = dma.hbm_to_vmem [thread:$0]  (%p4515_p4), %s6371_s22, 32, %s1331_s11, [#allocation42]  }
 0x12a   : > { %s1356_s18 = sshll.u32 %s5996_s28, 4  ;;  %s5148_s26 = sshra.s32 %s6382_s10, 4  ;;  %s1357_s18 = int_to_ptr.vmem [resolvable:$true] %s1356_s18  ;;  %s5149_s26 = int_to_ptr.hbm [resolvable:$true] %s5148_s26 }
 0x12b   : > { %s5150_s29 = scalar_lea.hbm %s5149_s26, 1  ;;  %s5154_s15 = scalar_lea.hbm %s7166_s8, 1 }
 0x12c   : > { %p5151_p5 = scmp.ne.s32.totalorder %s5149_s26, %s5150_s29  ;;  %p5155_p8 = scmp.lt.s32.totalorder %s5149_s26, %s7166_s8 }
 0x12d   : > { %p5156_p9 = scmp.lt.s32.totalorder %s5154_s15, %s5150_s29 }
 0x12e   : > { %s1378_s23 = sshll.u32 %s7172_s2, 4  ;;  %p5152_p6 = pnand %p5151_p5, %p4515_p4  ;;  %s6393_s23 = int_to_ptr.hbm [resolvable:$true] %s1378_s23 }
 0x12f   : > { %p5157_p10 = por %p5156_p9, %p5155_p8 }
 0x130   : > { %p5153_p7 = pneg %p5152_p6 }
 0x132   : > { %p5158_p11 = pnand %p5157_p10, %p5153_p7 }
 0x134   : > { %5161 = shalt.err (!%p5158_p11)
}
 0x135   : > { %s7173_s22 = sld [smem:[#allocation105_spill]]  ;;  %s5997_s28 = smov [#allocation47]  }
 0x136   : > { %4418 = dma.hbm_to_vmem [thread:$0]  (%p4515_p4), %s6382_s10, 16, %s1357_s18, [#allocation45]  }
 0x137   : > { %s1380_s5 = sshll.u32 %s5997_s28, 4  ;;  %s5176_s26 = sshra.s32 %s6393_s23, 4  ;;  %s1381_s5 = int_to_ptr.vmem [resolvable:$true] %s1380_s5  ;;  %s5177_s26 = int_to_ptr.hbm [resolvable:$true] %s5176_s26 }
 0x138   : > { %s5178_s29 = scalar_lea.hbm %s5177_s26, 1  ;;  %s5182_s15 = scalar_lea.hbm %s7172_s2, 1 }
 0x139   : > { %p5179_p12 = scmp.ne.s32.totalorder %s5177_s26, %s5178_s29  ;;  %p5183_p1 = scmp.lt.s32.totalorder %s5177_s26, %s7172_s2 }
 0x13a   : > { %p5184_p2 = scmp.lt.s32.totalorder %s5182_s15, %s5178_s29 }
 0x13b   : > { %s1404_s11 = sshll.u32 %s7173_s22, 4  ;;  %p5180_p13 = pnand %p5179_p12, %p4515_p4  ;;  %s6404_s11 = int_to_ptr.hbm [resolvable:$true] %s1404_s11 }
 0x13c   : > { %p5185_p5 = por %p5184_p2, %p5183_p1 }
 0x13d   : > { %p5181_p0 = pneg %p5180_p13 }
 0x13f   : > { %p5186_p6 = pnand %p5185_p5, %p5181_p0 }
 0x141   : > { %5189 = shalt.err (!%p5186_p6)
}
 0x142   : > { %s7174_s10 = sld [smem:[#allocation107_spill]]  ;;  %s5998_s18 = smov [#allocation50]  }
 0x143   : > { %4422 = dma.hbm_to_vmem [thread:$0]  (%p4515_p4), %s6393_s23, 16, %s1381_s5, [#allocation48]  }
 0x144   : > { %s1406_s28 = sshll.u32 %s5998_s18, 4  ;;  %s5204_s26 = sshra.s32 %s6404_s11, 4  ;;  %s1407_s28 = int_to_ptr.vmem [resolvable:$true] %s1406_s28  ;;  %s5205_s26 = int_to_ptr.hbm [resolvable:$true] %s5204_s26 }
 0x145   : > { %s5206_s29 = scalar_lea.hbm %s5205_s26, 2  ;;  %s5210_s15 = scalar_lea.hbm %s7173_s22, 2 }
 0x146   : > { %p5207_p7 = scmp.ne.s32.totalorder %s5205_s26, %s5206_s29  ;;  %p5211_p10 = scmp.lt.s32.totalorder %s5205_s26, %s7173_s22 }
 0x147   : > { %p5212_p11 = scmp.lt.s32.totalorder %s5210_s15, %s5206_s29 }
 0x148   : > { %s1430_s7 = sshll.u32 %s7174_s10, 4  ;;  %p5208_p8 = pnand %p5207_p7, %p4515_p4  ;;  %s6415_s7 = int_to_ptr.hbm [resolvable:$true] %s1430_s7 }
 0x149   : > { %p5213_p12 = por %p5212_p11, %p5211_p10 }
 0x14a   : > { %p5209_p9 = pneg %p5208_p8 }
 0x14c   : > { %p5214_p13 = pnand %p5213_p12, %p5209_p9 }
 0x14e   : > { %5217 = shalt.err (!%p5214_p13)
}
 0x14f   : > { %s7175_s5 = sld [smem:[#allocation109_spill]]  ;;  %s5999_s18 = smov [#allocation53]  }
 0x150   : > { %4426 = dma.hbm_to_vmem [thread:$0]  (%p4515_p4), %s6404_s11, 32, %s1407_s28, [#allocation51]  }
 0x151   : > { %s1432_s25 = sshll.u32 %s5999_s18, 4  ;;  %s5232_s26 = sshra.s32 %s6415_s7, 4  ;;  %s1433_s25 = int_to_ptr.vmem [resolvable:$true] %s1432_s25  ;;  %s5233_s26 = int_to_ptr.hbm [resolvable:$true] %s5232_s26 }
 0x152   : > { %s5234_s29 = scalar_lea.hbm %s5233_s26, 1  ;;  %s5238_s15 = scalar_lea.hbm %s7174_s10, 1 }
 0x153   : > { %p5235_p0 = scmp.ne.s32.totalorder %s5233_s26, %s5234_s29  ;;  %p5239_p5 = scmp.lt.s32.totalorder %s5233_s26, %s7174_s10 }
 0x154   : > { %p5240_p6 = scmp.lt.s32.totalorder %s5238_s15, %s5234_s29 }
 0x155   : > { %s1454_s23 = sshll.u32 %s7175_s5, 4  ;;  %p5236_p1 = pnand %p5235_p0, %p4515_p4  ;;  %s6426_s23 = int_to_ptr.hbm [resolvable:$true] %s1454_s23 }
 0x156   : > { %p5241_p7 = por %p5240_p6, %p5239_p5 }
 0x157   : > { %p5237_p2 = pneg %p5236_p1 }
 0x159   : > { %p5242_p8 = pnand %p5241_p7, %p5237_p2 }
 0x15b   : > { %5245 = shalt.err (!%p5242_p8)
}
 0x15c   : > { %4430 = dma.hbm_to_vmem [thread:$0]  (%p4515_p4), %s6415_s7, 16, %s1433_s25, [#allocation54]  }
 0x15d   : > { %s6000_s11 = smov [#allocation56]   ;;  %s1479_s18 = sshll.u32 %s7168_s1, 4  ;;  %s6437_s18 = int_to_ptr.hbm [resolvable:$true] %s1479_s18 }
 0x15e   : > { %s1456_s28 = sshll.u32 %s6000_s11, 4  ;;  %s5260_s26 = sshra.s32 %s6426_s23, 4  ;;  %s1457_s28 = int_to_ptr.vmem [resolvable:$true] %s1456_s28  ;;  %s5261_s26 = int_to_ptr.hbm [resolvable:$true] %s5260_s26 }
 0x15f   : > { %s5262_s29 = scalar_lea.hbm %s5261_s26, 1  ;;  %s5266_s15 = scalar_lea.hbm %s7175_s5, 1 }
 0x160   : > { %p5263_p9 = scmp.ne.s32.totalorder %s5261_s26, %s5262_s29  ;;  %p5267_p12 = scmp.lt.s32.totalorder %s5261_s26, %s7175_s5 }
 0x161   : > { %p5268_p13 = scmp.lt.s32.totalorder %s5266_s15, %s5262_s29 }
 0x162   : > { %p5264_p10 = pnand %p5263_p9, %p4515_p4 }
 0x163   : > { %p5269_p0 = por %p5268_p13, %p5267_p12 }
 0x164   : > { %p5265_p11 = pneg %p5264_p10 }
 0x166   : > { %p5270_p1 = pnand %p5269_p0, %p5265_p11 }
 0x168   : > { %5273 = shalt.err (!%p5270_p1)
}
 0x169   : > { %s7176_s7 = sld [smem:[#allocation84_spill]]  ;;  %s6001_s25 = smov [#allocation59]  }
 0x16a   : > { %4434 = dma.hbm_to_vmem [thread:$0]  (%p4515_p4), %s6426_s23, 16, %s1457_s28, [#allocation57]  }
 0x16b   : > { %s1481_s11 = sshll.u32 %s6001_s25, 4  ;;  %s5288_s26 = sshra.s32 %s6437_s18, 4  ;;  %s1482_s11 = int_to_ptr.vmem [resolvable:$true] %s1481_s11  ;;  %s5289_s26 = int_to_ptr.hbm [resolvable:$true] %s5288_s26 }
 0x16c   : > { %s5290_s29 = scalar_lea.hbm %s5289_s26, 128  ;;  %s5294_s15 = scalar_lea.hbm %s7168_s1, 128 }
 0x16d   : > { %p5291_p2 = scmp.ne.s32.totalorder %s5289_s26, %s5290_s29  ;;  %p5295_p7 = scmp.lt.s32.totalorder %s5289_s26, %s7168_s1 }
 0x16e   : > { %p5296_p8 = scmp.lt.s32.totalorder %s5294_s15, %s5290_s29 }
 0x16f   : > { %s1026_s0 = sshll.u32 %s7176_s7, 4  ;;  %p5292_p5 = pnand %p5291_p2, %p4515_p4  ;;  %s6448_s0 = int_to_ptr.hbm [resolvable:$true] %s1026_s0 }
 0x170   : > { %p5297_p9 = por %p5296_p8, %p5295_p7 }
 0x171   : > { %p5293_p6 = pneg %p5292_p5 }
 0x173   : > { %p5298_p10 = pnand %p5297_p9, %p5293_p6 }
 0x175   : > { %5301 = shalt.err (!%p5298_p10)
}
 0x176   : > { %s7177_s23 = smov 8   ;;  %s7178_s28 = smov 128  }
 0x177   : > { %s7179_s25 = sld [smem:[#allocation86_spill]]  ;;  %s6002_s3 = smov [#allocation6]  }
 0x178   : > { %4438 = dma.hbm_to_vmem [thread:$0]  (%p4515_p4), %s6437_s18, 2048, %s1482_s11, [#allocation60], %s7178_s28, %s7178_s28, %s7177_s23  }
 0x179   : > { %s1028_s4 = sshll.u32 %s6002_s3, 4  ;;  %s5316_s26 = sshra.s32 %s6448_s0, 4  ;;  %s1029_s4 = int_to_ptr.vmem [resolvable:$true] %s1028_s4  ;;  %s5317_s26 = int_to_ptr.hbm [resolvable:$true] %s5316_s26 }
 0x17a   : > { %s5318_s29 = scalar_lea.hbm %s5317_s26, 16  ;;  %s5322_s15 = scalar_lea.hbm %s7176_s7, 16 }
 0x17b   : > { %p5319_p11 = scmp.ne.s32.totalorder %s5317_s26, %s5318_s29  ;;  %p5323_p0 = scmp.lt.s32.totalorder %s5317_s26, %s7176_s7 }
 0x17c   : > { %p5324_p1 = scmp.lt.s32.totalorder %s5322_s15, %s5318_s29 }
 0x17d   : > { %s1057_s2 = sshll.u32 %s7179_s25, 4  ;;  %p5320_p12 = pnand %p5319_p11, %p4515_p4  ;;  %s6462_s2 = int_to_ptr.hbm [resolvable:$true] %s1057_s2 }
 0x17e   : > { %p5325_p2 = por %p5324_p1, %p5323_p0 }
 0x17f   : > { %p5321_p13 = pneg %p5320_p12 }
 0x181   : > { %p5326_p5 = pnand %p5325_p2, %p5321_p13 }
 0x183   : > { %5329 = shalt.err (!%p5326_p5)
}
 0x184   : > { %s7180_s3 = sld [smem:[#allocation88_spill]]  ;;  %s6003_s18 = smov [#allocation10]  }
 0x185   : > { %4368 = dma.hbm_to_vmem [thread:$0]  (%p4515_p4), %s6448_s0, 256, %s1029_s4, [#allocation7], %s7178_s28, %s7178_s28, %s7177_s23  }
 0x186   : > { %s1059_s11 = sshll.u32 %s6003_s18, 4  ;;  %s5344_s26 = sshra.s32 %s6462_s2, 4  ;;  %s1060_s11 = int_to_ptr.vmem [resolvable:$true] %s1059_s11  ;;  %s5345_s26 = int_to_ptr.hbm [resolvable:$true] %s5344_s26 }
 0x187   : > { %s5346_s29 = scalar_lea.hbm %s5345_s26, 128  ;;  %s5350_s15 = scalar_lea.hbm %s7179_s25, 128 }
 0x188   : > { %p5347_p6 = scmp.ne.s32.totalorder %s5345_s26, %s5346_s29  ;;  %p5351_p9 = scmp.lt.s32.totalorder %s5345_s26, %s7179_s25 }
 0x189   : > { %p5352_p10 = scmp.lt.s32.totalorder %s5350_s15, %s5346_s29 }
 0x18a   : > { %s1084_s1 = sshll.u32 %s7180_s3, 4  ;;  %p5348_p7 = pnand %p5347_p6, %p4515_p4  ;;  %s6476_s1 = int_to_ptr.hbm [resolvable:$true] %s1084_s1 }
 0x18b   : > { %p5353_p11 = por %p5352_p10, %p5351_p9 }
 0x18c   : > { %p5349_p8 = pneg %p5348_p7 }
 0x18e   : > { %p5354_p12 = pnand %p5353_p11, %p5349_p8 }
 0x190   : > { %5357 = shalt.err (!%p5354_p12)
}
 0x191   : > { %s7181_s4 = sld [smem:[#allocation89_spill]]  ;;  %s6004_s18 = smov [#allocation13]  }
 0x192   : > { %4372 = dma.hbm_to_vmem [thread:$0]  (%p4515_p4), %s6462_s2, 2048, %s1060_s11, [#allocation9], %s7178_s28, %s7178_s28, %s7177_s23  }
 0x193   : > { %s1086_s5 = sshll.u32 %s6004_s18, 4  ;;  %s5372_s26 = sshra.s32 %s6476_s1, 4  ;;  %s1087_s5 = int_to_ptr.vmem [resolvable:$true] %s1086_s5  ;;  %s5373_s26 = int_to_ptr.hbm [resolvable:$true] %s5372_s26 }
 0x194   : > { %s5374_s29 = scalar_lea.hbm %s5373_s26, 1  ;;  %s5378_s15 = scalar_lea.hbm %s7180_s3, 1 }
 0x195   : > { %p5375_p13 = scmp.ne.s32.totalorder %s5373_s26, %s5374_s29  ;;  %p5379_p2 = scmp.lt.s32.totalorder %s5373_s26, %s7180_s3 }
 0x196   : > { %p5380_p5 = scmp.lt.s32.totalorder %s5378_s15, %s5374_s29 }
 0x197   : > { %s1107_s0 = sshll.u32 %s7181_s4, 4  ;;  %p5376_p0 = pnand %p5375_p13, %p4515_p4  ;;  %s6490_s0 = int_to_ptr.hbm [resolvable:$true] %s1107_s0 }
 0x198   : > { %p5381_p6 = por %p5380_p5, %p5379_p2 }
 0x199   : > { %p5377_p1 = pneg %p5376_p0 }
 0x19b   : > { %p5382_p7 = pnand %p5381_p6, %p5377_p1 }
 0x19d   : > { %5385 = shalt.err (!%p5382_p7)
}
 0x19e   : > { %4376 = dma.hbm_to_vmem [thread:$0]  (%p4515_p4), %s6476_s1, 16, %s1087_s5, [#allocation12]  }
 0x19f   : > { %s6005_s2 = smov [#allocation16]   ;;  %s5400_s18 = sshra.s32 %s6490_s0, 4  ;;  %s5401_s18 = int_to_ptr.hbm [resolvable:$true] %s5400_s18 }
 0x1a0   : > { %s1109_s11 = sshll.u32 %s6005_s2, 4  ;;  %s5402_s6 = scalar_lea.hbm %s5401_s18, 256  ;;  %s1110_s11 = int_to_ptr.vmem [resolvable:$true] %s1109_s11 }
 0x1a1   : > { %p5403_p8 = scmp.ne.s32.totalorder %s5401_s18, %s5402_s6  ;;  %s5406_s26 = scalar_lea.hbm %s7181_s4, 256 }
 0x1a2   : > { %p5407_p11 = scmp.lt.s32.totalorder %s5401_s18, %s7181_s4  ;;  %p5408_p12 = scmp.lt.s32.totalorder %s5406_s26, %s5402_s6 }
 0x1a3   : > { %p5404_p9 = pnand %p5403_p8, %p4515_p4 }
 0x1a4   : > { %p5409_p13 = por %p5408_p12, %p5407_p11 }
 0x1a5   : > { %p5405_p10 = pneg %p5404_p9 }
 0x1a7   : > { %p5410_p0 = pnand %p5409_p13, %p5405_p10 }
 0x1a9   : > { %5413 = shalt.err (!%p5410_p0)
}
 0x1aa   : > { %s7118_s29 = smov 256   ;;  %s7182_s1 = sld [smem:[#allocation90_spill]] }
 0x1ab   : > { %s7183_s5 = sld [smem:[#allocation92_spill]]  ;;  %s7120_s15 = smov 16  }
 0x1ac   : > { %4380 = dma.hbm_to_vmem [thread:$0]  (%p4515_p4), %s6490_s0, 4096, %s1110_s11, [#allocation15], %s7118_s29, %s7118_s29, %s7120_s15  }
 0x1ad   : > { %s6008_s6 = smov [#allocation19]  }
 0x1ae   : > { %s1135_s18 = sshll.u32 %s6008_s6, 4  ;;  %s1136_s18 = int_to_ptr.vmem [resolvable:$true] %s1135_s18 }
 0x1b0   : > { %s1133_s2 = sshll.u32 %s7182_s1, 4  ;;  %s5434_s7 = scalar_lea.hbm %s7182_s1, 256  ;;  %s1134_s2 = int_to_ptr.hbm [resolvable:$true] %s1133_s2 }
 0x1b1   : > { %s1160_s26 = sshll.u32 %s7183_s5, 4  ;;  %s5428_s3 = sshra.s32 %s1134_s2, 4  ;;  %s5429_s3 = int_to_ptr.hbm [resolvable:$true] %s5428_s3  ;;  %s1161_s26 = int_to_ptr.hbm [resolvable:$true] %s1160_s26 }
 0x1b2   : > { %s5430_s4 = scalar_lea.hbm %s5429_s3, 256  ;;  %p5435_p6 = scmp.lt.s32.totalorder %s5429_s3, %s7182_s1 }
 0x1b3   : > { %p5431_p1 = scmp.ne.s32.totalorder %s5429_s3, %s5430_s4  ;;  %p5436_p7 = scmp.lt.s32.totalorder %s5434_s7, %s5430_s4 }
 0x1b5   : > { %p5432_p2 = pnand %p5431_p1, %p4515_p4  ;;  %p5437_p8 = por %p5436_p7, %p5435_p6 }
 0x1b7   : > { %p5433_p5 = pneg %p5432_p2 }
 0x1b9   : > { %p5438_p9 = pnand %p5437_p8, %p5433_p5 }
 0x1bb   : > { %5441 = shalt.err (!%p5438_p9)
}
 0x1bc   : > { %s7184_s0 = sld [smem:[#allocation93_spill]]  ;;  %s6009_s11 = smov [#allocation22]  }
 0x1bd   : > { %4384 = dma.hbm_to_vmem [thread:$0]  (%p4515_p4), %s1134_s2, 4096, %s1136_s18, [#allocation18], %s7178_s28, %s7178_s28, %s7177_s23  }
 0x1be   : > { %s1162_s6 = sshll.u32 %s6009_s11, 4  ;;  %s5456_s7 = sshra.s32 %s1161_s26, 4  ;;  %s1163_s6 = int_to_ptr.vmem [resolvable:$true] %s1162_s6  ;;  %s5457_s7 = int_to_ptr.hbm [resolvable:$true] %s5456_s7 }
 0x1bf   : > { %s5458_s3 = scalar_lea.hbm %s5457_s7, 1  ;;  %s5462_s4 = scalar_lea.hbm %s7183_s5, 1 }
 0x1c0   : > { %p5459_p10 = scmp.ne.s32.totalorder %s5457_s7, %s5458_s3  ;;  %p5463_p13 = scmp.lt.s32.totalorder %s5457_s7, %s7183_s5 }
 0x1c1   : > { %p5464_p0 = scmp.lt.s32.totalorder %s5462_s4, %s5458_s3 }
 0x1c2   : > { %s1183_s29 = sshll.u32 %s7184_s0, 4  ;;  %p5460_p11 = pnand %p5459_p10, %p4515_p4  ;;  %s6523_s29 = int_to_ptr.hbm [resolvable:$true] %s1183_s29 }
 0x1c3   : > { %p5465_p1 = por %p5464_p0, %p5463_p13 }
 0x1c4   : > { %p5461_p12 = pneg %p5460_p11 }
 0x1c6   : > { %p5466_p2 = pnand %p5465_p1, %p5461_p12 }
 0x1c8   : > { %5469 = shalt.err (!%p5466_p2)
}
 0x1c9   : > { %s7185_s2 = sld [smem:[#allocation95_spill]]  ;;  %s6010_s11 = smov [#allocation25]  }
 0x1ca   : > { %4388 = dma.hbm_to_vmem [thread:$0]  (%p4515_p4), %s1161_s26, 16, %s1163_s6, [#allocation21]  }
 0x1cb   : > { %s1185_s15 = sshll.u32 %s6010_s11, 4  ;;  %s5484_s1 = sshra.s32 %s6523_s29, 4  ;;  %s1186_s15 = int_to_ptr.vmem [resolvable:$true] %s1185_s15  ;;  %s5485_s1 = int_to_ptr.hbm [resolvable:$true] %s5484_s1 }
 0x1cc   : > { %s5486_s7 = scalar_lea.hbm %s5485_s1, 128  ;;  %s5490_s3 = scalar_lea.hbm %s7184_s0, 128 }
 0x1cd   : > { %p5487_p5 = scmp.ne.s32.totalorder %s5485_s1, %s5486_s7  ;;  %p5491_p8 = scmp.lt.s32.totalorder %s5485_s1, %s7184_s0 }
 0x1ce   : > { %p5492_p9 = scmp.lt.s32.totalorder %s5490_s3, %s5486_s7 }
 0x1cf   : > { %s1211_s18 = sshll.u32 %s7185_s2, 4  ;;  %p5488_p6 = pnand %p5487_p5, %p4515_p4  ;;  %s6532_s18 = int_to_ptr.hbm [resolvable:$true] %s1211_s18 }
 0x1d0   : > { %p5493_p10 = por %p5492_p9, %p5491_p8 }
 0x1d1   : > { %p5489_p7 = pneg %p5488_p6 }
 0x1d3   : > { %p5494_p11 = pnand %p5493_p10, %p5489_p7 }
 0x1d5   : > { %5497 = shalt.err (!%p5494_p11)
}
 0x1d6   : > { %s7186_s26 = sld [smem:[#allocation96_spill]]  ;;  %s6011_s6 = smov [#allocation28]  }
 0x1d7   : > { %4392 = dma.hbm_to_vmem [thread:$0]  (%p4515_p4), %s6523_s29, 2048, %s1186_s15, [#allocation24], %s7178_s28, %s7178_s28, %s7177_s23  }
 0x1d8   : > { %s1213_s4 = sshll.u32 %s6011_s6, 4  ;;  %s5512_s1 = sshra.s32 %s6532_s18, 4  ;;  %s1214_s4 = int_to_ptr.vmem [resolvable:$true] %s1213_s4  ;;  %s5513_s1 = int_to_ptr.hbm [resolvable:$true] %s5512_s1 }
 0x1d9   : > { %s5514_s7 = scalar_lea.hbm %s5513_s1, 384  ;;  %s5518_s3 = scalar_lea.hbm %s7185_s2, 384 }
 0x1da   : > { %p5515_p12 = scmp.ne.s32.totalorder %s5513_s1, %s5514_s7  ;;  %p5519_p1 = scmp.lt.s32.totalorder %s5513_s1, %s7185_s2 }
 0x1db   : > { %p5520_p2 = scmp.lt.s32.totalorder %s5518_s3, %s5514_s7 }
 0x1dc   : > { %s1237_s11 = sshll.u32 %s7186_s26, 4  ;;  %p5516_p13 = pnand %p5515_p12, %p4515_p4  ;;  %s6546_s11 = int_to_ptr.hbm [resolvable:$true] %s1237_s11 }
 0x1dd   : > { %p5521_p5 = por %p5520_p2, %p5519_p1 }
 0x1de   : > { %p5517_p0 = pneg %p5516_p13 }
 0x1e0   : > { %p5522_p6 = pnand %p5521_p5, %p5517_p0 }
 0x1e2   : > { %5525 = shalt.err (!%p5522_p6)
}
 0x1e3   : > { %s7187_s29 = smov 24   ;;  %s7188_s15 = smov 384  }
 0x1e4   : > { %s7189_s6 = sld [smem:[#allocation97_spill]]  ;;  %s6012_s5 = smov [#allocation31]  }
 0x1e5   : > { %4396 = dma.hbm_to_vmem [thread:$0]  (%p4515_p4), %s6532_s18, 6144, %s1214_s4, [#allocation27], %s7188_s15, %s7188_s15, %s7187_s29  }
 0x1e6   : > { %s1239_s8 = sshll.u32 %s6012_s5, 4  ;;  %s5540_s1 = sshra.s32 %s6546_s11, 4  ;;  %s1240_s8 = int_to_ptr.vmem [resolvable:$true] %s1239_s8  ;;  %s5541_s1 = int_to_ptr.hbm [resolvable:$true] %s5540_s1 }
 0x1e7   : > { %s5542_s7 = scalar_lea.hbm %s5541_s1, 128  ;;  %s5546_s3 = scalar_lea.hbm %s7186_s26, 128 }
 0x1e8   : > { %p5543_p7 = scmp.ne.s32.totalorder %s5541_s1, %s5542_s7  ;;  %p5547_p10 = scmp.lt.s32.totalorder %s5541_s1, %s7186_s26 }
 0x1e9   : > { %p5548_p11 = scmp.lt.s32.totalorder %s5546_s3, %s5542_s7 }
 0x1ea   : > { %s1264_s0 = sshll.u32 %s7189_s6, 4  ;;  %p5544_p8 = pnand %p5543_p7, %p4515_p4  ;;  %s6560_s0 = int_to_ptr.hbm [resolvable:$true] %s1264_s0 }
 0x1eb   : > { %p5549_p12 = por %p5548_p11, %p5547_p10 }
 0x1ec   : > { %p5545_p9 = pneg %p5544_p8 }
 0x1ee   : > { %p5550_p13 = pnand %p5549_p12, %p5545_p9 }
 0x1f0   : > { %5553 = shalt.err (!%p5550_p13)
}
 0x1f1   : > { %s7190_s5 = sld [smem:[#allocation98_spill]]  ;;  %s6013_s18 = smov [#allocation34]  }
 0x1f2   : > { %4400 = dma.hbm_to_vmem [thread:$0]  (%p4515_p4), %s6546_s11, 2048, %s1240_s8, [#allocation30], %s7178_s28, %s7178_s28, %s7177_s23  }
 0x1f3   : > { %s1266_s4 = sshll.u32 %s6013_s18, 4  ;;  %s5568_s15 = sshra.s32 %s6560_s0, 4  ;;  %s1267_s4 = int_to_ptr.vmem [resolvable:$true] %s1266_s4  ;;  %s5569_s15 = int_to_ptr.hbm [resolvable:$true] %s5568_s15 }
 0x1f4   : > { %s5570_s1 = scalar_lea.hbm %s5569_s15, 1  ;;  %s5574_s7 = scalar_lea.hbm %s7189_s6, 1 }
 0x1f5   : > { %p5571_p0 = scmp.ne.s32.totalorder %s5569_s15, %s5570_s1  ;;  %p5575_p5 = scmp.lt.s32.totalorder %s5569_s15, %s7189_s6 }
 0x1f6   : > { %p5576_p6 = scmp.lt.s32.totalorder %s5574_s7, %s5570_s1 }
 0x1f7   : > { %s1287_s29 = sshll.u32 %s7190_s5, 4  ;;  %p5572_p1 = pnand %p5571_p0, %p4515_p4  ;;  %s6574_s29 = int_to_ptr.hbm [resolvable:$true] %s1287_s29 }
 0x1f8   : > { %p5577_p7 = por %p5576_p6, %p5575_p5 }
 0x1f9   : > { %p5573_p2 = pneg %p5572_p1 }
 0x1fb   : > { %p5578_p8 = pnand %p5577_p7, %p5573_p2 }
 0x1fd   : > { %5581 = shalt.err (!%p5578_p8)
}
 0x1fe   : > { %s7191_s8 = sld [smem:[#allocation99_spill]]  ;;  %s6014_s3 = smov [#allocation37]  }
 0x1ff   : > { %4404 = dma.hbm_to_vmem [thread:$0]  (%p4515_p4), %s6560_s0, 16, %s1267_s4, [#allocation33]  }
 0x200   : > { %s1289_s18 = sshll.u32 %s6014_s3, 4  ;;  %s5596_s15 = sshra.s32 %s6574_s29, 4  ;;  %s1290_s18 = int_to_ptr.vmem [resolvable:$true] %s1289_s18  ;;  %s5597_s15 = int_to_ptr.hbm [resolvable:$true] %s5596_s15 }
 0x201   : > { %s5598_s1 = scalar_lea.hbm %s5597_s15, 128  ;;  %s5602_s7 = scalar_lea.hbm %s7190_s5, 128 }
 0x202   : > { %p5599_p9 = scmp.ne.s32.totalorder %s5597_s15, %s5598_s1  ;;  %p5603_p12 = scmp.lt.s32.totalorder %s5597_s15, %s7190_s5 }
 0x203   : > { %p5604_p13 = scmp.lt.s32.totalorder %s5602_s7, %s5598_s1 }
 0x204   : > { %s1313_s11 = sshll.u32 %s7191_s8, 4  ;;  %p5600_p10 = pnand %p5599_p9, %p4515_p4  ;;  %s6585_s11 = int_to_ptr.hbm [resolvable:$true] %s1313_s11 }
 0x205   : > { %p5605_p0 = por %p5604_p13, %p5603_p12 }
 0x206   : > { %p5601_p11 = pneg %p5600_p10 }
 0x208   : > { %p5606_p1 = pnand %p5605_p0, %p5601_p11 }
 0x20a   : > { %5609 = shalt.err (!%p5606_p1)
}
 0x20b   : > { %s7192_s0 = sld [smem:[#allocation100_spill]]  ;;  %s6015_s4 = smov [#allocation40]  }
 0x20c   : > { %4408 = dma.hbm_to_vmem [thread:$0]  (%p4515_p4), %s6574_s29, 2048, %s1290_s18, [#allocation36], %s7178_s28, %s7178_s28, %s7177_s23  }
 0x20d   : > { %s1315_s3 = sshll.u32 %s6015_s4, 4  ;;  %s5624_s15 = sshra.s32 %s6585_s11, 4  ;;  %s1316_s3 = int_to_ptr.vmem [resolvable:$true] %s1315_s3  ;;  %s5625_s15 = int_to_ptr.hbm [resolvable:$true] %s5624_s15 }
 0x20e   : > { %s5626_s1 = scalar_lea.hbm %s5625_s15, 256  ;;  %s5630_s7 = scalar_lea.hbm %s7191_s8, 256 }
 0x20f   : > { %p5627_p2 = scmp.ne.s32.totalorder %s5625_s15, %s5626_s1  ;;  %p5631_p7 = scmp.lt.s32.totalorder %s5625_s15, %s7191_s8 }
 0x210   : > { %p5632_p8 = scmp.lt.s32.totalorder %s5630_s7, %s5626_s1 }
 0x211   : > { %s1339_s2 = sshll.u32 %s7192_s0, 4  ;;  %p5628_p5 = pnand %p5627_p2, %p4515_p4  ;;  %s6599_s2 = int_to_ptr.hbm [resolvable:$true] %s1339_s2 }
 0x212   : > { %p5633_p9 = por %p5632_p8, %p5631_p7 }
 0x213   : > { %p5629_p6 = pneg %p5628_p5 }
 0x215   : > { %p5634_p10 = pnand %p5633_p9, %p5629_p6 }
 0x217   : > { %5637 = shalt.err (!%p5634_p10)
}
 0x218   : > { %s7193_s29 = smov 16   ;;  %s7194_s18 = smov 256  }
 0x219   : > { %s7195_s4 = sld [smem:[#allocation102_spill]]  ;;  %s6016_s6 = smov [#allocation43]  }
 0x21a   : > { %4412 = dma.hbm_to_vmem [thread:$0]  (%p4515_p4), %s6585_s11, 4096, %s1316_s3, [#allocation39], %s7194_s18, %s7194_s18, %s7193_s29  }
 0x21b   : > { %s1341_s10 = sshll.u32 %s6016_s6, 4  ;;  %s5652_s15 = sshra.s32 %s6599_s2, 4  ;;  %s1342_s10 = int_to_ptr.vmem [resolvable:$true] %s1341_s10  ;;  %s5653_s15 = int_to_ptr.hbm [resolvable:$true] %s5652_s15 }
 0x21c   : > { %s5654_s1 = scalar_lea.hbm %s5653_s15, 128  ;;  %s5658_s7 = scalar_lea.hbm %s7192_s0, 128 }
 0x21d   : > { %p5655_p11 = scmp.ne.s32.totalorder %s5653_s15, %s5654_s1  ;;  %p5659_p0 = scmp.lt.s32.totalorder %s5653_s15, %s7192_s0 }
 0x21e   : > { %p5660_p1 = scmp.lt.s32.totalorder %s5658_s7, %s5654_s1 }
 0x21f   : > { %s1366_s5 = sshll.u32 %s7195_s4, 4  ;;  %p5656_p12 = pnand %p5655_p11, %p4515_p4  ;;  %s6613_s5 = int_to_ptr.hbm [resolvable:$true] %s1366_s5 }
 0x220   : > { %p5661_p2 = por %p5660_p1, %p5659_p0 }
 0x221   : > { %p5657_p13 = pneg %p5656_p12 }
 0x223   : > { %p5662_p5 = pnand %p5661_p2, %p5657_p13 }
 0x225   : > { %5665 = shalt.err (!%p5662_p5)
}
 0x226   : > { %s7196_s6 = sld [smem:[#allocation104_spill]]  ;;  %s6017_s11 = smov [#allocation46]  }
 0x227   : > { %4416 = dma.hbm_to_vmem [thread:$0]  (%p4515_p4), %s6599_s2, 2048, %s1342_s10, [#allocation42], %s7178_s28, %s7178_s28, %s7177_s23  }
 0x228   : > { %s1368_s3 = sshll.u32 %s6017_s11, 4  ;;  %s5680_s15 = sshra.s32 %s6613_s5, 4  ;;  %s1369_s3 = int_to_ptr.vmem [resolvable:$true] %s1368_s3  ;;  %s5681_s15 = int_to_ptr.hbm [resolvable:$true] %s5680_s15 }
 0x229   : > { %s5682_s1 = scalar_lea.hbm %s5681_s15, 1  ;;  %s5686_s7 = scalar_lea.hbm %s7195_s4, 1 }
 0x22a   : > { %p5683_p6 = scmp.ne.s32.totalorder %s5681_s15, %s5682_s1  ;;  %p5687_p9 = scmp.lt.s32.totalorder %s5681_s15, %s7195_s4 }
 0x22b   : > { %p5688_p10 = scmp.lt.s32.totalorder %s5686_s7, %s5682_s1 }
 0x22c   : > { %s1389_s8 = sshll.u32 %s7196_s6, 4  ;;  %p5684_p7 = pnand %p5683_p6, %p4515_p4  ;;  %s6627_s8 = int_to_ptr.hbm [resolvable:$true] %s1389_s8 }
 0x22d   : > { %p5689_p11 = por %p5688_p10, %p5687_p9 }
 0x22e   : > { %p5685_p8 = pneg %p5684_p7 }
 0x230   : > { %p5690_p12 = pnand %p5689_p11, %p5685_p8 }
 0x232   : > { %5693 = shalt.err (!%p5690_p12)
}
 0x233   : > { %s7197_s10 = sld [smem:[#allocation106_spill]]  ;;  %s6018_s11 = smov [#allocation49]  }
 0x234   : > { %4420 = dma.hbm_to_vmem [thread:$0]  (%p4515_p4), %s6613_s5, 16, %s1369_s3, [#allocation45]  }
 0x235   : > { %s1391_s0 = sshll.u32 %s6018_s11, 4  ;;  %s5708_s15 = sshra.s32 %s6627_s8, 4  ;;  %s1392_s0 = int_to_ptr.vmem [resolvable:$true] %s1391_s0  ;;  %s5709_s15 = int_to_ptr.hbm [resolvable:$true] %s5708_s15 }
 0x236   : > { %s5710_s1 = scalar_lea.hbm %s5709_s15, 256  ;;  %s5714_s7 = scalar_lea.hbm %s7196_s6, 256 }
 0x237   : > { %p5711_p13 = scmp.ne.s32.totalorder %s5709_s15, %s5710_s1  ;;  %p5715_p2 = scmp.lt.s32.totalorder %s5709_s15, %s7196_s6 }
 0x238   : > { %p5716_p5 = scmp.lt.s32.totalorder %s5714_s7, %s5710_s1 }
 0x239   : > { %s1415_s2 = sshll.u32 %s7197_s10, 4  ;;  %p5712_p0 = pnand %p5711_p13, %p4515_p4  ;;  %s6638_s2 = int_to_ptr.hbm [resolvable:$true] %s1415_s2 }
 0x23a   : > { %p5717_p6 = por %p5716_p5, %p5715_p2 }
 0x23b   : > { %p5713_p1 = pneg %p5712_p0 }
 0x23d   : > { %p5718_p7 = pnand %p5717_p6, %p5713_p1 }
 0x23f   : > { %5721 = shalt.err (!%p5718_p7)
}
 0x240   : > { %s7198_s5 = sld [smem:[#allocation108_spill]]  ;;  %s6019_s3 = smov [#allocation52]  }
 0x241   : > { %4424 = dma.hbm_to_vmem [thread:$0]  (%p4515_p4), %s6627_s8, 4096, %s1392_s0, [#allocation48], %s7194_s18, %s7194_s18, %s7193_s29  }
 0x242   : > { %s1417_s11 = sshll.u32 %s6019_s3, 4  ;;  %s5736_s15 = sshra.s32 %s6638_s2, 4  ;;  %s1418_s11 = int_to_ptr.vmem [resolvable:$true] %s1417_s11  ;;  %s5737_s15 = int_to_ptr.hbm [resolvable:$true] %s5736_s15 }
 0x243   : > { %s5738_s1 = scalar_lea.hbm %s5737_s15, 256  ;;  %s5742_s7 = scalar_lea.hbm %s7197_s10, 256 }
 0x244   : > { %p5739_p8 = scmp.ne.s32.totalorder %s5737_s15, %s5738_s1  ;;  %p5743_p11 = scmp.lt.s32.totalorder %s5737_s15, %s7197_s10 }
 0x245   : > { %p5744_p12 = scmp.lt.s32.totalorder %s5742_s7, %s5738_s1 }
 0x246   : > { %s1442_s4 = sshll.u32 %s7198_s5, 4  ;;  %p5740_p9 = pnand %p5739_p8, %p4515_p4  ;;  %s6652_s4 = int_to_ptr.hbm [resolvable:$true] %s1442_s4 }
 0x247   : > { %p5745_p13 = por %p5744_p12, %p5743_p11 }
 0x248   : > { %p5741_p10 = pneg %p5740_p9 }
 0x24a   : > { %p5746_p0 = pnand %p5745_p13, %p5741_p10 }
 0x24c   : > { %5749 = shalt.err (!%p5746_p0)
}
 0x24d   : > { %s7199_s8 = sld [smem:[#allocation110_spill]]  ;;  %s6020_s29 = smov [#allocation55]  }
 0x24e   : > { %4428 = dma.hbm_to_vmem [thread:$0]  (%p4515_p4), %s6638_s2, 4096, %s1418_s11, [#allocation51], %s7178_s28, %s7178_s28, %s7177_s23  }
 0x24f   : > { %s1444_s18 = sshll.u32 %s6020_s29, 4  ;;  %s5764_s3 = sshra.s32 %s6652_s4, 4  ;;  %s1445_s18 = int_to_ptr.vmem [resolvable:$true] %s1444_s18  ;;  %s5765_s3 = int_to_ptr.hbm [resolvable:$true] %s5764_s3 }
 0x250   : > { %s5766_s15 = scalar_lea.hbm %s5765_s3, 1  ;;  %s5770_s1 = scalar_lea.hbm %s7198_s5, 1 }
 0x251   : > { %p5767_p1 = scmp.ne.s32.totalorder %s5765_s3, %s5766_s15  ;;  %p5771_p6 = scmp.lt.s32.totalorder %s5765_s3, %s7198_s5 }
 0x252   : > { %p5772_p7 = scmp.lt.s32.totalorder %s5770_s1, %s5766_s15 }
 0x253   : > { %s1465_s0 = sshll.u32 %s7199_s8, 4  ;;  %p5768_p2 = pnand %p5767_p1, %p4515_p4  ;;  %s6666_s0 = int_to_ptr.hbm [resolvable:$true] %s1465_s0 }
 0x254   : > { %p5773_p8 = por %p5772_p7, %p5771_p6 }
 0x255   : > { %p5769_p5 = pneg %p5768_p2 }
 0x257   : > { %p5774_p9 = pnand %p5773_p8, %p5769_p5 }
 0x259   : > { %5777 = shalt.err (!%p5774_p9)
}
 0x25a   : > { %s7200_s2 = sld [smem:[#allocation112_spill]]  ;;  %s6021_s11 = smov [#allocation58]  }
 0x25b   : > { %4432 = dma.hbm_to_vmem [thread:$0]  (%p4515_p4), %s6652_s4, 16, %s1445_s18, [#allocation54]  }
 0x25c   : > { %s1467_s7 = sshll.u32 %s6021_s11, 4  ;;  %s5792_s6 = sshra.s32 %s6666_s0, 4  ;;  %s1468_s7 = int_to_ptr.vmem [resolvable:$true] %s1467_s7  ;;  %s5793_s6 = int_to_ptr.hbm [resolvable:$true] %s5792_s6 }
 0x25d   : > { %s5794_s3 = scalar_lea.hbm %s5793_s6, 128  ;;  %s5798_s15 = scalar_lea.hbm %s7199_s8, 128 }
 0x25e   : > { %p5795_p10 = scmp.ne.s32.totalorder %s5793_s6, %s5794_s3  ;;  %p5799_p13 = scmp.lt.s32.totalorder %s5793_s6, %s7199_s8 }
 0x25f   : > { %p5800_p0 = scmp.lt.s32.totalorder %s5798_s15, %s5794_s3 }
 0x260   : > { %s1494_s29 = sshll.u32 %s7200_s2, 4  ;;  %p5796_p11 = pnand %p5795_p10, %p4515_p4  ;;  %s1495_s29 = int_to_ptr.hbm [resolvable:$true] %s1494_s29 }
 0x261   : > { %p5801_p1 = por %p5800_p0, %p5799_p13 }
 0x262   : > { %p5797_p12 = pneg %p5796_p11 }
 0x264   : > { %p5802_p2 = pnand %p5801_p1, %p5797_p12 }
 0x266   : > { %5805 = shalt.err (!%p5802_p2)
}
 0x267   : > { %4436 = dma.hbm_to_vmem [thread:$0]  (%p4515_p4), %s6666_s0, 2048, %s1468_s7, [#allocation57], %s7178_s28, %s7178_s28, %s7177_s23  }
 0x268   : > { %s6022_s4 = smov [#allocation61]   ;;  %s5820_s1 = sshra.s32 %s1495_s29, 4  ;;  %s5821_s1 = int_to_ptr.hbm [resolvable:$true] %s5820_s1 }
 0x269   : > { %s1496_s18 = sshll.u32 %s6022_s4, 4  ;;  %s5822_s6 = scalar_lea.hbm %s5821_s1, 1  ;;  %s1497_s18 = int_to_ptr.vmem [resolvable:$true] %s1496_s18 }
 0x26a   : > { %p5823_p5 = scmp.ne.s32.totalorder %s5821_s1, %s5822_s6  ;;  %s5826_s11 = scalar_lea.hbm %s7200_s2, 1 }
 0x26b   : > { %p5827_p8 = scmp.lt.s32.totalorder %s5821_s1, %s7200_s2  ;;  %p5828_p9 = scmp.lt.s32.totalorder %s5826_s11, %s5822_s6 }
 0x26c   : > { %p5824_p6 = pnand %p5823_p5, %p4515_p4 }
 0x26d   : > { %p5829_p10 = por %p5828_p9, %p5827_p8 }
 0x26e   : > { %p5825_p7 = pneg %p5824_p6 }
 0x270   : > { %p5830_p11 = pnand %p5829_p10, %p5825_p7 }
 0x272   : > { %5833 = shalt.err (!%p5830_p11)
}
 0x273   : > { %4440 = dma.hbm_to_vmem [thread:$0]  (%p4515_p4), %s1495_s29, 16, %s1497_s18, [#allocation60]  }
 0x274 PF: > { %1523 = sbr.rel (%p6260_p3) target bundleno = 6878 (0x1ade), region = 180  ;;  %p4552_p12 = scmp.eq.s32.totalorder (!%p6260_p3), %s6256_s9, 0 }
 0x279   : > { %5855 = dma.done.wait (%p4552_p12), [#allocation7], 256  }
 0x27a   : > { %5857 = vsyncadd (%p4552_p12), [#allocation7], 4294967040 }
 0x27b   : > { %5859 = dma.done.wait (%p4552_p12), [#allocation9], 8192  }
 0x27c   : > { %5861 = vsyncadd (%p4552_p12), [#allocation9], 4294959104 }
 0x27d   : > { %5863 = dma.done.wait (%p4552_p12), [#allocation12], 32  }
 0x27e   : > { %5865 = vsyncadd (%p4552_p12), [#allocation12], 4294967264 }
 0x27f   : > { %5867 = dma.done.wait (%p4552_p12), [#allocation15], 4112  }
 0x280   : > { %5869 = vsyncadd (%p4552_p12), [#allocation15], 4294963184 }
 0x281   : > { %5871 = dma.done.wait (%p4552_p12), [#allocation18], 4128  }
 0x282   : > { %5873 = vsyncadd (%p4552_p12), [#allocation18], 4294963168 }
 0x283   : > { %5875 = dma.done.wait (%p4552_p12), [#allocation21], 32  }
 0x284   : > { %5877 = vsyncadd (%p4552_p12), [#allocation21], 4294967264 }
 0x285   : > { %5879 = dma.done.wait (%p4552_p12), [#allocation24], 2064  }
 0x286   : > { %5881 = vsyncadd (%p4552_p12), [#allocation24], 4294965232 }
 0x287   : > { %5883 = dma.done.wait (%p4552_p12), [#allocation27], 8192  }
 0x288   : > { %5885 = vsyncadd (%p4552_p12), [#allocation27], 4294959104 }
 0x289   : > { %5887 = dma.done.wait (%p4552_p12), [#allocation30], 2096  }
 0x28a   : > { %5889 = vsyncadd (%p4552_p12), [#allocation30], 4294965200 }
 0x28b   : > { %5891 = dma.done.wait (%p4552_p12), [#allocation33], 32  }
 0x28c   : > { %5893 = vsyncadd (%p4552_p12), [#allocation33], 4294967264 }
 0x28d   : > { %5895 = dma.done.wait (%p4552_p12), [#allocation36], 2064  }
 0x28e   : > { %5897 = vsyncadd (%p4552_p12), [#allocation36], 4294965232 }
 0x28f   : > { %5899 = dma.done.wait (%p4552_p12), [#allocation39], 4112  }
 0x290   : > { %5901 = vsyncadd (%p4552_p12), [#allocation39], 4294963184 }
 0x291   : > { %5903 = dma.done.wait (%p4552_p12), [#allocation42], 2080  }
 0x292   : > { %5905 = vsyncadd (%p4552_p12), [#allocation42], 4294965216 }
 0x293   : > { %5907 = dma.done.wait (%p4552_p12), [#allocation45], 32  }
 0x294   : > { %5909 = vsyncadd (%p4552_p12), [#allocation45], 4294967264 }
 0x295   : > { %5911 = dma.done.wait (%p4552_p12), [#allocation48], 4112  }
 0x296   : > { %5913 = vsyncadd (%p4552_p12), [#allocation48], 4294963184 }
 0x297   : > { %5915 = dma.done.wait (%p4552_p12), [#allocation51], 4128  }
 0x298   : > { %5917 = vsyncadd (%p4552_p12), [#allocation51], 4294963168 }
 0x299   : > { %5919 = dma.done.wait (%p4552_p12), [#allocation54], 32  }
 0x29a   : > { %5921 = vsyncadd (%p4552_p12), [#allocation54], 4294967264 }
 0x29b   : > { %5923 = dma.done.wait (%p4552_p12), [#allocation57], 2064  }
 0x29c   : > { %5925 = vsyncadd (%p4552_p12), [#allocation57], 4294965232 }
 0x29d   : > { %5927 = dma.done.wait (%p4552_p12), [#allocation60], 2064  }
 0x29e   : > { %5929 = vsyncadd (%p4552_p12), [#allocation60], 4294965232  ;;  %s7201_s16 = sld [smem:[#allocation82_spill]]  ;;  %p1804_p3 = scmp.lt.s32.totalorder %s6256_s9, 1  ;;  %v1823_v0 = vld [vmem:[#allocation6 + $0x8] sm:$0xff]  ;;  %v1822_v1 = vld [vmem:[#allocation6] sm:$0xff]  ;;  %v1816_v52 = vlaneseq }
 0x29f   : > { %s7202_s23 = sld [smem:[#allocation83_spill]]  ;;  %1842 = vmatpush.msra.mxu0 %v1823_v0  ;;  %vm1824_vm0 = vcmask 130048   ;;  %v1913_v4 = vld [vmem:[#allocation8 + $0x168] sm:$0xff]  ;;  %v1914_v5 = vld [vmem:[#allocation8 + $0x170] sm:$0xff]  ;;  %s6023_s3 = smov 64   ;;  %v1915_v6 = vld [vmem:[#allocation8 + $0x178] sm:$0xff] }
 0x2a0   : > { %s1805_s28 = scalar_select %p1804_p3, %s6256_s9, 1  ;;  %1941 = vmatpush.msra.mxu1 %v1913_v4  ;;  %v1910_v7 = vld [vmem:[#allocation8 + $0x150] sm:$0xff]  ;;  %v1911_v8 = vld [vmem:[#allocation8 + $0x158] sm:$0xff]  ;;  %1964 = vmatpush.msra.mxu2 %v1914_v5  ;;  %v1912_v9 = vld [vmem:[#allocation8 + $0x160] sm:$0xff]  ;;  %v6782_v53 = vand.u32 127, %v1816_v52  ;;  %v6784_v54 = vshrl.u32 %v1816_v52, 7 }
 0x2a1   : > { %1843 = vmatpush.msra.mxu0 %v1822_v1  ;;  %1987 = vmatpush.msra.mxu3 %v1915_v6  ;;  %v1907_v10 = vld [vmem:[#allocation8 + $0x138] sm:$0xff]  ;;  %v1908_v11 = vld [vmem:[#allocation8 + $0x140] sm:$0xff]  ;;  %v1909_v12 = vld [vmem:[#allocation8 + $0x148] sm:$0xff]  ;;  %vm1853_vm1 = vcmask 523264   ;;  %vm1855_vm2 = vcmask 719872   ;;  %s7203_s15 = sld [smem:[#allocation85_spill]] }
 0x2a2   : > { %s6775_s0 = sshll.u32 %s1805_s28, 3  ;;  %1942 = vmatpush.msra.mxu1 %v1910_v7  ;;  %1965 = vmatpush.msra.mxu2 %v1911_v8  ;;  %v1904_v13 = vld [vmem:[#allocation8 + $0x120] sm:$0xff]  ;;  %v1905_v14 = vld [vmem:[#allocation8 + $0x128] sm:$0xff]  ;;  %v1906_v15 = vld [vmem:[#allocation8 + $0x130] sm:$0xff]  ;;  %vm1859_vm3 = vcmp.eq.s32.totalorder %v6784_v54, 0  ;;  %vm1860_vm4 = vcmp.eq.s32.totalorder %v6782_v53, 88 }
 0x2a3   : > { %1988 = vmatpush.msra.mxu3 %v1912_v9  ;;  %v1901_v16 = vld [vmem:[#allocation8 + $0x108] sm:$0xff]  ;;  %v1902_v17 = vld [vmem:[#allocation8 + $0x110] sm:$0xff]  ;;  %v1903_v18 = vld [vmem:[#allocation8 + $0x118] sm:$0xff]  ;;  %vm1862_vm5 = vcmp.eq.s32.totalorder %v6784_v54, 1  ;;  %vm1863_vm6 = vcmp.eq.s32.totalorder %v6782_v53, 89  ;;  %v6024_v60 = vmov 1.0  }
 0x2a4   : > { %s1807_s7 = scalar_lea.vmem %s7201_s16, %s6775_s0  ;;  %1943 = vmatpush.msra.mxu1 %v1907_v10  ;;  %1966 = vmatpush.msra.mxu2 %v1908_v11  ;;  %v1898_v19 = vld [vmem:[#allocation8 + $0xf0] sm:$0xff]  ;;  %v1899_v20 = vld [vmem:[#allocation8 + $0xf8] sm:$0xff]  ;;  %v1900_v21 = vld [vmem:[#allocation8 + $0x100] sm:$0xff]  ;;  %vm2077_vm10 = vcmask 1041408   ;;  %vm2047_vm11 = vcmask 80896   ;;  %vm2051_vm12 = vcmask 74752  }
 0x2a5   : > { %s1811_s29 = scalar_lea.vmem %s7202_s23, %s6775_s0  ;;  %v1821_v2 = vld [vmem:[%s1807_s7] sm:$0xff]  ;;  %1989 = vmatpush.msra.mxu3 %v1909_v12  ;;  %v1895_v22 = vld [vmem:[#allocation8 + $0xd8] sm:$0xff]  ;;  %v1896_v23 = vld [vmem:[#allocation8 + $0xe0] sm:$0xff]  ;;  %vm1818_vm13 = vcmp.lt.s32.totalorder %v6782_v53, 90  ;;  %s2530_s4 = smul.u32 5, %s6256_s9 }
 0x2a6   : > { %v1848_v3 = vld [vmem:[%s1811_s29] sm:$0xff]  ;;  %4315 = vmatmul.msk.f32.vlgmr.msra.gmra.mxu0 %vm1824_vm0, %v1821_v2  ;;  %1944 = vmatpush.msra.mxu1 %v1904_v13  ;;  %v1897_v24 = vld [vmem:[#allocation8 + $0xe8] sm:$0xff]  ;;  %v1892_v25 = vld [vmem:[#allocation8 + $0xc0] sm:$0xff] }
 0x2a7   : > { %1850 = vrot.lane.b32.xlu0 %v1848_v3, %s6023_s3  ;;  %1967 = vmatpush.msra.mxu2 %v1905_v14  ;;  %v1893_v26 = vld [vmem:[#allocation8 + $0xc8] sm:$0xff]  ;;  %v1894_v27 = vld [vmem:[#allocation8 + $0xd0] sm:$0xff]  ;;  %v1891_v30 = vld [vmem:[#allocation8 + $0xb8] sm:$0xff]  ;;  %s2536_s18 = sadd.s32 1, %s2530_s4  ;;  %s6898_s1 = sld [smem:[#allocation4 + %s2530_s4]] }
 0x2a8   : > { %1990 = vmatpush.msra.mxu3 %v1906_v15  ;;  %1945 = vmatpush.msra.mxu1 %v1901_v16  ;;  %v1889_v28 = vld [vmem:[#allocation8 + $0xa8] sm:$0xff]  ;;  %v1890_v29 = vld [vmem:[#allocation8 + $0xb0] sm:$0xff]  ;;  %v1887_v32 = vld [vmem:[#allocation8 + $0x98] sm:$0xff]  ;;  %s2542_s6 = sadd.s32 2, %s2530_s4  ;;  %s6900_s11 = sld [smem:[#allocation4 + %s2536_s18]] }
 0x2a9   : > { %1968 = vmatpush.msra.mxu2 %v1902_v17  ;;  %v1886_v31 = vld [vmem:[#allocation8 + $0x90] sm:$0xff]  ;;  %v1888_v33 = vld [vmem:[#allocation8 + $0xa0] sm:$0xff]  ;;  %v1883_v34 = vld [vmem:[#allocation8 + $0x78] sm:$0xff]  ;;  %s6904_s16 = sld [smem:[#allocation4 + %s2542_s6]]  ;;  %s2548_s23 = sadd.s32 3, %s2530_s4 }
 0x2aa   : > { %1991 = vmatpush.msra.mxu3 %v1903_v18  ;;  %1946 = vmatpush.msra.mxu1 %v1898_v19  ;;  %v1884_v35 = vld [vmem:[#allocation8 + $0x80] sm:$0xff]  ;;  %v1885_v36 = vld [vmem:[#allocation8 + $0x88] sm:$0xff]  ;;  %v1882_v39 = vld [vmem:[#allocation8 + $0x70] sm:$0xff]  ;;  %s6907_s28 = sld [smem:[#allocation4 + %s2548_s23]]  ;;  %s2554_s7 = sadd.s32 4, %s2530_s4 }
 0x2ab   : > { %1969 = vmatpush.msra.mxu2 %v1899_v20  ;;  %v1880_v37 = vld [vmem:[#allocation8 + $0x60] sm:$0xff]  ;;  %v1881_v38 = vld [vmem:[#allocation8 + $0x68] sm:$0xff]  ;;  %v1878_v41 = vld [vmem:[#allocation8 + $0x50] sm:$0xff]  ;;  %s6911_s29 = sld [smem:[#allocation4 + %s2554_s7]] }
 0x2ac   : > { %1992 = vmatpush.msra.mxu3 %v1900_v21  ;;  %1947 = vmatpush.msra.mxu1 %v1895_v22  ;;  %v1877_v40 = vld [vmem:[#allocation8 + $0x48] sm:$0xff]  ;;  %v1879_v42 = vld [vmem:[#allocation8 + $0x58] sm:$0xff]  ;;  %v1874_v43 = vld [vmem:[#allocation8 + $0x30] sm:$0xff]  ;;  %s2695_s4 = sld [smem:[#allocation5 + %s6256_s9]] }
 0x2ad   : > { %1970 = vmatpush.msra.mxu2 %v1896_v23  ;;  %v1875_v44 = vld [vmem:[#allocation8 + $0x38] sm:$0xff]  ;;  %v1876_v45 = vld [vmem:[#allocation8 + $0x40] sm:$0xff]  ;;  %v1873_v48 = vld [vmem:[#allocation8 + $0x28] sm:$0xff] }
 0x2ae   : > { %1993 = vmatpush.msra.mxu3 %v1897_v24  ;;  %1948 = vmatpush.msra.mxu1 %v1892_v25  ;;  %v1871_v46 = vld [vmem:[#allocation8 + $0x18] sm:$0xff]  ;;  %v1872_v47 = vld [vmem:[#allocation8 + $0x20] sm:$0xff]  ;;  %v1869_v50 = vld [vmem:[#allocation8 + $0x8] sm:$0xff] }
 0x2af   : > { %1971 = vmatpush.msra.mxu2 %v1893_v26  ;;  %v1868_v49 = vld [vmem:[#allocation8] sm:$0xff]  ;;  %v1870_v51 = vld [vmem:[#allocation8 + $0x10] sm:$0xff]  ;;  %vm1861_vm7 = vmand %vm1859_vm3, %vm1860_vm4 }
 0x2b0   : > { %1994 = vmatpush.msra.mxu3 %v1894_v27  ;;  %1949 = vmatpush.msra.mxu1 %v1889_v28  ;;  %vm1864_vm8 = vmand %vm1862_vm5, %vm1863_vm6  ;;  %v1916_v63 = vld [vmem:[%s7203_s15] sm:$0x7]  ;;  %v2330_v59 = vld [vmem:[#allocation16 + $0xf0] sm:$0xff]  ;;  %s6957_s15 = sld [smem:[#allocation3 + %s6256_s9]] }
 0x2b1   : > { %1972 = vmatpush.msra.mxu2 %v1890_v29  ;;  %vm6793_vm9 = vmor %vm1861_vm7, %vm1864_vm8  ;;  %v1936_v0 = vperm.slane %v1916_v63, 1  ;;  %v1937_v1 = vperm.slane %v1916_v63, 2  ;;  %v1935_v7 = vperm.slane %v1916_v63, 0  ;;  %s7212_s9 = sld [smem:[#allocation113_spill]] }
 0x2b2   : > { %1995 = vmatpush.msra.mxu3 %v1891_v30  ;;  %1950 = vmatpush.msra.mxu1 %v1886_v31 }
 0x2b3   : > { %1973 = vmatpush.msra.mxu2 %v1887_v32 }
 0x2b4   : > { %1996 = vmatpush.msra.mxu3 %v1888_v33  ;;  %1951 = vmatpush.msra.mxu1 %v1883_v34 }
 0x2b5   : > { %1974 = vmatpush.msra.mxu2 %v1884_v35 }
 0x2b6   : > { %1997 = vmatpush.msra.mxu3 %v1885_v36  ;;  %1952 = vmatpush.msra.mxu1 %v1880_v37 }
 0x2b7   : > { %1975 = vmatpush.msra.mxu2 %v1881_v38 }
 0x2b8   : > { %1998 = vmatpush.msra.mxu3 %v1882_v39  ;;  %1953 = vmatpush.msra.mxu1 %v1877_v40 }
 0x2b9   : > { %1976 = vmatpush.msra.mxu2 %v1878_v41 }
 0x2ba   : > { %1999 = vmatpush.msra.mxu3 %v1879_v42  ;;  %1954 = vmatpush.msra.mxu1 %v1874_v43 }
 0x2bb   : > { %1977 = vmatpush.msra.mxu2 %v1875_v44 }
 0x2bc   : > { %2000 = vmatpush.msra.mxu3 %v1876_v45  ;;  %1955 = vmatpush.msra.mxu1 %v1871_v46 }
 0x2bd   : > { %1978 = vmatpush.msra.mxu2 %v1872_v47 }
 0x2be   : > { %2001 = vmatpush.msra.mxu3 %v1873_v48  ;;  %1956 = vmatpush.msra.mxu1 %v1868_v49 }
 0x2bf   : > { %1979 = vmatpush.msra.mxu2 %v1869_v50 }
 0x2c0   : > { %2002 = vmatpush.msra.mxu3 %v1870_v51 }
 0x319   : > { %v1851_v55 = vpop.permute.xlu0 %1850 }
 0x323   : > { %v1845_v56 = vpop.f32.mrf.mxu0 }
 0x324   : > { %v1854_v57 = vsel %vm1853_vm1, %v1845_v56, %v1851_v55 }
 0x325   : > { %4317 = vmatmul.msk.f32.vlgmr.msra.gmra.mxu1 %vm1855_vm2, %v1854_v57  ;;  %4319 = vmatmul.msk.f32.vlgmr.msra.gmra.mxu2 %vm1855_vm2, %v1854_v57  ;;  %v6791_v58 = vsel %vm1855_vm2, %v1854_v57, 0.0 }
 0x326   : > { %4321 = vmatmul.msk.f32.vlgmr.msra.gmra.mxu3 %vm1855_vm2, %v1854_v57 }
 0x32d   : > { %4320 = vmatmul.msk.f32.gmra.mxu2 %vm6793_vm9, %v6024_v60  ;;  %4318 = vmatmul.msk.f32.gmra.mxu1 %vm6793_vm9, %v6024_v60 }
 0x32e   : > { %4322 = vmatmul.msk.f32.gmra.mxu3 %vm6793_vm9, %v6024_v60 }
 0x3a2   : > { %v1958_v6 = vpop.f32.mrf.mxu1 }
 0x3a3   : > { %v1959_v10 = vadd.f32 %v1958_v6, %v1935_v7  ;;  %v1931_v6 = vld [vmem:[#allocation10 + $0x70] sm:$0xff] }
 0x3a8   : > { %v1981_v61 = vpop.f32.mrf.mxu2 }
 0x3a9   : > { %v2004_v62 = vpop.f32.mrf.mxu3  ;;  %v1982_v9 = vadd.f32 %v1981_v61, %v1936_v0 }
 0x3aa   : > { %v6806_v8 = vadd.f32 %v2004_v62, %v1937_v1  ;;  %v1961_v11 = vpop.f32.mrf.mxu1 }
 0x3ab   : > { %v1962_v12 = vadd.f32 %v1961_v11, %v1935_v7  ;;  %v1930_v7 = vld [vmem:[#allocation10 + $0x68] sm:$0xff] }
 0x3ac   : > { %v1926_v11 = vld [vmem:[#allocation10 + $0x48] sm:$0xff] }
 0x3b0   : > { %v1984_v2 = vpop.f32.mrf.mxu2 }
 0x3b1   : > { %v1985_v3 = vadd.f32 %v1984_v2, %v1936_v0  ;;  %v2007_v4 = vpop.f32.mrf.mxu3 }
 0x3b2   : > { %v2008_v5 = vadd.f32 %v2007_v4, %v1937_v1 }
 0x3b3   : > { %2110 = vrot.lane.b32.xlu2 %v1985_v3, %s6023_s3  ;;  %4323 = vmatpush.xpose.msk.msrb.mxu3 %vm1853_vm1, %v1985_v3 }
 0x3b4   : > { %4327 = vmatpush.msk.msrb.mxu0 %vm2077_vm10, %v2008_v5 }
 0x3b6   : > { %2096 = vmatpush.msrb.mxu0 %v6806_v8 }
 0x3b7   : > { %4324 = vmatpush.xpose.msk.msrb.mxu3 %vm1853_vm1, %v1982_v9 }
 0x3ba   : > { %4325 = vmatmul.msk.f32.vlgmr.msrb.gmra.mxu3 %vm1853_vm1, %v1959_v10 }
 0x3bb   : > { %2104 = vrot.lane.b32.xlu2 %v1959_v10, %s6023_s3  ;;  %v1927_v10 = vld [vmem:[#allocation10 + $0x50] sm:$0xff]  ;;  %2371 = vmatpush.msra.mxu3 %v2330_v59 }
 0x3c2   : > { %4326 = vmatmul.msk.f32.gmra.mxu3 %vm1853_vm1, %v1962_v12 }
 0x40d   : > { %v2111_v13 = vpop.permute.xlu2 %2110 }
 0x40e   : > { %4330 = vmatpush.xpose.msk.msra.mxu0 %vm1853_vm1, %v2111_v13  ;;  %v1924_v13 = vld [vmem:[#allocation10 + $0x38] sm:$0xff] }
 0x415   : > { %v2105_v31 = vpop.permute.xlu2 %2104 }
 0x43d   : > { %v2039_v14 = vpop.f32.mrf.mxu3 }
 0x43e   : > { %v2045_v15 = vmul.f32 0.1490712, %v2039_v14  ;;  %v1923_v14 = vld [vmem:[#allocation10 + $0x30] sm:$0xff] }
 0x440   : > { %v2048_v16 = vsel %vm2047_vm11, %v2045_v15, -inf }
 0x441   : > { %2049 = vmax.xlane.f32.xlu0 %v2048_v16  ;;  %v1921_v16 = vld [vmem:[#allocation10 + $0x20] sm:$0xff] }
 0x445   : > { %v2042_v17 = vpop.f32.mrf.mxu3 }
 0x446   : > { %v2046_v18 = vmul.f32 0.1490712, %v2042_v17  ;;  %v1920_v17 = vld [vmem:[#allocation10 + $0x18] sm:$0xff] }
 0x448   : > { %v2052_v19 = vsel %vm2051_vm12, %v2046_v18, -inf }
 0x449   : > { %2053 = vmax.xlane.f32.xlu1 %v2052_v19  ;;  %v1919_v19 = vld [vmem:[#allocation10 + $0x10] sm:$0xff] }
 0x455   : > { %2170 = vrot.lane.b32.xlu0 %v2008_v5, %s6023_s3  ;;  %v1932_v5 = vld [vmem:[#allocation10 + $0x78] sm:$0xff] }
 0x456   : > { %2217 = vmatpush.msrb.mxu2 %v1932_v5  ;;  %v2314_v5 = vld [vmem:[#allocation16 + $0x70] sm:$0xff] }
 0x458   : > { %2218 = vmatpush.msrb.mxu2 %v1931_v6  ;;  %v2315_v6 = vld [vmem:[#allocation16 + $0x78] sm:$0xff] }
 0x45a   : > { %2219 = vmatpush.msrb.mxu2 %v1930_v7  ;;  %v2312_v7 = vld [vmem:[#allocation16 + $0x60] sm:$0xff] }
 0x4b4   : > { %v2050_v20 = vpop.xlane.xlu0 %2049 }
 0x4b5   : > { %v2055_v21 = vsub.f32 %v2045_v15, %v2050_v20  ;;  %v1922_v15 = vld [vmem:[#allocation10 + $0x28] sm:$0xff] }
 0x4b6   : > { %v1918_v20 = vld [vmem:[#allocation10 + $0x8] sm:$0xff] }
 0x4b7   : > { %v2057_v22 = vmul.f32 1.442695, %v2055_v21 }
 0x4b9   : > { %4706 = vpow2.f32 %v2057_v22  ;;  %v1917_v22 = vld [vmem:[#allocation10] sm:$0xff] }
 0x4bc   : > { %v2054_v23 = vpop.xlane.xlu1 %2053 }
 0x4bd   : > { %v2056_v24 = vsub.f32 %v2046_v18, %v2054_v23 }
 0x4bf   : > { %v4707_v25 = vpop.eup %4706  ;;  %v2059_v26 = vmul.f32 1.442695, %v2056_v24 }
 0x4c0   : > { %v2061_v27 = vsel %vm2047_vm11, %v4707_v25, 0.0 }
 0x4c1   : > { %4708 = vpow2.f32 %v2059_v26  ;;  %2062 = vadd.xlane.f32.xlu1 %v2061_v27  ;;  %v4689_v27 = vld [vmem:[#allocation11] ss:$0 sm:$0xff] }
 0x4c7   : > { %v4709_v28 = vpop.eup %4708  ;;  %v2171_v29 = vpop.permute.xlu0 %2170 }
 0x4c8   : > { %4334 = vmatpush.msk.msrb.mxu1 %vm2077_vm10, %v2171_v29  ;;  %v2064_v30 = vsel %vm2051_vm12, %v4709_v28, 0.0 }
 0x4c9   : > { %2065 = vadd.xlane.f32.xlu2 %v2064_v30  ;;  %v6025_v30 = vmov 0.0  }
 0x4da   : > { %2108 = vrot.lane.b32.xlu1 %v1982_v9, %s6023_s3  ;;  %v1928_v9 = vld [vmem:[#allocation10 + $0x58] sm:$0xff] }
 0x4e1   : > { %2106 = vrot.lane.b32.xlu2 %v1962_v12, %s6023_s3  ;;  %v1925_v12 = vld [vmem:[#allocation10 + $0x40] sm:$0xff] }
 0x534   : > { %v2063_v32 = vpop.xlane.xlu1 %2062 }
 0x535   : > { %4710 = vrcp.f32 %v2063_v32 }
 0x53b   : > { %v4711_v33 = vpop.eup %4710 }
 0x53c   : > { %v2066_v34 = vpop.xlane.xlu2 %2065  ;;  %v2069_v35 = vmul.f32 %v4711_v33, %v4707_v25 }
 0x53d   : > { %4712 = vrcp.f32 %v2066_v34  ;;  %v4316_v34 = vsel %vm6793_vm9, 1.0, %v6025_v30 }
 0x53e   : > { %4328 = vmatmul.msk.f32.vlgmr.msrb.gmra.mxu0 %vm2047_vm11, %v2069_v35 }
 0x543   : > { %v4713_v36 = vpop.eup %4712 }
 0x544   : > { %v2070_v37 = vmul.f32 %v4713_v36, %v4709_v28  ;;  %v2107_v39 = vpop.permute.xlu2 %2106 }
 0x546   : > { %4329 = vmatmul.msk.f32.gmra.mxu0 %vm2047_vm11, %v2070_v37 }
 0x54c   : > { %v2109_v38 = vpop.permute.xlu1 %2108 }
 0x54d   : > { %4331 = vmatpush.xpose.msk.msra.mxu0 %vm1853_vm1, %v2109_v38 }
 0x550   : > { %4332 = vmatmul.msk.f32.vlgmr.msra.gmra.mxu0 %vm1853_vm1, %v2105_v31  ;;  %v6848_v31 = vsel %vm1818_vm13, 1.0, %v6025_v30  ;;  %vm2560_vm13 = vcmask 1040384  }
 0x558   : > { %4333 = vmatmul.msk.f32.gmra.mxu0 %vm1853_vm1, %v2107_v39 }
 0x5bb   : > { %v6828_v40 = vpop.f32.mrf.mxu0 }
 0x5c3   : > { %v6830_v41 = vpop.f32.mrf.mxu0 }
 0x5cd   : > { %v2137_v42 = vpop.f32.mrf.mxu0 }
 0x5ce   : > { %v2143_v43 = vmul.f32 0.1490712, %v2137_v42 }
 0x5d0   : > { %v2145_v44 = vsel %vm2047_vm11, %v2143_v43, -inf }
 0x5d1   : > { %2146 = vmax.xlane.f32.xlu1 %v2145_v44  ;;  %v2331_v44 = vld [vmem:[#allocation16 + $0xf8] sm:$0xff] }
 0x5d2   : > { %2394 = vmatpush.msrb.mxu0 %v2331_v44  ;;  %v2361_v44 = vld [vmem:[#allocation19 + $0xe0] sm:$0xff] }
 0x5d5   : > { %v2140_v45 = vpop.f32.mrf.mxu0 }
 0x5d6   : > { %v2144_v46 = vmul.f32 0.1490712, %v2140_v45  ;;  %v2328_v45 = vld [vmem:[#allocation16 + $0xe0] sm:$0xff] }
 0x5d7   : > { %2372 = vmatpush.msra.mxu3 %v2328_v45  ;;  %v2345_v45 = vld [vmem:[#allocation19 + $0x60] sm:$0xff] }
 0x5d8   : > { %v2148_v47 = vsel %vm2051_vm12, %v2144_v46, -inf }
 0x5d9   : > { %2149 = vmax.xlane.f32.xlu2 %v2148_v47 }
 0x5ea   : > { %2168 = vrot.lane.b32.xlu1 %v6806_v8, %s6023_s3  ;;  %v1929_v8 = vld [vmem:[#allocation10 + $0x60] sm:$0xff] }
 0x5eb   : > { %2220 = vmatpush.msrb.mxu2 %v1929_v8  ;;  %v2313_v8 = vld [vmem:[#allocation16 + $0x68] sm:$0xff] }
 0x5ed   : > { %2221 = vmatpush.msrb.mxu2 %v1928_v9  ;;  %v2310_v9 = vld [vmem:[#allocation16 + $0x50] sm:$0xff] }
 0x5ef   : > { %2222 = vmatpush.msrb.mxu2 %v1927_v10  ;;  %v2311_v10 = vld [vmem:[#allocation16 + $0x58] sm:$0xff] }
 0x5f1   : > { %2223 = vmatpush.msrb.mxu2 %v1926_v11  ;;  %v2308_v11 = vld [vmem:[#allocation16 + $0x40] sm:$0xff] }
 0x5f3   : > { %2224 = vmatpush.msrb.mxu2 %v1925_v12  ;;  %v2309_v12 = vld [vmem:[#allocation16 + $0x48] sm:$0xff] }
 0x5f5   : > { %2225 = vmatpush.msrb.mxu2 %v1924_v13  ;;  %v2306_v13 = vld [vmem:[#allocation16 + $0x30] sm:$0xff] }
 0x5f7   : > { %2226 = vmatpush.msrb.mxu2 %v1923_v14  ;;  %v2307_v14 = vld [vmem:[#allocation16 + $0x38] sm:$0xff] }
 0x5f9   : > { %2227 = vmatpush.msrb.mxu2 %v1922_v15  ;;  %v2304_v15 = vld [vmem:[#allocation16 + $0x20] sm:$0xff] }
 0x5fb   : > { %2228 = vmatpush.msrb.mxu2 %v1921_v16  ;;  %v2305_v16 = vld [vmem:[#allocation16 + $0x28] sm:$0xff] }
 0x5fd   : > { %2229 = vmatpush.msrb.mxu2 %v1920_v17  ;;  %v2302_v17 = vld [vmem:[#allocation16 + $0x10] sm:$0xff] }
 0x5ff   : > { %2230 = vmatpush.msrb.mxu2 %v1919_v19  ;;  %v2300_v19 = vld [vmem:[#allocation16] sm:$0xff] }
 0x601   : > { %2231 = vmatpush.msrb.mxu2 %v1918_v20  ;;  %v2301_v20 = vld [vmem:[#allocation16 + $0x8] sm:$0xff] }
 0x603   : > { %2232 = vmatpush.msrb.mxu2 %v1917_v22 }
 0x644   : > { %v2147_v48 = vpop.xlane.xlu1 %2146 }
 0x645   : > { %v2151_v49 = vsub.f32 %v2143_v43, %v2147_v48 }
 0x647   : > { %v2153_v50 = vmul.f32 1.442695, %v2151_v49 }
 0x649   : > { %4714 = vpow2.f32 %v2153_v50 }
 0x64c   : > { %v2150_v51 = vpop.xlane.xlu2 %2149 }
 0x64d   : > { %v2152_v52 = vsub.f32 %v2144_v46, %v2150_v51  ;;  %v2329_v46 = vld [vmem:[#allocation16 + $0xe8] sm:$0xff] }
 0x64e   : > { %2395 = vmatpush.msrb.mxu0 %v2329_v46 }
 0x64f   : > { %v4715_v55 = vpop.eup %4714  ;;  %v2155_v56 = vmul.f32 1.442695, %v2152_v52 }
 0x650   : > { %v2157_v57 = vsel %vm2047_vm11, %v4715_v55, 0.0 }
 0x651   : > { %4716 = vpow2.f32 %v2155_v56  ;;  %2158 = vadd.xlane.f32.xlu0 %v2157_v57  ;;  %v2327_v56 = vld [vmem:[#allocation16 + $0xd8] sm:$0xff]  ;;  %v2324_v57 = vld [vmem:[#allocation16 + $0xc0] sm:$0xff] }
 0x652   : > { %2396 = vmatpush.msrb.mxu0 %v2327_v56  ;;  %v2357_v56 = vld [vmem:[#allocation19 + $0xc0] sm:$0xff] }
 0x657   : > { %v4717_v60 = vpop.eup %4716 }
 0x658   : > { %v2160_v61 = vsel %vm2051_vm12, %v4717_v60, 0.0 }
 0x659   : > { %2161 = vadd.xlane.f32.xlu0 %v2160_v61  ;;  %v2322_v61 = vld [vmem:[#allocation16 + $0xb0] sm:$0xff] }
 0x65c   : > { %v2169_v62 = vpop.permute.xlu1 %2168 }
 0x65d   : > { %2196 = vmatpush.msrb.mxu1 %v2169_v62  ;;  %v2323_v62 = vld [vmem:[#allocation16 + $0xb8] sm:$0xff] }
 0x6c4   : > { %v2159_v63 = vpop.xlane.xlu0 %2158 }
 0x6c5   : > { %4718 = vrcp.f32 %v2159_v63  ;;  %v2320_v63 = vld [vmem:[#allocation16 + $0xa0] sm:$0xff] }
 0x6cb   : > { %v4719_v0 = vpop.eup %4718 }
 0x6cc   : > { %v2162_v1 = vpop.xlane.xlu0 %2161  ;;  %v2165_v2 = vmul.f32 %v4719_v0, %v4715_v55  ;;  %v2326_v55 = vld [vmem:[#allocation16 + $0xd0] sm:$0xff]  ;;  %v2321_v0 = vld [vmem:[#allocation16 + $0xa8] sm:$0xff] }
 0x6cd   : > { %4720 = vrcp.f32 %v2162_v1  ;;  %2373 = vmatpush.msra.mxu3 %v2326_v55  ;;  %v2318_v1 = vld [vmem:[#allocation16 + $0x90] sm:$0xff] }
 0x6ce   : > { %4335 = vmatmul.msk.f32.vlgmr.msrb.gmra.mxu1 %vm2047_vm11, %v2165_v2  ;;  %v2319_v2 = vld [vmem:[#allocation16 + $0x98] sm:$0xff]  ;;  %v2342_v55 = vld [vmem:[#allocation19 + $0x48] sm:$0xff] }
 0x6cf   : > { %2374 = vmatpush.msra.mxu3 %v2324_v57  ;;  %v2341_v57 = vld [vmem:[#allocation19 + $0x40] sm:$0xff] }
 0x6d1   : > { %2375 = vmatpush.msra.mxu3 %v2322_v61  ;;  %v2356_v61 = vld [vmem:[#allocation19 + $0xb8] sm:$0xff] }
 0x6d3   : > { %v4721_v3 = vpop.eup %4720  ;;  %2376 = vmatpush.msra.mxu3 %v2320_v63  ;;  %v2340_v63 = vld [vmem:[#allocation19 + $0x38] sm:$0xff] }
 0x6d4   : > { %v2166_v4 = vmul.f32 %v4721_v3, %v4717_v60  ;;  %v2325_v60 = vld [vmem:[#allocation16 + $0xc8] sm:$0xff]  ;;  %v2316_v3 = vld [vmem:[#allocation16 + $0x80] sm:$0xff] }
 0x6d5   : > { %2397 = vmatpush.msrb.mxu0 %v2325_v60  ;;  %2377 = vmatpush.msra.mxu3 %v2318_v1 }
 0x6d6   : > { %4336 = vmatmul.msk.f32.gmra.mxu1 %vm2047_vm11, %v2166_v4  ;;  %v2317_v4 = vld [vmem:[#allocation16 + $0x88] sm:$0xff] }
 0x6d7   : > { %2398 = vmatpush.msrb.mxu0 %v2323_v62  ;;  %2378 = vmatpush.msra.mxu3 %v2316_v3  ;;  %v2354_v3 = vld [vmem:[#allocation19 + $0xa8] sm:$0xff] }
 0x6d9   : > { %2399 = vmatpush.msrb.mxu0 %v2321_v0  ;;  %2379 = vmatpush.msra.mxu3 %v2314_v5  ;;  %v2355_v0 = vld [vmem:[#allocation19 + $0xb0] sm:$0xff]  ;;  %v2353_v5 = vld [vmem:[#allocation19 + $0xa0] sm:$0xff] }
 0x6db   : > { %2400 = vmatpush.msrb.mxu0 %v2319_v2  ;;  %2380 = vmatpush.msra.mxu3 %v2312_v7  ;;  %v2339_v2 = vld [vmem:[#allocation19 + $0x30] sm:$0xff]  ;;  %v2352_v7 = vld [vmem:[#allocation19 + $0x98] sm:$0xff] }
 0x6dd   : > { %2401 = vmatpush.msrb.mxu0 %v2317_v4  ;;  %2381 = vmatpush.msra.mxu3 %v2310_v9 }
 0x6df   : > { %2402 = vmatpush.msrb.mxu0 %v2315_v6  ;;  %2382 = vmatpush.msra.mxu3 %v2308_v11 }
 0x6e1   : > { %2403 = vmatpush.msrb.mxu0 %v2313_v8  ;;  %2383 = vmatpush.msra.mxu3 %v2306_v13  ;;  %v2338_v13 = vld [vmem:[#allocation19 + $0x28] sm:$0xff] }
 0x6e3   : > { %2404 = vmatpush.msrb.mxu0 %v2311_v10  ;;  %2384 = vmatpush.msra.mxu3 %v2304_v15  ;;  %v2337_v15 = vld [vmem:[#allocation19 + $0x20] sm:$0xff] }
 0x6e5   : > { %2405 = vmatpush.msrb.mxu0 %v2309_v12  ;;  %2385 = vmatpush.msra.mxu3 %v2302_v17  ;;  %v2336_v17 = vld [vmem:[#allocation19 + $0x18] sm:$0xff] }
 0x6e7   : > { %2406 = vmatpush.msrb.mxu0 %v2307_v14  ;;  %2386 = vmatpush.msra.mxu3 %v2300_v19  ;;  %v2351_v14 = vld [vmem:[#allocation19 + $0x90] sm:$0xff] }
 0x6e8   : > { %v2335_v19 = vld [vmem:[#allocation19 + $0x10] sm:$0xff] }
 0x6e9   : > { %2407 = vmatpush.msrb.mxu0 %v2305_v16  ;;  %v2350_v16 = vld [vmem:[#allocation19 + $0x88] sm:$0xff] }
 0x74b   : > { %v2198_v18 = vpop.f32.mrf.mxu1 }
 0x74c   : > { %2206 = vrot.lane.b32.xlu2 %v2198_v18, %s6023_s3  ;;  %v2303_v18 = vld [vmem:[#allocation16 + $0x18] sm:$0xff] }
 0x74d   : > { %2408 = vmatpush.msrb.mxu0 %v2303_v18  ;;  %v2349_v18 = vld [vmem:[#allocation19 + $0x80] sm:$0xff] }
 0x74f   : > { %2409 = vmatpush.msrb.mxu0 %v2301_v20  ;;  %v2333_v20 = vld [vmem:[#allocation19] sm:$0xff] }
 0x753   : > { %v2201_v21 = vpop.f32.mrf.mxu1 }
 0x754   : > { %2208 = vrot.lane.b32.xlu1 %v2201_v21, %s6023_s3 }
 0x7a6   : > { %v2207_v23 = vpop.permute.xlu2 %2206 }
 0x7a7   : > { %v2212_v24 = vsel %vm1853_vm1, %v6828_v40, %v2207_v23 }
 0x7a8   : > { %2233 = vmatmul.f32.vlgmr.msrb.gmra.mxu2 %v2212_v24 }
 0x7c6   : > { %v2209_v25 = vpop.permute.xlu1 %2208 }
 0x7c7   : > { %v2213_v26 = vsel %vm1853_vm1, %v6830_v41, %v2209_v25 }
 0x7c8   : > { %2236 = vmatmul.f32.gmra.mxu2 %v2213_v26 }
 0x82b   : > { %v2234_v28 = vpop.f32.mrf.mxu2 }
 0x82c   : > { %v2235_v29 = vadd.f32 %v4689_v27, %v2234_v28 }
 0x82e   : > { %v2240_v32 = vadd.f32 %v2235_v29, %v6791_v58 }
 0x830   : > { %v2244_v33 = vmul.f32 %v6848_v31, %v2240_v32 }
 0x832   : > { %2246 = vadd.xlane.f32.xlu2 %v2244_v33 }
 0x84b   : > { %v2237_v35 = vpop.f32.mrf.mxu2 }
 0x84c   : > { %v2238_v36 = vadd.f32 %v4689_v27, %v2237_v35  ;;  %v6871_v35 = vld [vmem:[#allocation14] ss:$0 sm:$0xff] }
 0x84e   : > { %v2241_v37 = vadd.f32 %v4316_v34, %v2238_v36 }
 0x850   : > { %v2245_v38 = vmul.f32 %v6848_v31, %v2241_v37 }
 0x852   : > { %v2248_v39 = vsel %vm2077_vm10, %v2245_v38, 0.0  ;;  %v2364_v38 = vld [vmem:[#allocation19 + $0xf8] sm:$0xff] }
 0x853   : > { %2249 = vadd.xlane.f32.xlu1 %v2248_v39  ;;  %v2363_v39 = vld [vmem:[#allocation19 + $0xf0] sm:$0xff]  ;;  %2447 = vmatpush.msra.mxu2 %v2364_v38 }
 0x855   : > { %2448 = vmatpush.msra.mxu2 %v2363_v39 }
 0x8a5   : > { %v2247_v40 = vpop.xlane.xlu2 %2246 }
 0x8a6   : > { %v2251_v41 = vmul.f32 0.011111111, %v2247_v40  ;;  %v2348_v40 = vld [vmem:[#allocation19 + $0x78] sm:$0xff] }
 0x8a7   : > { %2424 = vmatpush.msra.mxu1 %v2348_v40 }
 0x8a8   : > { %v2253_v42 = vsub.f32 %v2240_v32, %v2251_v41  ;;  %v6868_v32 = vld [vmem:[#allocation13] ss:$0 sm:$0xff]  ;;  %v2347_v41 = vld [vmem:[#allocation19 + $0x70] sm:$0xff] }
 0x8a9   : > { %2425 = vmatpush.msra.mxu1 %v2347_v41  ;;  %v4692_v41 = vld [vmem:[#allocation20] ss:$0 sm:$0xff] }
 0x8aa   : > { %v6858_v58 = vmul.f32 %v6848_v31, %v2253_v42  ;;  %v2362_v42 = vld [vmem:[#allocation19 + $0xe8] sm:$0xff] }
 0x8ab   : > { %2449 = vmatpush.msra.mxu2 %v2362_v42 }
 0x8ac   : > { %v2257_v43 = vmul.f32 %v6858_v58, %v6858_v58 }
 0x8ad   : > { %2450 = vmatpush.msra.mxu2 %v2361_v44 }
 0x8ae   : > { %2259 = vadd.xlane.f32.xlu0 %v2257_v43 }
 0x8c6   : > { %v2250_v47 = vpop.xlane.xlu1 %2249 }
 0x8c7   : > { %v2252_v48 = vmul.f32 0.011111111, %v2250_v47  ;;  %v2360_v47 = vld [vmem:[#allocation19 + $0xd8] sm:$0xff] }
 0x8c8   : > { %2451 = vmatpush.msra.mxu2 %v2360_v47 }
 0x8c9   : > { %v2254_v49 = vsub.f32 %v2241_v37, %v2252_v48  ;;  %v2344_v48 = vld [vmem:[#allocation19 + $0x58] sm:$0xff] }
 0x8cb   : > { %v6863_v50 = vmul.f32 %v6848_v31, %v2254_v49  ;;  %v2359_v49 = vld [vmem:[#allocation19 + $0xd0] sm:$0xff] }
 0x8cc   : > { %2452 = vmatpush.msra.mxu2 %v2359_v49 }
 0x8cd   : > { %v2258_v51 = vmul.f32 %v6863_v50, %v6863_v50 }
 0x8cf   : > { %v2261_v52 = vsel %vm2077_vm10, %v2258_v51, 0.0  ;;  %v2343_v51 = vld [vmem:[#allocation19 + $0x50] sm:$0xff] }
 0x8d0   : > { %2262 = vadd.xlane.f32.xlu0 %v2261_v52  ;;  %v2358_v52 = vld [vmem:[#allocation19 + $0xc8] sm:$0xff] }
 0x8d1   : > { %2453 = vmatpush.msra.mxu2 %v2358_v52 }
 0x8d3   : > { %2454 = vmatpush.msra.mxu2 %v2357_v56 }
 0x8d5   : > { %2455 = vmatpush.msra.mxu2 %v2356_v61 }
 0x8d7   : > { %2456 = vmatpush.msra.mxu2 %v2355_v0 }
 0x8d9   : > { %2457 = vmatpush.msra.mxu2 %v2354_v3 }
 0x8db   : > { %2458 = vmatpush.msra.mxu2 %v2353_v5 }
 0x8dd   : > { %2459 = vmatpush.msra.mxu2 %v2352_v7 }
 0x8df   : > { %2460 = vmatpush.msra.mxu2 %v2351_v14  ;;  %v2651_v14 = vld [vmem:[#allocation26 + $0x70] sm:$0xff] }
 0x8e1   : > { %2461 = vmatpush.msra.mxu2 %v2350_v16 }
 0x8e3   : > { %2462 = vmatpush.msra.mxu2 %v2349_v18  ;;  %v2538_v18 = vstv %s6900_s11 }
 0x8e4   : > { %vm6924_vm7 = vcmp.eq.s32.totalorder %v6782_v53, %v2538_v18  ;;  %v2639_v18 = vld [vmem:[#allocation26 + $0x10] sm:$0xff] }
 0x921   : > { %v2260_v21 = vpop.xlane.xlu0 %2259 }
 0x922   : > { %v2264_v22 = vmul.f32 0.011111111, %v2260_v21  ;;  %v2332_v21 = vld [vmem:[#allocation17] sm:$0x3] }
 0x924   : > { %v2266_v23 = vadd.f32 1e-05, %v2264_v22  ;;  %v2368_v22 = vperm.slane %v2332_v21, 1 }
 0x926   : > { %4722 = vrsqrt.f32 %v2266_v23  ;;  %vm2274_vm15 = vweird.f32 %v2266_v23 }
 0x92c   : > { %v4723_v24 = vpop.eup %4722 }
 0x92d   : > { %v2269_v25 = vmul.f32 %v4723_v24, %v2266_v23  ;;  %vm2275_vm14 = vweird.f32 %v4723_v24 }
 0x92e   : > { %vm2276_vm0 = vmor %vm2274_vm15, %vm2275_vm14 }
 0x92f   : > { %v2270_v26 = vmul.f32 %v4723_v24, %v2269_v25 }
 0x931   : > { %v2271_v27 = vmul.f32 0.5, %v2270_v26  ;;  %v2367_v26 = vperm.slane %v2332_v21, 0 }
 0x933   : > { %v2272_v28 = vsub.f32 1.5, %v2271_v27 }
 0x935   : > { %v2273_v29 = vmul.f32 %v4723_v24, %v2272_v28 }
 0x937   : > { %v2277_v33 = vsel %vm2276_vm0, %v4723_v24, %v2273_v29 }
 0x938   : > { %v2288_v34 = vmul.f32 %v2277_v33, %v6858_v58  ;;  %v2346_v58 = vld [vmem:[#allocation19 + $0x68] sm:$0xff] }
 0x939   : > { %2426 = vmatpush.msra.mxu1 %v2346_v58 }
 0x93a   : > { %v2293_v36 = vmul.f32 %v6868_v32, %v2288_v34 }
 0x93b   : > { %2427 = vmatpush.msra.mxu1 %v2345_v45 }
 0x93c   : > { %v6875_v37 = vadd.f32 %v6871_v35, %v2293_v36 }
 0x93d   : > { %2428 = vmatpush.msra.mxu1 %v2344_v48 }
 0x93e   : > { %2387 = vmatmul.f32.vlgmr.msra.gmra.mxu3 %v6875_v37  ;;  %2410 = vmatmul.f32.vlgmr.msrb.gmra.mxu0 %v6875_v37 }
 0x93f   : > { %2429 = vmatpush.msra.mxu1 %v2343_v51 }
 0x941   : > { %2430 = vmatpush.msra.mxu1 %v2342_v55 }
 0x943   : > { %v2263_v43 = vpop.xlane.xlu0 %2262  ;;  %2431 = vmatpush.msra.mxu1 %v2341_v57 }
 0x944   : > { %v2265_v59 = vmul.f32 0.011111111, %v2263_v43 }
 0x945   : > { %2432 = vmatpush.msra.mxu1 %v2340_v63 }
 0x946   : > { %v2267_v46 = vadd.f32 1e-05, %v2265_v59 }
 0x947   : > { %2433 = vmatpush.msra.mxu1 %v2339_v2 }
 0x948   : > { %4724 = vrsqrt.f32 %v2267_v46  ;;  %vm2284_vm3 = vweird.f32 %v2267_v46 }
 0x949   : > { %2434 = vmatpush.msra.mxu1 %v2338_v13  ;;  %v2652_v13 = vld [vmem:[#allocation26 + $0x78] sm:$0xff] }
 0x94a   : > { %2653 = vmatpush.msra.mxu0 %v2652_v13  ;;  %v2623_v13 = vld [vmem:[#allocation25 + $0x10] sm:$0xff] }
 0x94b   : > { %2435 = vmatpush.msra.mxu1 %v2337_v15  ;;  %v2634_v15 = vld [vmem:[#allocation25 + $0x68] sm:$0xff] }
 0x94c   : > { %2654 = vmatpush.msra.mxu0 %v2651_v14  ;;  %v2622_v14 = vld [vmem:[#allocation25 + $0x8] sm:$0xff] }
 0x94d   : > { %2436 = vmatpush.msra.mxu1 %v2336_v17  ;;  %v2532_v17 = vstv %s6898_s1 }
 0x94e   : > { %v4725_v60 = vpop.eup %4724  ;;  %vm6919_vm6 = vcmp.eq.s32.totalorder %v6782_v53, %v2532_v17  ;;  %v2621_v17 = vld [vmem:[#allocation25] sm:$0xff] }
 0x94f   : > { %v2279_v62 = vmul.f32 %v4725_v60, %v2267_v46  ;;  %vm2285_vm2 = vweird.f32 %v4725_v60  ;;  %2437 = vmatpush.msra.mxu1 %v2335_v19  ;;  %v2650_v19 = vld [vmem:[#allocation26 + $0x68] sm:$0xff] }
 0x950   : > { %vm2286_vm4 = vmor %vm2284_vm3, %vm2285_vm2  ;;  %2655 = vmatpush.msra.mxu0 %v2650_v19  ;;  %v2638_v19 = vld [vmem:[#allocation26 + $0x8] sm:$0xff] }
 0x951   : > { %v2280_v1 = vmul.f32 %v4725_v60, %v2279_v62 }
 0x953   : > { %v2281_v4 = vmul.f32 0.5, %v2280_v1 }
 0x955   : > { %v2282_v6 = vsub.f32 1.5, %v2281_v4 }
 0x957   : > { %v2283_v8 = vmul.f32 %v4725_v60, %v2282_v6 }
 0x959   : > { %v2287_v9 = vsel %vm2286_vm4, %v4725_v60, %v2283_v8  ;;  %vm2563_vm4 = vcmask 1042432  }
 0x95a   : > { %v2289_v10 = vmul.f32 %v2287_v9, %v6863_v50  ;;  %v2334_v50 = vld [vmem:[#allocation19 + $0x8] sm:$0xff] }
 0x95b   : > { %2438 = vmatpush.msra.mxu1 %v2334_v50  ;;  %v2633_v50 = vld [vmem:[#allocation25 + $0x60] sm:$0xff] }
 0x95c   : > { %v2294_v11 = vmul.f32 %v6868_v32, %v2289_v10  ;;  %v2636_v10 = vld [vmem:[#allocation25 + $0x78] sm:$0xff] }
 0x95d   : > { %2439 = vmatpush.msra.mxu1 %v2333_v20 }
 0x95e   : > { %v2299_v12 = vadd.f32 %v6871_v35, %v2294_v11  ;;  %v2635_v11 = vld [vmem:[#allocation25 + $0x70] sm:$0xff] }
 0x95f   : > { %2674 = vmatpush.msrb.mxu1 %v2636_v10 }
 0x960   : > { %2390 = vmatmul.f32.gmra.mxu3 %v2299_v12  ;;  %2413 = vmatmul.f32.gmra.mxu0 %v2299_v12 }
 0x961   : > { %2675 = vmatpush.msrb.mxu1 %v2635_v11  ;;  %v2594_v11 = vstv %s6957_s15 }
 0x963   : > { %2676 = vmatpush.msrb.mxu1 %v2634_v15  ;;  %v2641_v15 = vld [vmem:[#allocation26 + $0x20] sm:$0xff] }
 0x965   : > { %2677 = vmatpush.msrb.mxu1 %v2633_v50  ;;  %v2637_v50 = vld [vmem:[#allocation26] sm:$0xff] }
 0x9bb   : > { %v2411_v23 = vpop.f32.mrf.mxu0 }
 0x9bc   : > { %v2412_v24 = vadd.f32 %v2411_v23, %v2368_v22  ;;  %v2649_v23 = vld [vmem:[#allocation26 + $0x60] sm:$0xff] }
 0x9bd   : > { %2656 = vmatpush.msra.mxu0 %v2649_v23  ;;  %v2738_v23 = vld [vmem:[#allocation28 + $0x130] sm:$0xff] }
 0x9be   : > { %v2418_v25 = vmax.f32 %v2412_v24, 0.0 }
 0x9c0   : > { %2463 = vmatmul.f32.vlgmr.msra.gmra.mxu2 %v2418_v25  ;;  %v2746_v25 = vld [vmem:[#allocation28 + $0x170] sm:$0xff] }
 0x9c1   : > { %v2388_v27 = vpop.f32.mrf.mxu3  ;;  %2793 = vmatpush.msrb.mxu2 %v2746_v25  ;;  %v3054_v25 = vld [vmem:[#allocation40 + $0x28] sm:$0xff] }
 0x9c2   : > { %v2389_v28 = vadd.f32 %v2388_v27, %v2367_v26  ;;  %v2632_v27 = vld [vmem:[#allocation25 + $0x58] sm:$0xff] }
 0x9c3   : > { %2678 = vmatpush.msrb.mxu1 %v2632_v27  ;;  %v2743_v27 = vld [vmem:[#allocation28 + $0x158] sm:$0xff] }
 0x9c4   : > { %v2417_v29 = vmax.f32 %v2389_v28, 0.0  ;;  %2794 = vmatpush.msrb.mxu2 %v2743_v27  ;;  %v3050_v27 = vld [vmem:[#allocation40 + $0x8] sm:$0xff] }
 0x9c6   : > { %2440 = vmatmul.f32.vlgmr.msra.gmra.mxu1 %v2417_v29  ;;  %v2648_v29 = vld [vmem:[#allocation26 + $0x58] sm:$0xff] }
 0x9c7   : > { %2657 = vmatpush.msra.mxu0 %v2648_v29  ;;  %v2739_v29 = vld [vmem:[#allocation28 + $0x138] sm:$0xff] }
 0x9dd   : > { %v2414_v32 = vpop.f32.mrf.mxu0 }
 0x9de   : > { %v2415_v33 = vadd.f32 %v2414_v32, %v2368_v22  ;;  %v2544_v22 = vstv %s6904_s16  ;;  %v4693_v32 = vld [vmem:[#allocation22] ss:$0 sm:$0xff] }
 0x9df   : > { %vm2545_vm12 = vcmp.eq.s32.totalorder %v6782_v53, %v2544_v22  ;;  %v2741_v22 = vld [vmem:[#allocation28 + $0x148] sm:$0xff] }
 0x9e0   : > { %v2420_v34 = vmax.f32 %v2415_v33, 0.0 }
 0x9e2   : > { %2466 = vmatmul.f32.gmra.mxu2 %v2420_v34  ;;  %v2550_v34 = vstv %s6907_s28 }
 0x9e3   : > { %v2391_v35 = vpop.f32.mrf.mxu3  ;;  %vm6940_vm14 = vcmp.eq.s32.totalorder %v6782_v53, %v2550_v34  ;;  %v2736_v34 = vld [vmem:[#allocation28 + $0x120] sm:$0xff] }
 0x9e4   : > { %v2392_v36 = vadd.f32 %v2391_v35, %v2367_v26  ;;  %v2631_v35 = vld [vmem:[#allocation25 + $0x50] sm:$0xff] }
 0x9e5   : > { %2679 = vmatpush.msrb.mxu1 %v2631_v35  ;;  %v2742_v26 = vld [vmem:[#allocation28 + $0x150] sm:$0xff]  ;;  %v2737_v35 = vld [vmem:[#allocation28 + $0x128] sm:$0xff] }
 0x9e6   : > { %v2419_v38 = vmax.f32 %v2392_v36, 0.0 }
 0x9e8   : > { %2443 = vmatmul.f32.gmra.mxu1 %v2419_v38  ;;  %v4337_v38 = vsel %vm6919_vm6, 1.0, %v6025_v30  ;;  %vm2595_vm6 = vcmp.eq.s32.totalorder %v6782_v53, %v2594_v11  ;;  %v2713_v11 = vld [vmem:[#allocation28 + $0x68] sm:$0xff] }
 0xa43   : > { %v2441_v39 = vpop.f32.mrf.mxu1  ;;  %v2464_v40 = vpop.f32.mrf.mxu2 }
 0xa44   : > { %v2442_v44 = vadd.f32 %v4692_v41, %v2441_v39  ;;  %v4338_v39 = vsel %vm6924_vm7, 1.0, %v6025_v30  ;;  %vm2877_vm7 = vcmask 1044480  }
 0xa46   : > { %v2465_v47 = vadd.f32 %v2464_v40, %v2442_v44  ;;  %v2647_v40 = vld [vmem:[#allocation26 + $0x50] sm:$0xff]  ;;  %v2720_v44 = vld [vmem:[#allocation28 + $0xa0] sm:$0xff] }
 0xa47   : > { %2658 = vmatpush.msra.mxu0 %v2647_v40  ;;  %v2726_v40 = vld [vmem:[#allocation28 + $0xd0] sm:$0xff] }
 0xa48   : > { %v2470_v49 = vadd.f32 %v2465_v47, %v6875_v37 }
 0xa4a   : > { %v2474_v51 = vmul.f32 %v6848_v31, %v2470_v49 }
 0xa65   : > { %v2444_v42 = vpop.f32.mrf.mxu1  ;;  %v2467_v58 = vpop.f32.mrf.mxu2 }
 0xa66   : > { %v2445_v43 = vadd.f32 %v4692_v41, %v2444_v42 }
 0xa68   : > { %v2468_v59 = vadd.f32 %v2467_v58, %v2445_v43  ;;  %v4694_v43 = vld [vmem:[#allocation23] ss:$0 sm:$0xff]  ;;  %v2630_v58 = vld [vmem:[#allocation25 + $0x48] sm:$0xff] }
 0xa69   : > { %2680 = vmatpush.msrb.mxu1 %v2630_v58  ;;  %v2727_v58 = vld [vmem:[#allocation28 + $0xd8] sm:$0xff] }
 0xa6a   : > { %v2471_v45 = vadd.f32 %v2468_v59, %v2299_v12  ;;  %v4339_v59 = vsel %vm2545_vm12, 1.0, %v6025_v30 }
 0xa6c   : > { %v2475_v46 = vmul.f32 %v6848_v31, %v2471_v45 }
 0xa6e   : > { %v2478_v48 = vsel %vm2077_vm10, %v2475_v46, 0.0  ;;  %v2646_v46 = vld [vmem:[#allocation26 + $0x48] sm:$0xff] }
 0xa6f   : > { %2479 = vadd.xlane.f32.xlu0 %v2478_v48  ;;  %2659 = vmatpush.msra.mxu0 %v2646_v46  ;;  %v2725_v46 = vld [vmem:[#allocation28 + $0xc8] sm:$0xff] }
 0xa77   : > { %2476 = vadd.xlane.f32.xlu0 %v2474_v51  ;;  %v2629_v51 = vld [vmem:[#allocation25 + $0x40] sm:$0xff] }
 0xa78   : > { %2681 = vmatpush.msrb.mxu1 %v2629_v51  ;;  %v2714_v51 = vld [vmem:[#allocation28 + $0x70] sm:$0xff] }
 0xae2   : > { %v2480_v52 = vpop.xlane.xlu0 %2479 }
 0xae3   : > { %v2482_v55 = vmul.f32 0.011111111, %v2480_v52  ;;  %v2645_v52 = vld [vmem:[#allocation26 + $0x40] sm:$0xff] }
 0xae4   : > { %2660 = vmatpush.msra.mxu0 %v2645_v52  ;;  %v2718_v52 = vld [vmem:[#allocation28 + $0x90] sm:$0xff] }
 0xae5   : > { %v2484_v56 = vsub.f32 %v2471_v45, %v2482_v55  ;;  %v2556_v45 = vstv %s6911_s29 }
 0xae6   : > { %vm2557_vm3 = vcmp.eq.s32.totalorder %v6782_v53, %v2556_v45  ;;  %v2724_v45 = vld [vmem:[#allocation28 + $0xc0] sm:$0xff] }
 0xae7   : > { %v6887_v57 = vmul.f32 %v6848_v31, %v2484_v56 }
 0xae9   : > { %v2488_v60 = vmul.f32 %v6887_v57, %v6887_v57 }
 0xaea   : > { %v2477_v61 = vpop.xlane.xlu0 %2476 }
 0xaeb   : > { %v2481_v62 = vmul.f32 0.011111111, %v2477_v61  ;;  %v2491_v63 = vsel %vm2077_vm10, %v2488_v60, 0.0  ;;  %v4340_v60 = vsel %vm6940_vm14, 1.0, %v6025_v30  ;;  %vm2873_vm14 = vcmask 39936  }
 0xaec   : > { %2492 = vadd.xlane.f32.xlu0 %v2491_v63 }
 0xaed   : > { %v2483_v0 = vsub.f32 %v2470_v49, %v2481_v62  ;;  %v2561_v49 = vsel %vm2560_vm13, %v4337_v38, %v4338_v39  ;;  %v2644_v62 = vld [vmem:[#allocation26 + $0x38] sm:$0xff]  ;;  %v2733_v38 = vld [vmem:[#allocation28 + $0x108] sm:$0xff]  ;;  %v2734_v39 = vld [vmem:[#allocation28 + $0x110] sm:$0xff]  ;;  %vm2861_vm13 = vcmask 36864  }
 0xaee   : > { %v2562_v61 = vsel %vm2077_vm10, %v2561_v49, %v4339_v59  ;;  %2661 = vmatpush.msra.mxu0 %v2644_v62  ;;  %v2728_v59 = vld [vmem:[#allocation28 + $0xe0] sm:$0xff]  ;;  %v2722_v49 = vld [vmem:[#allocation28 + $0xb0] sm:$0xff] }
 0xaef   : > { %v6893_v37 = vmul.f32 %v6848_v31, %v2483_v0  ;;  %v2627_v0 = vld [vmem:[#allocation25 + $0x30] sm:$0xff]  ;;  %v2716_v62 = vld [vmem:[#allocation28 + $0x80] sm:$0xff] }
 0xaf1   : > { %v2487_v1 = vmul.f32 %v6893_v37, %v6893_v37 }
 0xaf3   : > { %2489 = vadd.xlane.f32.xlu2 %v2487_v1 }
 0xb5f   : > { %v2493_v2 = vpop.xlane.xlu0 %2492 }
 0xb60   : > { %v2495_v3 = vmul.f32 0.011111111, %v2493_v2  ;;  %v2643_v2 = vld [vmem:[#allocation26 + $0x30] sm:$0xff] }
 0xb61   : > { %2662 = vmatpush.msra.mxu0 %v2643_v2  ;;  %v3080_v2 = vld [vmem:[#allocation40 + $0xf8] sm:$0xff] }
 0xb62   : > { %v2497_v4 = vadd.f32 1e-05, %v2495_v3  ;;  %v4341_v3 = vsel %vm2557_vm3, 1.0, %v6025_v30  ;;  %vm3203_vm3 = vcmask 77824  }
 0xb64   : > { %4726 = vrsqrt.f32 %v2497_v4  ;;  %vm2514_vm8 = vweird.f32 %v2497_v4 }
 0xb66   : > { %v2490_v5 = vpop.xlane.xlu2 %2489 }
 0xb67   : > { %v2494_v6 = vmul.f32 0.011111111, %v2490_v5  ;;  %v2626_v5 = vld [vmem:[#allocation25 + $0x28] sm:$0xff] }
 0xb69   : > { %v6902_v7 = vadd.f32 1e-05, %v2494_v6 }
 0xb6a   : > { %v4727_v8 = vpop.eup %4726 }
 0xb6b   : > { %v2509_v9 = vmul.f32 %v4727_v8, %v2497_v4  ;;  %4728 = vrsqrt.f32 %v6902_v7  ;;  %vm2515_vm5 = vweird.f32 %v4727_v8  ;;  %vm2504_vm0 = vweird.f32 %v6902_v7 }
 0xb6c   : > { %vm2516_vm9 = vmor %vm2514_vm8, %vm2515_vm5  ;;  %v2564_v4 = vsel %vm2563_vm4, %v2562_v61, %v4340_v60  ;;  %vm2565_vm5 = vcmask 1043456   ;;  %v2715_v60 = vld [vmem:[#allocation28 + $0x78] sm:$0xff]  ;;  %vm2694_vm8 = vcmp.gt.s32.totalorder %v6782_v53, %v6784_v54 }
 0xb6d   : > { %v2510_v12 = vmul.f32 %v4727_v8, %v2509_v9  ;;  %v2566_v10 = vsel %vm2565_vm5, %v2564_v4, %v4341_v3  ;;  %v3078_v4 = vld [vmem:[#allocation40 + $0xe8] sm:$0xff] }
 0xb6f   : > { %v2511_v16 = vmul.f32 0.5, %v2510_v12  ;;  %v4344_v12 = vsel %vm2595_vm6, 1.0, %v6025_v30 }
 0xb71   : > { %v6913_v20 = vpop.eup %4728  ;;  %v2512_v21 = vsub.f32 1.5, %v2511_v16  ;;  %v2640_v16 = vld [vmem:[#allocation26 + $0x18] sm:$0xff] }
 0xb72   : > { %v2499_v24 = vmul.f32 %v6913_v20, %v6902_v7  ;;  %vm2505_vm15 = vweird.f32 %v6913_v20  ;;  %v2642_v7 = vld [vmem:[#allocation26 + $0x28] sm:$0xff] }
 0xb73   : > { %v2513_v28 = vmul.f32 %v4727_v8, %v2512_v21  ;;  %vm2506_vm2 = vmor %vm2504_vm0, %vm2505_vm15  ;;  %2663 = vmatpush.msra.mxu0 %v2642_v7  ;;  %v2744_v21 = vld [vmem:[#allocation28 + $0x160] sm:$0xff] }
 0xb74   : > { %v2500_v33 = vmul.f32 %v6913_v20, %v2499_v24  ;;  %v2745_v24 = vld [vmem:[#allocation28 + $0x168] sm:$0xff] }
 0xb75   : > { %v2517_v36 = vsel %vm2516_vm9, %v4727_v8, %v2513_v28  ;;  %v2625_v8 = vld [vmem:[#allocation25 + $0x20] sm:$0xff]  ;;  %2664 = vmatpush.msra.mxu0 %v2641_v15  ;;  %v2735_v28 = vld [vmem:[#allocation28 + $0x118] sm:$0xff] }
 0xb76   : > { %v2519_v41 = vmul.f32 %v2517_v36, %v6887_v57  ;;  %v2501_v42 = vmul.f32 0.5, %v2500_v33  ;;  %v2628_v57 = vld [vmem:[#allocation25 + $0x38] sm:$0xff]  ;;  %v2732_v33 = vld [vmem:[#allocation28 + $0x100] sm:$0xff]  ;;  %v2729_v36 = vld [vmem:[#allocation28 + $0xe8] sm:$0xff] }
 0xb77   : > { %2682 = vmatpush.msrb.mxu1 %v2628_v57  ;;  %2665 = vmatpush.msra.mxu0 %v2640_v16  ;;  %v2711_v57 = vld [vmem:[#allocation28 + $0x58] sm:$0xff]  ;;  %v3072_v7 = vld [vmem:[#allocation40 + $0xb8] sm:$0xff]  ;;  %v2706_v16 = vld [vmem:[#allocation28 + $0x30] sm:$0xff] }
 0xb78   : > { %v2524_v47 = vmul.f32 %v4693_v32, %v2519_v41  ;;  %v2502_v48 = vsub.f32 1.5, %v2501_v42  ;;  %v2730_v41 = vld [vmem:[#allocation28 + $0xf0] sm:$0xff]  ;;  %v2731_v42 = vld [vmem:[#allocation28 + $0xf8] sm:$0xff]  ;;  %v3064_v15 = vld [vmem:[#allocation40 + $0x78] sm:$0xff] }
 0xb79   : > { %2683 = vmatpush.msrb.mxu1 %v2627_v0  ;;  %2666 = vmatpush.msra.mxu0 %v2639_v18  ;;  %v2705_v0 = vld [vmem:[#allocation28 + $0x28] sm:$0xff]  ;;  %v3062_v18 = vld [vmem:[#allocation40 + $0x68] sm:$0xff] }
 0xb7a   : > { %v2503_v55 = vmul.f32 %v6913_v20, %v2502_v48  ;;  %v6949_v56 = vadd.f32 %v4694_v43, %v2524_v47  ;;  %v2717_v47 = vld [vmem:[#allocation28 + $0x88] sm:$0xff] }
 0xb7b   : > { %2684 = vmatpush.msrb.mxu1 %v2626_v5  ;;  %2667 = vmatpush.msra.mxu0 %v2638_v19  ;;  %v2721_v48 = vld [vmem:[#allocation28 + $0xa8] sm:$0xff]  ;;  %v2703_v19 = vld [vmem:[#allocation28 + $0x18] sm:$0xff] }
 0xb7c   : > { %v2507_v63 = vsel %vm2506_vm2, %v6913_v20, %v2503_v55  ;;  %4342 = vmatpush.msk.msrb.mxu3 %vm2077_vm10, %v6949_v56  ;;  %v2747_v20 = vld [vmem:[#allocation28 + $0x178] sm:$0xff]  ;;  %v3076_v5 = vld [vmem:[#allocation40 + $0xd8] sm:$0xff] }
 0xb7d   : > { %v2518_v1 = vmul.f32 %v2507_v63, %v6893_v37  ;;  %v2624_v37 = vld [vmem:[#allocation25 + $0x18] sm:$0xff]  ;;  %2685 = vmatpush.msrb.mxu1 %v2625_v8  ;;  %2668 = vmatpush.msra.mxu0 %v2637_v50  ;;  %v2708_v63 = vld [vmem:[#allocation28 + $0x40] sm:$0xff] }
 0xb7e   : > { %v2719_v55 = vld [vmem:[#allocation28 + $0x98] sm:$0xff]  ;;  %v2704_v50 = vld [vmem:[#allocation28 + $0x20] sm:$0xff] }
 0xb7f   : > { %v2523_v6 = vmul.f32 %v4693_v32, %v2518_v1  ;;  %2686 = vmatpush.msrb.mxu1 %v2624_v37  ;;  %2813 = vmatpush.msrb.mxu0 %v2747_v20  ;;  %v2740_v32 = vld [vmem:[#allocation28 + $0x140] sm:$0xff]  ;;  %v2702_v1 = vld [vmem:[#allocation28 + $0x10] sm:$0xff] }
 0xb80   : > { %2795 = vmatpush.msrb.mxu2 %v2740_v32  ;;  %v3070_v8 = vld [vmem:[#allocation40 + $0xa8] sm:$0xff]  ;;  %v2712_v37 = vld [vmem:[#allocation28 + $0x60] sm:$0xff] }
 0xb81   : > { %v6964_v9 = vadd.f32 %v4694_v43, %v2523_v6  ;;  %2687 = vmatpush.msrb.mxu1 %v2623_v13  ;;  %2814 = vmatpush.msrb.mxu0 %v2744_v21  ;;  %v2723_v43 = vld [vmem:[#allocation28 + $0xb8] sm:$0xff]  ;;  %v2709_v13 = vld [vmem:[#allocation28 + $0x48] sm:$0xff]  ;;  %v2700_v21 = vld [vmem:[#allocation28] sm:$0xff] }
 0xb82   : > { %2796 = vmatpush.msrb.mxu2 %v2737_v35  ;;  %v3074_v6 = vld [vmem:[#allocation40 + $0xc8] sm:$0xff]  ;;  %v3060_v20 = vld [vmem:[#allocation40 + $0x58] sm:$0xff] }
 0xb83   : > { %2588 = vmatpush.msrb.mxu3 %v6964_v9  ;;  %2688 = vmatpush.msrb.mxu1 %v2622_v14  ;;  %v2710_v14 = vld [vmem:[#allocation28 + $0x50] sm:$0xff] }
 0xb84   : > { %4343 = vmatmul.msk.f32.vlgmr.msrb.gmra.mxu3 %vm2047_vm11, %v2566_v10  ;;  %2815 = vmatpush.msrb.mxu0 %v2741_v22  ;;  %v3068_v10 = vld [vmem:[#allocation40 + $0x98] sm:$0xff] }
 0xb85   : > { %4345 = vmatpush.msk.msra.mxu3 %vm2077_vm10, %v6949_v56  ;;  %2689 = vmatpush.msrb.mxu1 %v2621_v17  ;;  %v2707_v17 = vld [vmem:[#allocation28 + $0x38] sm:$0xff]  ;;  %v2701_v22 = vld [vmem:[#allocation28 + $0x8] sm:$0xff] }
 0xb86   : > { %2816 = vmatpush.msrb.mxu0 %v2738_v23  ;;  %2797 = vmatpush.msrb.mxu2 %v2734_v39  ;;  %v3058_v23 = vld [vmem:[#allocation40 + $0x48] sm:$0xff] }
 0xb87   : > { %2616 = vmatpush.msra.mxu3 %v6964_v9 }
 0xb88   : > { %2817 = vmatpush.msrb.mxu0 %v2735_v28  ;;  %2798 = vmatpush.msrb.mxu2 %v2731_v42 }
 0xb89   : > { %2773 = vmatpush.msrb.mxu3 %v2745_v24  ;;  %v3056_v24 = vld [vmem:[#allocation40 + $0x38] sm:$0xff] }
 0xb8a   : > { %2818 = vmatpush.msrb.mxu0 %v2732_v33  ;;  %2799 = vmatpush.msrb.mxu2 %v2728_v59 }
 0xb8b   : > { %2774 = vmatpush.msrb.mxu3 %v2742_v26  ;;  %v3052_v26 = vld [vmem:[#allocation40 + $0x18] sm:$0xff] }
 0xb8c   : > { %4346 = vmatmul.msk.f32.vlgmr.msra.gmra.mxu3 %vm2047_vm11, %v4344_v12  ;;  %2819 = vmatpush.msrb.mxu0 %v2729_v36  ;;  %v3066_v12 = vld [vmem:[#allocation40 + $0x88] sm:$0xff] }
 0xb8d   : > { %2775 = vmatpush.msrb.mxu3 %v2739_v29  ;;  %2800 = vmatpush.msrb.mxu2 %v2725_v46 }
 0xb8e   : > { %2820 = vmatpush.msrb.mxu0 %v2726_v40 }
 0xb8f   : > { %2776 = vmatpush.msrb.mxu3 %v2736_v34  ;;  %2801 = vmatpush.msrb.mxu2 %v2722_v49  ;;  %v2748_v34 = vld [vmem:[#allocation29] sm:$0x7] }
 0xb90   : > { %2821 = vmatpush.msrb.mxu0 %v2723_v43  ;;  %v2767_v35 = vperm.slane %v2748_v34, 0  ;;  %v2768_v36 = vperm.slane %v2748_v34, 1 }
 0xb91   : > { %2777 = vmatpush.msrb.mxu3 %v2733_v38  ;;  %2802 = vmatpush.msrb.mxu2 %v2719_v55  ;;  %v2769_v38 = vperm.slane %v2748_v34, 2 }
 0xb92   : > { %2822 = vmatpush.msrb.mxu0 %v2720_v44 }
 0xb93   : > { %2778 = vmatpush.msrb.mxu3 %v2730_v41  ;;  %2803 = vmatpush.msrb.mxu2 %v2716_v62 }
 0xb94   : > { %2823 = vmatpush.msrb.mxu0 %v2717_v47 }
 0xb95   : > { %2779 = vmatpush.msrb.mxu3 %v2727_v58  ;;  %2804 = vmatpush.msrb.mxu2 %v2713_v11  ;;  %v3075_v11 = vld [vmem:[#allocation40 + $0xd0] sm:$0xff] }
 0xb96   : > { %2824 = vmatpush.msrb.mxu0 %v2714_v51 }
 0xb97   : > { %2780 = vmatpush.msrb.mxu3 %v2724_v45  ;;  %2805 = vmatpush.msrb.mxu2 %v2710_v14  ;;  %v2696_v45 = vstv %s2695_s4  ;;  %v3069_v14 = vld [vmem:[#allocation40 + $0xa0] sm:$0xff] }
 0xb98   : > { %2825 = vmatpush.msrb.mxu0 %v2711_v57  ;;  %vm2697_vm9 = vcmp.gt.s32.totalorder %v6782_v53, %v2696_v45  ;;  %v2764_v45 = vld [vmem:[#allocation31 + $0x78] sm:$0xff] }
 0xb99   : > { %2781 = vmatpush.msrb.mxu3 %v2721_v48  ;;  %2806 = vmatpush.msrb.mxu2 %v2707_v17  ;;  %vm2698_vm12 = vmor %vm2694_vm8, %vm2697_vm9  ;;  %v3063_v17 = vld [vmem:[#allocation40 + $0x70] sm:$0xff] }
 0xb9a   : > { %2826 = vmatpush.msrb.mxu0 %v2708_v63  ;;  %v2699_v48 = vsel %vm2698_vm12, -1e+30, %v6025_v30  ;;  %vm3746_vm12 = vcmask 1041409  }
 0xb9b   : > { %2782 = vmatpush.msrb.mxu3 %v2718_v52  ;;  %2807 = vmatpush.msrb.mxu2 %v2704_v50  ;;  %v3057_v50 = vld [vmem:[#allocation40 + $0x40] sm:$0xff] }
 0xb9c   : > { %2827 = vmatpush.msrb.mxu0 %v2705_v0 }
 0xb9d   : > { %2783 = vmatpush.msrb.mxu3 %v2715_v60  ;;  %2808 = vmatpush.msrb.mxu2 %v2701_v22  ;;  %v3051_v22 = vld [vmem:[#allocation40 + $0x10] sm:$0xff] }
 0xb9e   : > { %2828 = vmatpush.msrb.mxu0 %v2702_v1 }
 0xb9f   : > { %2784 = vmatpush.msrb.mxu3 %v2712_v37  ;;  %v3077_v37 = vld [vmem:[#allocation40 + $0xe0] sm:$0xff]  ;;  %2977 = vmatpush.msra.mxu2 %v2764_v45  ;;  %v4698_v45 = vld [vmem:[#allocation38] ss:$0 sm:$0xff] }
 0xba1   : > { %2785 = vmatpush.msrb.mxu3 %v2709_v13  ;;  %v3071_v13 = vld [vmem:[#allocation40 + $0xb0] sm:$0xff] }
 0xba3   : > { %2786 = vmatpush.msrb.mxu3 %v2706_v16  ;;  %v3065_v16 = vld [vmem:[#allocation40 + $0x80] sm:$0xff] }
 0xba5   : > { %2787 = vmatpush.msrb.mxu3 %v2703_v19  ;;  %v3059_v19 = vld [vmem:[#allocation40 + $0x50] sm:$0xff] }
 0xba7   : > { %2788 = vmatpush.msrb.mxu3 %v2700_v21  ;;  %v3053_v21 = vld [vmem:[#allocation40 + $0x20] sm:$0xff] }
 0xc07   : > { %v2590_v61 = vpop.f32.mrf.mxu3 }
 0xc08   : > { %2690 = vmatmul.f32.vlgmr.msrb.gmra.mxu1 %v2590_v61 }
 0xc0f   : > { %v2618_v3 = vpop.f32.mrf.mxu3 }
 0xc10   : > { %2669 = vmatmul.f32.vlgmr.msra.gmra.mxu0 %v2618_v3 }
 0xc11   : > { %3150 = vmatpush.msra.mxu0 %v3080_v2 }
 0xc13   : > { %3151 = vmatpush.msra.mxu0 %v3078_v4 }
 0xc15   : > { %3152 = vmatpush.msra.mxu0 %v3076_v5 }
 0xc17   : > { %3153 = vmatpush.msra.mxu0 %v3074_v6 }
 0xc19   : > { %3154 = vmatpush.msra.mxu0 %v3072_v7 }
 0xc1b   : > { %3155 = vmatpush.msra.mxu0 %v3070_v8 }
 0xc1d   : > { %3156 = vmatpush.msra.mxu0 %v3068_v10  ;;  %v3079_v10 = vld [vmem:[#allocation40 + $0xf0] sm:$0xff] }
 0xc1f   : > { %3157 = vmatpush.msra.mxu0 %v3066_v12  ;;  %v3073_v12 = vld [vmem:[#allocation40 + $0xc0] sm:$0xff] }
 0xc21   : > { %3158 = vmatpush.msra.mxu0 %v3064_v15  ;;  %v3067_v15 = vld [vmem:[#allocation40 + $0x90] sm:$0xff] }
 0xc23   : > { %3159 = vmatpush.msra.mxu0 %v3062_v18  ;;  %v3061_v18 = vld [vmem:[#allocation40 + $0x60] sm:$0xff] }
 0xc25   : > { %3160 = vmatpush.msra.mxu0 %v3060_v20  ;;  %v3055_v20 = vld [vmem:[#allocation40 + $0x30] sm:$0xff] }
 0xc27   : > { %3161 = vmatpush.msra.mxu0 %v3058_v23  ;;  %v3049_v23 = vld [vmem:[#allocation40] sm:$0xff] }
 0xc29   : > { %3162 = vmatpush.msra.mxu0 %v3056_v24  ;;  %v3047_v24 = vld [vmem:[#allocation37 + $0x78] sm:$0xff] }
 0xc2b   : > { %3163 = vmatpush.msra.mxu0 %v3054_v25  ;;  %v3046_v25 = vld [vmem:[#allocation37 + $0x70] sm:$0xff] }
 0xc2d   : > { %3164 = vmatpush.msra.mxu0 %v3052_v26  ;;  %v3045_v26 = vld [vmem:[#allocation37 + $0x68] sm:$0xff] }
 0xc2f   : > { %3165 = vmatpush.msra.mxu0 %v3050_v27  ;;  %v3044_v27 = vld [vmem:[#allocation37 + $0x60] sm:$0xff] }
 0xc85   : > { %v2691_v32 = vpop.f32.mrf.mxu1 }
 0xc8d   : > { %v2670_v28 = vpop.f32.mrf.mxu0 }
 0xc8e   : > { %v2673_v29 = vperm.slane %v2670_v28, 0 }
 0xc90   : > { %v6975_v33 = vadd.f32 %v2691_v32, %v2673_v29  ;;  %v3043_v29 = vld [vmem:[#allocation37 + $0x58] sm:$0xff]  ;;  %v3042_v32 = vld [vmem:[#allocation37 + $0x50] sm:$0xff] }
 0xc92   : > { %2789 = vmatmul.f32.vlgmr.msrb.gmra.mxu3 %v6975_v33  ;;  %2809 = vmatmul.f32.vlgmr.msrb.gmra.mxu2 %v6975_v33 }
 0xc93   : > { %2829 = vmatmul.f32.vlgmr.msrb.gmra.mxu0 %v6975_v33 }
 0xc9b   : > { %3166 = vmatmul.f32.vlgmr.msra.gmra.mxu0 %v6964_v9 }
 0xca3   : > { %3169 = vmatmul.f32.gmra.mxu0 %v6949_v56 }
 0xd10   : > { %v2830_v39 = vpop.f32.mrf.mxu0 }
 0xd11   : > { %v2831_v58 = vadd.f32 %v2830_v39, %v2769_v38  ;;  %v3040_v38 = vld [vmem:[#allocation37 + $0x40] sm:$0xff]  ;;  %v3039_v39 = vld [vmem:[#allocation37 + $0x38] sm:$0xff] }
 0xd15   : > { %v2790_v40 = vpop.f32.mrf.mxu3  ;;  %v2810_v41 = vpop.f32.mrf.mxu2 }
 0xd16   : > { %v2791_v42 = vadd.f32 %v2790_v40, %v2767_v35  ;;  %v2811_v43 = vadd.f32 %v2810_v41, %v2768_v36  ;;  %v3041_v36 = vld [vmem:[#allocation37 + $0x48] sm:$0xff]  ;;  %v3038_v40 = vld [vmem:[#allocation37 + $0x30] sm:$0xff] }
 0xd17   : > { %v3037_v41 = vld [vmem:[#allocation37 + $0x28] sm:$0xff] }
 0xd18   : > { %2903 = vrot.lane.b32.xlu1 %v2811_v43, %s6023_s3  ;;  %4347 = vmatpush.xpose.msk.msra.mxu1 %vm1853_vm1, %v2811_v43  ;;  %v3035_v43 = vld [vmem:[#allocation37 + $0x18] sm:$0xff] }
 0xd19   : > { %2901 = vrot.lane.b32.xlu0 %v2791_v42, %s6023_s3 }
 0xd1b   : > { %4348 = vmatmul.msk.f32.vlgmr.msra.gmra.mxu1 %vm1853_vm1, %v2791_v42  ;;  %v3036_v42 = vld [vmem:[#allocation37 + $0x20] sm:$0xff] }
 0xd1c   : > { %4349 = vmatpush.msk.msrb.mxu1 %vm2877_vm7, %v2831_v58 }
 0xd20   : > { %2942 = vrot.lane.b32.xlu1 %v2831_v58, %s6023_s3  ;;  %v3034_v58 = vld [vmem:[#allocation37 + $0x10] sm:$0xff] }
 0xd8a   : > { %v2904_v59 = vpop.permute.xlu1 %2903 }
 0xd8b   : > { %4351 = vmatpush.xpose.msk.msra.mxu3 %vm1853_vm1, %v2904_v59  ;;  %v2902_v44 = vpop.permute.xlu0 %2901  ;;  %v3033_v59 = vld [vmem:[#allocation37 + $0x8] sm:$0xff] }
 0xd8e   : > { %4352 = vmatmul.msk.f32.vlgmr.msra.gmra.mxu3 %vm1853_vm1, %v2902_v44  ;;  %v3032_v44 = vld [vmem:[#allocation37] sm:$0xff] }
 0xd8f   : > { %3102 = vmatpush.msrb.mxu3 %v3047_v24 }
 0xd91   : > { %3103 = vmatpush.msrb.mxu3 %v3046_v25 }
 0xd92   : > { %v2943_v46 = vpop.permute.xlu1 %2942 }
 0xd93   : > { %4353 = vmatpush.msk.msra.mxu1 %vm2877_vm7, %v2943_v46  ;;  %3104 = vmatpush.msrb.mxu3 %v3045_v26  ;;  %v2763_v46 = vld [vmem:[#allocation31 + $0x70] sm:$0xff] }
 0xd94   : > { %2978 = vmatpush.msra.mxu2 %v2763_v46 }
 0xd95   : > { %3105 = vmatpush.msrb.mxu3 %v3044_v27 }
 0xd97   : > { %3106 = vmatpush.msrb.mxu3 %v3043_v29  ;;  %v3167_v29 = vpop.f32.mrf.mxu0 }
 0xd98   : > { %v2856_v47 = vpop.f32.mrf.mxu1 }
 0xd99   : > { %v2859_v49 = vmul.f32 0.1490712, %v2856_v47  ;;  %3107 = vmatpush.msrb.mxu3 %v3042_v32 }
 0xd9b   : > { %v2860_v51 = vadd.f32 %v2859_v49, %v2699_v48  ;;  %3108 = vmatpush.msrb.mxu3 %v3041_v36  ;;  %v2761_v49 = vld [vmem:[#allocation31 + $0x60] sm:$0xff] }
 0xd9c   : > { %v4696_v36 = vld [vmem:[#allocation34] ss:$0 sm:$0xff] }
 0xd9d   : > { %v2862_v52 = vsel %vm2861_vm13, %v2860_v51, -inf  ;;  %3109 = vmatpush.msrb.mxu3 %v3040_v38 }
 0xd9e   : > { %2863 = vmax.xlane.f32.xlu2 %v2862_v52  ;;  %v2759_v52 = vld [vmem:[#allocation31 + $0x50] sm:$0xff] }
 0xd9f   : > { %3110 = vmatpush.msrb.mxu3 %v3039_v39 }
 0xda1   : > { %3111 = vmatpush.msrb.mxu3 %v3038_v40  ;;  %v4697_v40 = vld [vmem:[#allocation35] ss:$0 sm:$0xff] }
 0xda3   : > { %3112 = vmatpush.msrb.mxu3 %v3037_v41  ;;  %v3170_v41 = vpop.f32.mrf.mxu0 }
 0xda5   : > { %3113 = vmatpush.msrb.mxu3 %v3036_v42 }
 0xda7   : > { %3114 = vmatpush.msrb.mxu3 %v3035_v43 }
 0xda9   : > { %3115 = vmatpush.msrb.mxu3 %v3034_v58 }
 0xdab   : > { %3116 = vmatpush.msrb.mxu3 %v3033_v59 }
 0xdad   : > { %3117 = vmatpush.msrb.mxu3 %v3032_v44 }
 0xe11   : > { %v2926_v55 = vpop.f32.mrf.mxu3  ;;  %v2864_v57 = vpop.xlane.xlu2 %2863 }
 0xe12   : > { %v2929_v60 = vmul.f32 0.1490712, %v2926_v55  ;;  %v2865_v61 = vsub.f32 %v2860_v51, %v2864_v57  ;;  %v2760_v51 = vld [vmem:[#allocation31 + $0x58] sm:$0xff]  ;;  %v2758_v57 = vld [vmem:[#allocation31 + $0x48] sm:$0xff] }
 0xe14   : > { %v2866_v62 = vmul.f32 1.442695, %v2865_v61  ;;  %v2930_v54 = vadd.f32 %v2929_v60, %v2699_v48  ;;  %v2762_v48 = vld [vmem:[#allocation31 + $0x68] sm:$0xff]  ;;  %v2757_v60 = vld [vmem:[#allocation31 + $0x40] sm:$0xff]  ;;  %v2756_v61 = vld [vmem:[#allocation31 + $0x38] sm:$0xff] }
 0xe15   : > { %2979 = vmatpush.msra.mxu2 %v2762_v48 }
 0xe16   : > { %4730 = vpow2.f32 %v2866_v62  ;;  %v2931_v63 = vsel %vm2861_vm13, %v2930_v54, -inf  ;;  %v2755_v62 = vld [vmem:[#allocation31 + $0x30] sm:$0xff] }
 0xe17   : > { %2932 = vmax.xlane.f32.xlu2 %v2931_v63  ;;  %2980 = vmatpush.msra.mxu2 %v2761_v49  ;;  %v2754_v63 = vld [vmem:[#allocation31 + $0x28] sm:$0xff] }
 0xe19   : > { %2981 = vmatpush.msra.mxu2 %v2760_v51 }
 0xe1b   : > { %2982 = vmatpush.msra.mxu2 %v2759_v52 }
 0xe1c   : > { %v4731_v0 = vpop.eup %4730 }
 0xe1d   : > { %v2868_v1 = vsel %vm2861_vm13, %v4731_v0, 0.0  ;;  %2983 = vmatpush.msra.mxu2 %v2758_v57 }
 0xe1f   : > { %2869 = vadd.xlane.f32.xlu2 %v2868_v1  ;;  %2984 = vmatpush.msra.mxu2 %v2757_v60  ;;  %v2752_v1 = vld [vmem:[#allocation31 + $0x18] sm:$0xff] }
 0xe21   : > { %2985 = vmatpush.msra.mxu2 %v2756_v61 }
 0xe23   : > { %2986 = vmatpush.msra.mxu2 %v2755_v62 }
 0xe25   : > { %2987 = vmatpush.msra.mxu2 %v2754_v63 }
 0xe8a   : > { %v2933_v30 = vpop.xlane.xlu2 %2932 }
 0xe8b   : > { %v2934_v2 = vsub.f32 %v2930_v54, %v2933_v30  ;;  %v7005_v30 = vld [vmem:[#allocation41] sm:$0x3] }
 0xe8c   : > { %v3124_v43 = vperm.slane %v7005_v30, 1 }
 0xe8d   : > { %v2935_v3 = vmul.f32 1.442695, %v2934_v2  ;;  %v3123_v2 = vperm.slane %v7005_v30, 0 }
 0xe8e   : > { %v3171_v59 = vadd.f32 %v3170_v41, %v3124_v43  ;;  %v3168_v44 = vadd.f32 %v3167_v29, %v3124_v43  ;;  %v3409_v41 = vld [vmem:[#allocation49 + $0xf0] sm:$0xff] }
 0xe8f   : > { %4732 = vpow2.f32 %v2935_v3  ;;  %v2751_v3 = vld [vmem:[#allocation31 + $0x10] sm:$0xff]  ;;  %3450 = vmatpush.msrb.mxu0 %v3409_v41  ;;  %v3405_v43 = vld [vmem:[#allocation49 + $0xd0] sm:$0xff] }
 0xe90   : > { %v3426_v41 = vld [vmem:[#allocation52 + $0x70] sm:$0xff] }
 0xe92   : > { %v2870_v4 = vpop.xlane.xlu2 %2869 }
 0xe93   : > { %4734 = vrcp.f32 %v2870_v4 }
 0xe95   : > { %v4733_v5 = vpop.eup %4732 }
 0xe96   : > { %v2937_v6 = vsel %vm2861_vm13, %v4733_v5, 0.0  ;;  %vm3748_vm13 = vcmask 1042434  }
 0xe97   : > { %2938 = vadd.xlane.f32.xlu0 %v2937_v6  ;;  %v2750_v6 = vld [vmem:[#allocation31 + $0x8] sm:$0xff] }
 0xe99   : > { %v4735_v7 = vpop.eup %4734 }
 0xe9a   : > { %v2872_v8 = vmul.f32 %v4735_v7, %v4731_v0  ;;  %v2753_v0 = vld [vmem:[#allocation31 + $0x20] sm:$0xff] }
 0xe9b   : > { %2988 = vmatpush.msra.mxu2 %v2753_v0 }
 0xe9c   : > { %4350 = vmatmul.msk.f32.vlgmr.msrb.gmra.mxu1 %vm2873_vm14, %v2872_v8  ;;  %v2749_v8 = vld [vmem:[#allocation31] sm:$0xff] }
 0xe9d   : > { %3127 = vmatpush.msrb.mxu1 %v3079_v10  ;;  %2989 = vmatpush.msra.mxu2 %v2752_v1 }
 0xe9f   : > { %3128 = vmatpush.msrb.mxu1 %v3077_v37  ;;  %2990 = vmatpush.msra.mxu2 %v2751_v3 }
 0xea1   : > { %3129 = vmatpush.msrb.mxu1 %v3075_v11  ;;  %2991 = vmatpush.msra.mxu2 %v2750_v6 }
 0xea3   : > { %3130 = vmatpush.msrb.mxu1 %v3073_v12  ;;  %2992 = vmatpush.msra.mxu2 %v2749_v8  ;;  %v4695_v12 = vld [vmem:[#allocation32] ss:$0 sm:$0xff] }
 0xea5   : > { %3131 = vmatpush.msrb.mxu1 %v3071_v13 }
 0xea7   : > { %3132 = vmatpush.msrb.mxu1 %v3069_v14 }
 0xea9   : > { %3133 = vmatpush.msrb.mxu1 %v3067_v15 }
 0xeab   : > { %3134 = vmatpush.msrb.mxu1 %v3065_v16 }
 0xead   : > { %3135 = vmatpush.msrb.mxu1 %v3063_v17 }
 0xeaf   : > { %3136 = vmatpush.msrb.mxu1 %v3061_v18 }
 0xeb1   : > { %3137 = vmatpush.msrb.mxu1 %v3059_v19 }
 0xeb3   : > { %3138 = vmatpush.msrb.mxu1 %v3057_v50 }
 0xeb5   : > { %3139 = vmatpush.msrb.mxu1 %v3055_v20 }
 0xeb7   : > { %3140 = vmatpush.msrb.mxu1 %v3053_v21 }
 0xeb9   : > { %3141 = vmatpush.msrb.mxu1 %v3051_v22 }
 0xebb   : > { %3142 = vmatpush.msrb.mxu1 %v3049_v23 }
 0xf0a   : > { %v2939_v28 = vpop.xlane.xlu0 %2938 }
 0xf0b   : > { %4736 = vrcp.f32 %v2939_v28 }
 0xf11   : > { %v4737_v34 = vpop.eup %4736 }
 0xf12   : > { %v2941_v35 = vmul.f32 %v4737_v34, %v4733_v5 }
 0xf14   : > { %4354 = vmatmul.msk.f32.vlgmr.msra.gmra.mxu1 %vm2873_vm14, %v2941_v35  ;;  %vm3750_vm14 = vcmask 1043459  }
 0xf19   : > { %v2898_v47 = vpop.f32.mrf.mxu1 }
 0xf1c   : > { %3143 = vmatmul.f32.vlgmr.msrb.gmra.mxu1 %v6964_v9 }
 0xf24   : > { %3146 = vmatmul.f32.gmra.mxu1 %v6949_v56 }
 0xf91   : > { %v2966_v55 = vpop.f32.mrf.mxu1 }
 0xf92   : > { %2970 = vrot.lane.b32.xlu2 %v2966_v55, %s6023_s3 }
 0xf99   : > { %v3144_v54 = vpop.f32.mrf.mxu1 }
 0xf9a   : > { %v3145_v7 = vadd.f32 %v3144_v54, %v3123_v2 }
 0xfa1   : > { %v3147_v4 = vpop.f32.mrf.mxu1 }
 0xfa2   : > { %v3148_v5 = vadd.f32 %v3147_v4, %v3123_v2 }
 0xfa4   : > { %3245 = vrot.lane.b32.xlu0 %v3148_v5, %s6023_s3  ;;  %4355 = vmatpush.xpose.msk.msra.mxu3 %vm1853_vm1, %v3148_v5 }
 0xfa8   : > { %4356 = vmatpush.xpose.msk.msra.mxu3 %vm1853_vm1, %v3145_v7 }
 0xfec   : > { %v2971_v10 = vpop.permute.xlu2 %2970 }
 0xfed   : > { %v2973_v37 = vsel %vm1853_vm1, %v2898_v47, %v2971_v10 }
 0xfee   : > { %2993 = vmatmul.f32.vlgmr.msra.gmra.mxu2 %v2973_v37 }
0x1016   : > { %v3246_v11 = vpop.permute.xlu0 %3245 }
0x1017   : > { %4360 = vmatpush.xpose.msk.msrb.mxu2 %vm1853_vm1, %v3246_v11 }
0x1071   : > { %v2994_v13 = vpop.f32.mrf.mxu2 }
0x1072   : > { %v2995_v14 = vadd.f32 %v4695_v12, %v2994_v13  ;;  %v3097_v13 = vld [vmem:[#allocation43 + $0x78] sm:$0xff] }
0x1073   : > { %3324 = vmatpush.msra.mxu1 %v3097_v13  ;;  %v3394_v13 = vld [vmem:[#allocation49 + $0x78] sm:$0xff] }
0x1074   : > { %v2997_v15 = vadd.f32 %v2995_v14, %v6975_v33  ;;  %v3096_v14 = vld [vmem:[#allocation43 + $0x70] sm:$0xff] }
0x1075   : > { %3325 = vmatpush.msra.mxu1 %v3096_v14  ;;  %v3581_v14 = vld [vmem:[#allocation58 + $0x58] sm:$0xff] }
0x1076   : > { %v3000_v16 = vmul.f32 %v6848_v31, %v2997_v15 }
0x1078   : > { %v3001_v17 = vsel %vm2877_vm7, %v3000_v16, 0.0  ;;  %v3094_v16 = vld [vmem:[#allocation43 + $0x60] sm:$0xff] }
0x1079   : > { %3002 = vadd.xlane.f32.xlu1 %v3001_v17  ;;  %v3093_v17 = vld [vmem:[#allocation43 + $0x58] sm:$0xff] }
0x1092   : > { %3243 = vrot.lane.b32.xlu1 %v3145_v7, %s6023_s3 }
0x10ec   : > { %v3003_v18 = vpop.xlane.xlu1 %3002 }
0x10ed   : > { %v3004_v19 = vmul.f32 0.011111111, %v3003_v18  ;;  %v3092_v18 = vld [vmem:[#allocation43 + $0x50] sm:$0xff] }
0x10ef   : > { %v3005_v50 = vsub.f32 %v2997_v15, %v3004_v19  ;;  %v3095_v15 = vld [vmem:[#allocation43 + $0x68] sm:$0xff] }
0x10f0   : > { %3326 = vmatpush.msra.mxu1 %v3095_v15  ;;  %v3091_v19 = vld [vmem:[#allocation43 + $0x48] sm:$0xff] }
0x10f1   : > { %v3006_v20 = vmul.f32 %v6848_v31, %v3005_v50  ;;  %v3090_v50 = vld [vmem:[#allocation43 + $0x40] sm:$0xff]  ;;  %v3392_v15 = vld [vmem:[#allocation49 + $0x68] sm:$0xff] }
0x10f2   : > { %3327 = vmatpush.msra.mxu1 %v3094_v16  ;;  %v3580_v16 = vld [vmem:[#allocation58 + $0x50] sm:$0xff] }
0x10f3   : > { %v3007_v21 = vmul.f32 %v3006_v20, %v3006_v20 }
0x10f4   : > { %3328 = vmatpush.msra.mxu1 %v3093_v17  ;;  %v3390_v17 = vld [vmem:[#allocation49 + $0x58] sm:$0xff] }
0x10f5   : > { %v3008_v22 = vsel %vm2877_vm7, %v3007_v21, 0.0  ;;  %v3088_v21 = vld [vmem:[#allocation43 + $0x30] sm:$0xff] }
0x10f6   : > { %3009 = vadd.xlane.f32.xlu2 %v3008_v22  ;;  %3329 = vmatpush.msra.mxu1 %v3092_v18  ;;  %v3087_v22 = vld [vmem:[#allocation43 + $0x28] sm:$0xff]  ;;  %v3579_v18 = vld [vmem:[#allocation58 + $0x48] sm:$0xff] }
0x10f8   : > { %3330 = vmatpush.msra.mxu1 %v3091_v19  ;;  %v3388_v19 = vld [vmem:[#allocation49 + $0x48] sm:$0xff] }
0x10fa   : > { %3331 = vmatpush.msra.mxu1 %v3090_v50  ;;  %v3578_v50 = vld [vmem:[#allocation58 + $0x40] sm:$0xff] }
0x1104   : > { %v3244_v23 = vpop.permute.xlu1 %3243 }
0x1105   : > { %4361 = vmatpush.xpose.msk.msrb.mxu2 %vm1853_vm1, %v3244_v23  ;;  %v3086_v23 = vld [vmem:[#allocation43 + $0x20] sm:$0xff] }
0x1169   : > { %v3010_v33 = vpop.xlane.xlu2 %3009 }
0x116a   : > { %v3011_v24 = vmul.f32 0.011111111, %v3010_v33  ;;  %v3085_v33 = vld [vmem:[#allocation43 + $0x18] sm:$0xff] }
0x116c   : > { %v3012_v25 = vadd.f32 1e-05, %v3011_v24 }
0x116e   : > { %4738 = vrsqrt.f32 %v3012_v25  ;;  %vm3019_vm0 = vweird.f32 %v3012_v25 }
0x1174   : > { %v4739_v26 = vpop.eup %4738 }
0x1175   : > { %v3014_v27 = vmul.f32 %v4739_v26, %v3012_v25  ;;  %vm3020_vm15 = vweird.f32 %v4739_v26  ;;  %v3084_v25 = vld [vmem:[#allocation43 + $0x10] sm:$0xff] }
0x1176   : > { %vm3021_vm2 = vmor %vm3019_vm0, %vm3020_vm15  ;;  %vm3752_vm15 = vcmask 1044484  }
0x1177   : > { %v3015_v28 = vmul.f32 %v4739_v26, %v3014_v27 }
0x1179   : > { %v3016_v32 = vmul.f32 0.5, %v3015_v28  ;;  %v3082_v28 = vld [vmem:[#allocation43] sm:$0xff] }
0x117b   : > { %v3017_v34 = vsub.f32 1.5, %v3016_v32 }
0x117d   : > { %v3018_v35 = vmul.f32 %v4739_v26, %v3017_v34  ;;  %v4699_v34 = vld [vmem:[#allocation44] ss:$0 sm:$0xff] }
0x117f   : > { %v3022_v38 = vsel %vm3021_vm2, %v4739_v26, %v3018_v35  ;;  %v3083_v26 = vld [vmem:[#allocation43 + $0x8] sm:$0xff] }
0x1180   : > { %v3023_v39 = vmul.f32 %v3022_v38, %v3006_v20  ;;  %v3089_v20 = vld [vmem:[#allocation43 + $0x38] sm:$0xff] }
0x1181   : > { %3332 = vmatpush.msra.mxu1 %v3089_v20  ;;  %v3386_v20 = vld [vmem:[#allocation49 + $0x38] sm:$0xff] }
0x1182   : > { %v3027_v42 = vmul.f32 %v4696_v36, %v3023_v39 }
0x1183   : > { %3333 = vmatpush.msra.mxu1 %v3088_v21  ;;  %v3577_v21 = vld [vmem:[#allocation58 + $0x38] sm:$0xff] }
0x1184   : > { %v7021_v58 = vadd.f32 %v4697_v40, %v3027_v42  ;;  %v3407_v42 = vld [vmem:[#allocation49 + $0xe0] sm:$0xff] }
0x1185   : > { %3334 = vmatpush.msra.mxu1 %v3087_v22  ;;  %3451 = vmatpush.msrb.mxu0 %v3407_v42  ;;  %v3384_v22 = vld [vmem:[#allocation49 + $0x28] sm:$0xff] }
0x1186   : > { %3118 = vmatmul.f32.vlgmr.msrb.gmra.mxu3 %v7021_v58 }
0x1187   : > { %4358 = vmatpush.msk.msrb.mxu3 %vm2077_vm10, %v3171_v59  ;;  %3335 = vmatpush.msra.mxu1 %v3086_v23  ;;  %v3576_v23 = vld [vmem:[#allocation58 + $0x30] sm:$0xff] }
0x1188   : > { %3452 = vmatpush.msrb.mxu0 %v3405_v43  ;;  %v3443_v43 = vld [vmem:[#allocation52 + $0xf8] sm:$0xff] }
0x1189   : > { %3236 = vmatpush.msrb.mxu3 %v3168_v44  ;;  %3336 = vmatpush.msra.mxu1 %v3085_v33  ;;  %v3382_v33 = vld [vmem:[#allocation49 + $0x18] sm:$0xff] }
0x118b   : > { %3337 = vmatpush.msra.mxu1 %v3084_v25  ;;  %v3380_v25 = vld [vmem:[#allocation49 + $0x8] sm:$0xff] }
0x118d   : > { %3338 = vmatpush.msra.mxu1 %v3083_v26  ;;  %v3574_v26 = vld [vmem:[#allocation58 + $0x20] sm:$0xff] }
0x118f   : > { %3339 = vmatpush.msra.mxu1 %v3082_v28  ;;  %v3572_v28 = vld [vmem:[#allocation58 + $0x10] sm:$0xff] }
0x1191   : > { %3515 = vmatpush.msrb.mxu1 %v3443_v43 }
0x1209   : > { %v3119_v46 = vpop.f32.mrf.mxu3 }
0x120a   : > { %v3120_v47 = vadd.f32 %v4698_v45, %v3119_v46  ;;  %v3408_v45 = vld [vmem:[#allocation49 + $0xe8] sm:$0xff]  ;;  %v3401_v46 = vld [vmem:[#allocation49 + $0xb0] sm:$0xff] }
0x120c   : > { %3241 = vrot.lane.b32.xlu0 %v3120_v47, %s6023_s3  ;;  %4357 = vmatmul.msk.f32.vlgmr.msra.gmra.mxu3 %vm1853_vm1, %v3120_v47  ;;  %v3399_v47 = vld [vmem:[#allocation49 + $0xa0] sm:$0xff] }
0x127e   : > { %v3242_v48 = vpop.permute.xlu0 %3241 }
0x127f   : > { %4362 = vmatmul.msk.f32.vlgmr.msrb.gmra.mxu2 %vm1853_vm1, %v3242_v48  ;;  %v3395_v48 = vld [vmem:[#allocation49 + $0x80] sm:$0xff] }
0x128f   : > { %v3199_v49 = vpop.f32.mrf.mxu3 }
0x1290   : > { %v3202_v51 = vmul.f32 0.1490712, %v3199_v49  ;;  %v3393_v49 = vld [vmem:[#allocation49 + $0x70] sm:$0xff] }
0x1292   : > { %v3204_v52 = vsel %vm3203_vm3, %v3202_v51, -inf }
0x1293   : > { %3205 = vmax.xlane.f32.xlu0 %v3204_v52  ;;  %v3389_v52 = vld [vmem:[#allocation49 + $0x50] sm:$0xff] }
0x1302   : > { %v3270_v55 = vpop.f32.mrf.mxu2 }
0x1303   : > { %v3273_v57 = vmul.f32 0.1490712, %v3270_v55  ;;  %v3387_v55 = vld [vmem:[#allocation49 + $0x40] sm:$0xff] }
0x1305   : > { %v3274_v60 = vsel %vm3203_vm3, %v3273_v57, -inf }
0x1306   : > { %3275 = vmax.xlane.f32.xlu2 %v3274_v60  ;;  %v3206_v61 = vpop.xlane.xlu0 %3205  ;;  %v3385_v60 = vld [vmem:[#allocation49 + $0x30] sm:$0xff] }
0x1307   : > { %v3207_v62 = vsub.f32 %v3202_v51, %v3206_v61  ;;  %v3391_v51 = vld [vmem:[#allocation49 + $0x60] sm:$0xff] }
0x1309   : > { %v3208_v54 = vmul.f32 1.442695, %v3207_v62 }
0x130b   : > { %4740 = vpow2.f32 %v3208_v54 }
0x1311   : > { %v4741_v63 = vpop.eup %4740 }
0x1312   : > { %v3210_v0 = vsel %vm3203_vm3, %v4741_v63, 0.0 }
0x1313   : > { %3211 = vadd.xlane.f32.xlu1 %v3210_v0 }
0x131e   : > { %3288 = vrot.lane.b32.xlu2 %v3171_v59, %s6023_s3  ;;  %v3403_v59 = vld [vmem:[#allocation49 + $0xc0] sm:$0xff] }
0x131f   : > { %3453 = vmatpush.msrb.mxu0 %v3403_v59  ;;  %v3425_v59 = vld [vmem:[#allocation52 + $0x68] sm:$0xff] }
0x1321   : > { %3454 = vmatpush.msrb.mxu0 %v3401_v46  ;;  %v3441_v46 = vld [vmem:[#allocation52 + $0xe8] sm:$0xff] }
0x1323   : > { %3455 = vmatpush.msrb.mxu0 %v3399_v47  ;;  %v3424_v47 = vld [vmem:[#allocation52 + $0x60] sm:$0xff] }
0x1379   : > { %v3276_v1 = vpop.xlane.xlu2 %3275 }
0x137a   : > { %v3277_v30 = vsub.f32 %v3273_v57, %v3276_v1  ;;  %v3383_v1 = vld [vmem:[#allocation49 + $0x20] sm:$0xff] }
0x137c   : > { %v3278_v2 = vmul.f32 1.442695, %v3277_v30  ;;  %v3406_v30 = vld [vmem:[#allocation49 + $0xd8] sm:$0xff] }
0x137e   : > { %4742 = vpow2.f32 %v3278_v2  ;;  %v3381_v2 = vld [vmem:[#allocation49 + $0x10] sm:$0xff] }
0x1381   : > { %v3289_v3 = vpop.permute.xlu2 %3288 }
0x1382   : > { %4363 = vmatpush.msk.msra.mxu3 %vm2077_vm10, %v3289_v3  ;;  %v3404_v3 = vld [vmem:[#allocation49 + $0xc8] sm:$0xff] }
0x1384   : > { %v4743_v4 = vpop.eup %4742 }
0x1385   : > { %v3280_v5 = vsel %vm3203_vm3, %v4743_v4, 0.0 }
0x1386   : > { %3281 = vadd.xlane.f32.xlu2 %v3280_v5  ;;  %v3212_v6 = vpop.xlane.xlu1 %3211  ;;  %v3402_v5 = vld [vmem:[#allocation49 + $0xb8] sm:$0xff] }
0x1387   : > { %4744 = vrcp.f32 %v3212_v6  ;;  %v3585_v6 = vld [vmem:[#allocation58 + $0x78] sm:$0xff] }
0x138d   : > { %v4745_v7 = vpop.eup %4744 }
0x138e   : > { %v3214_v8 = vmul.f32 %v4745_v7, %v4741_v63  ;;  %v3400_v7 = vld [vmem:[#allocation49 + $0xa8] sm:$0xff] }
0x1390   : > { %4359 = vmatmul.msk.f32.vlgmr.msrb.gmra.mxu3 %vm2047_vm11, %v3214_v8  ;;  %v3584_v8 = vld [vmem:[#allocation58 + $0x70] sm:$0xff] }
0x139e   : > { %3286 = vrot.lane.b32.xlu2 %v3168_v44, %s6023_s3  ;;  %v3410_v44 = vld [vmem:[#allocation49 + $0xf8] sm:$0xff] }
0x139f   : > { %3470 = vmatpush.msra.mxu2 %v3410_v44  ;;  %v3442_v44 = vld [vmem:[#allocation52 + $0xf0] sm:$0xff] }
0x13a0   : > { %3516 = vmatpush.msrb.mxu1 %v3442_v44  ;;  %v3622_v44 = vld [vmem:[#allocation59 + $0x68] sm:$0xff] }
0x13a1   : > { %3471 = vmatpush.msra.mxu2 %v3408_v45 }
0x13a2   : > { %3517 = vmatpush.msrb.mxu1 %v3441_v46  ;;  %v3620_v46 = vld [vmem:[#allocation59 + $0x58] sm:$0xff] }
0x13a3   : > { %3472 = vmatpush.msra.mxu2 %v3406_v30 }
0x13a5   : > { %3473 = vmatpush.msra.mxu2 %v3404_v3 }
0x13a7   : > { %3474 = vmatpush.msra.mxu2 %v3402_v5  ;;  %v3436_v5 = vld [vmem:[#allocation52 + $0xc0] sm:$0xff] }
0x13a9   : > { %3475 = vmatpush.msra.mxu2 %v3400_v7  ;;  %v3435_v7 = vld [vmem:[#allocation52 + $0xb8] sm:$0xff] }
0x13f9   : > { %v3282_v10 = vpop.xlane.xlu2 %3281 }
0x13fa   : > { %4746 = vrcp.f32 %v3282_v10  ;;  %v3398_v10 = vld [vmem:[#allocation49 + $0x98] sm:$0xff] }
0x13fb   : > { %3476 = vmatpush.msra.mxu2 %v3398_v10  ;;  %v3416_v10 = vld [vmem:[#allocation52 + $0x20] sm:$0xff] }
0x1400   : > { %v4747_v37 = vpop.eup %4746 }
0x1401   : > { %v3284_v11 = vmul.f32 %v4747_v37, %v4743_v4  ;;  %v3287_v12 = vpop.permute.xlu2 %3286  ;;  %v3379_v4 = vld [vmem:[#allocation49] sm:$0xff]  ;;  %v3583_v37 = vld [vmem:[#allocation58 + $0x68] sm:$0xff] }
0x1402   : > { %3311 = vmatpush.msra.mxu3 %v3287_v12  ;;  %v3582_v12 = vld [vmem:[#allocation58 + $0x60] sm:$0xff] }
0x1403   : > { %4364 = vmatmul.msk.f32.vlgmr.msra.gmra.mxu3 %vm2047_vm11, %v3284_v11  ;;  %v3396_v11 = vld [vmem:[#allocation49 + $0x88] sm:$0xff] }
0x1404   : > { %3477 = vmatpush.msra.mxu2 %v3396_v11  ;;  %v3414_v11 = vld [vmem:[#allocation52 + $0x10] sm:$0xff] }
0x1406   : > { %3478 = vmatpush.msra.mxu2 %v3394_v13  ;;  %v3413_v13 = vld [vmem:[#allocation52 + $0x8] sm:$0xff] }
0x1408   : > { %3479 = vmatpush.msra.mxu2 %v3392_v15  ;;  %v3412_v15 = vld [vmem:[#allocation52] sm:$0xff] }
0x140a   : > { %3480 = vmatpush.msra.mxu2 %v3390_v17  ;;  %v3430_v17 = vld [vmem:[#allocation52 + $0x90] sm:$0xff] }
0x140c   : > { %3481 = vmatpush.msra.mxu2 %v3388_v19  ;;  %v3411_v19 = vld [vmem:[#allocation50] sm:$0x3] }
0x140e   : > { %3482 = vmatpush.msra.mxu2 %v3386_v20 }
0x1410   : > { %3483 = vmatpush.msra.mxu2 %v3384_v22  ;;  %v3447_v22 = vperm.slane %v3411_v19, 1 }
0x1412   : > { %3484 = vmatpush.msra.mxu2 %v3382_v33 }
0x1413   : > { %v3238_v24 = vpop.f32.mrf.mxu3 }
0x1414   : > { %3485 = vmatpush.msra.mxu2 %v3380_v25  ;;  %v4702_v25 = vld [vmem:[#allocation53] ss:$0 sm:$0xff] }
0x1486   : > { %v3313_v27 = vpop.f32.mrf.mxu3 }
0x1487   : > { %3317 = vrot.lane.b32.xlu0 %v3313_v27, %s6023_s3  ;;  %v3573_v27 = vld [vmem:[#allocation58 + $0x18] sm:$0xff]  ;;  %s1815_s3 = scalar_lea.vmem %s7212_s9, %s6775_s0 }
0x14f9   : > { %v3318_v29 = vpop.permute.xlu0 %3317 }
0x14fa   : > { %v3320_v32 = vsel %vm1853_vm1, %v3238_v24, %v3318_v29  ;;  %v3575_v24 = vld [vmem:[#allocation58 + $0x28] sm:$0xff] }
0x14fb   : > { %3340 = vmatmul.f32.vlgmr.msra.gmra.mxu1 %v3320_v32  ;;  %v3571_v32 = vld [vmem:[#allocation58 + $0x8] sm:$0xff] }
0x1578   : > { %v3341_v35 = vpop.f32.mrf.mxu1 }
0x1579   : > { %v3342_v36 = vadd.f32 %v4699_v34, %v3341_v35  ;;  %v3570_v35 = vld [vmem:[#allocation58] sm:$0xff] }
0x157b   : > { %v3344_v38 = vadd.f32 %v3342_v36, %v7021_v58  ;;  %v3397_v58 = vld [vmem:[#allocation49 + $0x90] sm:$0xff] }
0x157c   : > { %3456 = vmatpush.msrb.mxu0 %v3397_v58 }
0x157d   : > { %v3347_v39 = vmul.f32 %v6848_v31, %v3344_v38 }
0x157e   : > { %3457 = vmatpush.msrb.mxu0 %v3395_v48  ;;  %v3440_v48 = vld [vmem:[#allocation52 + $0xe0] sm:$0xff] }
0x157f   : > { %v3348_v40 = vsel %vm2877_vm7, %v3347_v39, 0.0  ;;  %3518 = vmatpush.msrb.mxu1 %v3440_v48  ;;  %v3617_v48 = vld [vmem:[#allocation59 + $0x40] sm:$0xff] }
0x1580   : > { %3349 = vadd.xlane.f32.xlu2 %v3348_v40  ;;  %3458 = vmatpush.msrb.mxu0 %v3393_v49  ;;  %v3427_v40 = vld [vmem:[#allocation52 + $0x78] sm:$0xff] }
0x1581   : > { %3495 = vmatpush.msrb.mxu3 %v3427_v40  ;;  %v3423_v49 = vld [vmem:[#allocation52 + $0x58] sm:$0xff] }
0x1582   : > { %3459 = vmatpush.msrb.mxu0 %v3391_v51 }
0x1583   : > { %3496 = vmatpush.msrb.mxu3 %v3426_v41 }
0x1584   : > { %3460 = vmatpush.msrb.mxu0 %v3389_v52  ;;  %v3439_v52 = vld [vmem:[#allocation52 + $0xd8] sm:$0xff] }
0x1585   : > { %3497 = vmatpush.msrb.mxu3 %v3425_v59  ;;  %3519 = vmatpush.msrb.mxu1 %v3439_v52  ;;  %v3613_v52 = vld [vmem:[#allocation59 + $0x20] sm:$0xff] }
0x1586   : > { %3461 = vmatpush.msrb.mxu0 %v3387_v55  ;;  %v4700_v55 = vld [vmem:[#allocation46] ss:$0 sm:$0xff] }
0x1587   : > { %3498 = vmatpush.msrb.mxu3 %v3424_v47  ;;  %v3619_v47 = vld [vmem:[#allocation59 + $0x50] sm:$0xff] }
0x1588   : > { %3462 = vmatpush.msrb.mxu0 %v3385_v60 }
0x1589   : > { %3499 = vmatpush.msrb.mxu3 %v3423_v49  ;;  %v3616_v49 = vld [vmem:[#allocation59 + $0x38] sm:$0xff] }
0x158a   : > { %3463 = vmatpush.msrb.mxu0 %v3383_v1  ;;  %v3437_v1 = vld [vmem:[#allocation52 + $0xc8] sm:$0xff] }
0x158c   : > { %3464 = vmatpush.msrb.mxu0 %v3381_v2  ;;  %v3420_v2 = vld [vmem:[#allocation52 + $0x40] sm:$0xff] }
0x158e   : > { %3465 = vmatpush.msrb.mxu0 %v3379_v4  ;;  %v3419_v4 = vld [vmem:[#allocation52 + $0x38] sm:$0xff] }
0x1590   : > { %3586 = vmatpush.msra.mxu0 %v3585_v6  ;;  %v3418_v6 = vld [vmem:[#allocation52 + $0x30] sm:$0xff] }
0x1592   : > { %3587 = vmatpush.msra.mxu0 %v3584_v8  ;;  %v3434_v8 = vld [vmem:[#allocation52 + $0xb0] sm:$0xff] }
0x1594   : > { %3588 = vmatpush.msra.mxu0 %v3583_v37  ;;  %v3415_v37 = vld [vmem:[#allocation52 + $0x18] sm:$0xff] }
0x1596   : > { %3589 = vmatpush.msra.mxu0 %v3582_v12  ;;  %v3433_v12 = vld [vmem:[#allocation52 + $0xa8] sm:$0xff] }
0x1598   : > { %3590 = vmatpush.msra.mxu0 %v3581_v14  ;;  %v3432_v14 = vld [vmem:[#allocation52 + $0xa0] sm:$0xff] }
0x159a   : > { %3591 = vmatpush.msra.mxu0 %v3580_v16  ;;  %v3431_v16 = vld [vmem:[#allocation52 + $0x98] sm:$0xff] }
0x159c   : > { %3592 = vmatpush.msra.mxu0 %v3579_v18  ;;  %v3429_v18 = vld [vmem:[#allocation52 + $0x88] sm:$0xff] }
0x159e   : > { %3593 = vmatpush.msra.mxu0 %v3578_v50 }
0x15a0   : > { %3594 = vmatpush.msra.mxu0 %v3577_v21 }
0x15a2   : > { %3595 = vmatpush.msra.mxu0 %v3576_v23 }
0x15a4   : > { %3596 = vmatpush.msra.mxu0 %v3575_v24 }
0x15a6   : > { %3597 = vmatpush.msra.mxu0 %v3574_v26 }
0x15a8   : > { %3598 = vmatpush.msra.mxu0 %v3573_v27 }
0x15aa   : > { %3599 = vmatpush.msra.mxu0 %v3572_v28 }
0x15ac   : > { %3600 = vmatpush.msra.mxu0 %v3571_v32 }
0x15ae   : > { %3601 = vmatpush.msra.mxu0 %v3570_v35 }
0x15f3   : > { %v3350_v57 = vpop.xlane.xlu2 %3349 }
0x15f4   : > { %v3351_v61 = vmul.f32 0.011111111, %v3350_v57  ;;  %v3422_v57 = vld [vmem:[#allocation52 + $0x50] sm:$0xff] }
0x15f5   : > { %3500 = vmatpush.msrb.mxu3 %v3422_v57  ;;  %v3611_v57 = vld [vmem:[#allocation59 + $0x10] sm:$0xff] }
0x15f6   : > { %v3352_v62 = vsub.f32 %v3344_v38, %v3351_v61  ;;  %v3438_v61 = vld [vmem:[#allocation52 + $0xd0] sm:$0xff] }
0x15f7   : > { %3520 = vmatpush.msrb.mxu1 %v3438_v61  ;;  %v3609_v61 = vld [vmem:[#allocation59] sm:$0xff] }
0x15f8   : > { %v7043_v54 = vmul.f32 %v6848_v31, %v3352_v62 }
0x15f9   : > { %3521 = vmatpush.msrb.mxu1 %v3437_v1 }
0x15fa   : > { %v3354_v63 = vmul.f32 %v7043_v54, %v7043_v54 }
0x15fb   : > { %3522 = vmatpush.msrb.mxu1 %v3436_v5 }
0x15fc   : > { %v3355_v0 = vsel %vm2877_vm7, %v3354_v63, 0.0  ;;  %v4701_v63 = vld [vmem:[#allocation47] ss:$0 sm:$0xff] }
0x15fd   : > { %3356 = vadd.xlane.f32.xlu1 %v3355_v0  ;;  %v3421_v0 = vld [vmem:[#allocation52 + $0x48] sm:$0xff]  ;;  %3523 = vmatpush.msrb.mxu1 %v3435_v7 }
0x15fe   : > { %3501 = vmatpush.msrb.mxu3 %v3421_v0 }
0x15ff   : > { %3524 = vmatpush.msrb.mxu1 %v3434_v8  ;;  %v4704_v8 = vld [vmem:[#allocation56] ss:$0 sm:$0xff] }
0x1600   : > { %3502 = vmatpush.msrb.mxu3 %v3420_v2 }
0x1601   : > { %3525 = vmatpush.msrb.mxu1 %v3433_v12 }
0x1602   : > { %3503 = vmatpush.msrb.mxu3 %v3419_v4 }
0x1603   : > { %3526 = vmatpush.msrb.mxu1 %v3432_v14 }
0x1604   : > { %3504 = vmatpush.msrb.mxu3 %v3418_v6  ;;  %v4703_v6 = vld [vmem:[#allocation55] ss:$0 sm:$0xff] }
0x1605   : > { %3527 = vmatpush.msrb.mxu1 %v3431_v16 }
0x1607   : > { %3528 = vmatpush.msrb.mxu1 %v3430_v17 }
0x1609   : > { %3529 = vmatpush.msrb.mxu1 %v3429_v18 }
0x1670   : > { %v3357_v29 = vpop.xlane.xlu1 %3356 }
0x1671   : > { %v3358_v34 = vmul.f32 0.011111111, %v3357_v29 }
0x1673   : > { %v3359_v36 = vadd.f32 1e-05, %v3358_v34 }
0x1675   : > { %4748 = vrsqrt.f32 %v3359_v36  ;;  %vm3366_vm4 = vweird.f32 %v3359_v36 }
0x167b   : > { %v4749_v38 = vpop.eup %4748 }
0x167c   : > { %v3361_v39 = vmul.f32 %v4749_v38, %v3359_v36  ;;  %vm3367_vm1 = vweird.f32 %v4749_v38  ;;  %v3624_v36 = vld [vmem:[#allocation59 + $0x78] sm:$0xff] }
0x167d   : > { %vm3368_vm5 = vmor %vm3366_vm4, %vm3367_vm1  ;;  %3625 = vmatpush.msrb.mxu2 %v3624_v36 }
0x167e   : > { %v3362_v42 = vmul.f32 %v4749_v38, %v3361_v39 }
0x1680   : > { %v3363_v45 = vmul.f32 0.5, %v3362_v42 }
0x1682   : > { %v3364_v58 = vsub.f32 1.5, %v3363_v45  ;;  %v3621_v45 = vld [vmem:[#allocation59 + $0x60] sm:$0xff] }
0x1684   : > { %v3365_v51 = vmul.f32 %v4749_v38, %v3364_v58  ;;  %v3618_v58 = vld [vmem:[#allocation59 + $0x48] sm:$0xff] }
0x1686   : > { %v3369_v60 = vsel %vm3368_vm5, %v4749_v38, %v3365_v51  ;;  %v3623_v38 = vld [vmem:[#allocation59 + $0x70] sm:$0xff] }
0x1687   : > { %v3370_v62 = vmul.f32 %v3369_v60, %v7043_v54  ;;  %v3417_v54 = vld [vmem:[#allocation52 + $0x28] sm:$0xff]  ;;  %3626 = vmatpush.msrb.mxu2 %v3623_v38  ;;  %v3615_v51 = vld [vmem:[#allocation59 + $0x30] sm:$0xff] }
0x1688   : > { %3505 = vmatpush.msrb.mxu3 %v3417_v54  ;;  %v3610_v60 = vld [vmem:[#allocation59 + $0x8] sm:$0xff] }
0x1689   : > { %v3374_v30 = vmul.f32 %v4700_v55, %v3370_v62  ;;  %3627 = vmatpush.msrb.mxu2 %v3622_v44  ;;  %v3612_v55 = vld [vmem:[#allocation59 + $0x18] sm:$0xff] }
0x168a   : > { %3506 = vmatpush.msrb.mxu3 %v3416_v10 }
0x168b   : > { %v3378_v3 = vadd.f32 %v4701_v63, %v3374_v30  ;;  %3628 = vmatpush.msrb.mxu2 %v3621_v45 }
0x168c   : > { %3507 = vmatpush.msrb.mxu3 %v3415_v37 }
0x168d   : > { %3466 = vmatmul.f32.vlgmr.msrb.gmra.mxu0 %v3378_v3  ;;  %3486 = vmatmul.f32.vlgmr.msra.gmra.mxu2 %v3378_v3 }
0x168e   : > { %3508 = vmatpush.msrb.mxu3 %v3414_v11  ;;  %3629 = vmatpush.msrb.mxu2 %v3620_v46 }
0x1690   : > { %3509 = vmatpush.msrb.mxu3 %v3413_v13  ;;  %3630 = vmatpush.msrb.mxu2 %v3619_v47 }
0x1692   : > { %3510 = vmatpush.msrb.mxu3 %v3412_v15  ;;  %3631 = vmatpush.msrb.mxu2 %v3618_v58 }
0x1694   : > { %3632 = vmatpush.msrb.mxu2 %v3617_v48 }
0x1695   : > { %3602 = vmatmul.f32.vlgmr.msra.gmra.mxu0 %v6964_v9  ;;  %v3428_v9 = vld [vmem:[#allocation52 + $0x80] sm:$0xff] }
0x1696   : > { %3530 = vmatpush.msrb.mxu1 %v3428_v9  ;;  %3633 = vmatpush.msrb.mxu2 %v3616_v49 }
0x1698   : > { %3634 = vmatpush.msrb.mxu2 %v3615_v51 }
0x169d   : > { %3605 = vmatmul.f32.gmra.mxu0 %v6949_v56  ;;  %v3446_v56 = vperm.slane %v3411_v19, 0 }
0x170a   : > { %v3467_v50 = vpop.f32.mrf.mxu0 }
0x170b   : > { %v3468_v20 = vadd.f32 %v3467_v50, %v3446_v56 }
0x170d   : > { %v3490_v21 = vmax.f32 %v3468_v20, 0.0 }
0x170f   : > { %3511 = vmatmul.f32.vlgmr.msrb.gmra.mxu3 %v3490_v21  ;;  %v4705_v21 = vld [vmem:[#allocation61] ss:$0 sm:$0xff] }
0x1710   : > { %v3487_v23 = vpop.f32.mrf.mxu2 }
0x1711   : > { %v3488_v33 = vadd.f32 %v3487_v23, %v3447_v22 }
0x1712   : > { %v3603_v11 = vpop.f32.mrf.mxu0 }
0x1713   : > { %v3491_v24 = vmax.f32 %v3488_v33, 0.0 }
0x1715   : > { %3531 = vmatmul.f32.vlgmr.msrb.gmra.mxu1 %v3491_v24 }
0x171a   : > { %v3606_v18 = vpop.f32.mrf.mxu0 }
0x1792   : > { %v3512_v26 = vpop.f32.mrf.mxu3  ;;  %v3532_v28 = vpop.f32.mrf.mxu1 }
0x1793   : > { %v3513_v27 = vadd.f32 %v4702_v25, %v3512_v26 }
0x1795   : > { %v3533_v29 = vadd.f32 %v3532_v28, %v3513_v27 }
0x1797   : > { %v3535_v32 = vadd.f32 %v3533_v29, %v3378_v3 }
0x1799   : > { %v3538_v34 = vmul.f32 %v6848_v31, %v3535_v32 }
0x179b   : > { %v3539_v35 = vsel %vm2877_vm7, %v3538_v34, 0.0 }
0x179c   : > { %3540 = vadd.xlane.f32.xlu1 %v3539_v35 }
0x180f   : > { %v3541_v39 = vpop.xlane.xlu1 %3540 }
0x1810   : > { %v3542_v40 = vmul.f32 0.011111111, %v3541_v39 }
0x1812   : > { %v3543_v41 = vsub.f32 %v3535_v32, %v3542_v40 }
0x1814   : > { %v3544_v42 = vmul.f32 %v6848_v31, %v3543_v41  ;;  %v3614_v31 = vld [vmem:[#allocation59 + $0x28] sm:$0xff] }
0x1815   : > { %3635 = vmatpush.msrb.mxu2 %v3614_v31 }
0x1816   : > { %v3545_v43 = vmul.f32 %v3544_v42, %v3544_v42 }
0x1817   : > { %3636 = vmatpush.msrb.mxu2 %v3613_v52 }
0x1818   : > { %v3546_v59 = vsel %vm2877_vm7, %v3545_v43, 0.0 }
0x1819   : > { %3547 = vadd.xlane.f32.xlu0 %v3546_v59  ;;  %3637 = vmatpush.msrb.mxu2 %v3612_v55 }
0x181b   : > { %3638 = vmatpush.msrb.mxu2 %v3611_v57 }
0x181d   : > { %3639 = vmatpush.msrb.mxu2 %v3610_v60 }
0x181f   : > { %3640 = vmatpush.msrb.mxu2 %v3609_v61 }
0x188c   : > { %v3548_v62 = vpop.xlane.xlu0 %3547 }
0x188d   : > { %v3549_v63 = vmul.f32 0.011111111, %v3548_v62 }
0x188f   : > { %v3550_v0 = vadd.f32 1e-05, %v3549_v63 }
0x1891   : > { %4750 = vrsqrt.f32 %v3550_v0  ;;  %vm3557_vm8 = vweird.f32 %v3550_v0 }
0x1897   : > { %v4751_v1 = vpop.eup %4750 }
0x1898   : > { %v3552_v30 = vmul.f32 %v4751_v1, %v3550_v0  ;;  %vm3558_vm6 = vweird.f32 %v4751_v1 }
0x1899   : > { %vm3559_vm9 = vmor %vm3557_vm8, %vm3558_vm6 }
0x189a   : > { %v3553_v2 = vmul.f32 %v4751_v1, %v3552_v30 }
0x189c   : > { %v3554_v3 = vmul.f32 0.5, %v3553_v2 }
0x189e   : > { %v3555_v4 = vsub.f32 1.5, %v3554_v3  ;;  %v3730_v3 = vadd.s32 4294967288, %v6782_v53 }
0x18a0   : > { %v3556_v5 = vmul.f32 %v4751_v1, %v3555_v4 }
0x18a2   : > { %v3560_v7 = vsel %vm3559_vm9, %v4751_v1, %v3556_v5 }
0x18a3   : > { %v3561_v54 = vmul.f32 %v3560_v7, %v3544_v42 }
0x18a5   : > { %v3565_v10 = vmul.f32 %v4703_v6, %v3561_v54 }
0x18a7   : > { %v3569_v37 = vadd.f32 %v4704_v8, %v3565_v10 }
0x18a9   : > { %3641 = vmatmul.f32.vlgmr.msrb.gmra.mxu2 %v3569_v37 }
0x192c   : > { %v3642_v12 = vpop.f32.mrf.mxu2 }
0x192d   : > { %v3647_v13 = vrot.slane %v3642_v12, 2  ;;  %v3648_v14 = vrot.slane %v3642_v12, 3  ;;  %v3650_v15 = vperm.slane %v3642_v12, 0  ;;  %v3646_v50 = vrot.slane %v3642_v12, 1 }
0x192e   : > { %v3649_v22 = vrot.slane %v3642_v12, 4 }
0x192f   : > { %v3653_v16 = vperm.slane %v3648_v14, 0  ;;  %v3660_v17 = vadd.f32 %v3650_v15, %v3603_v11  ;;  %v3652_v9 = vperm.slane %v3647_v13, 0  ;;  %v3661_v19 = vadd.f32 %v3650_v15, %v3606_v18 }
0x1930   : > { %v3651_v33 = vperm.slane %v3646_v50, 0  ;;  %v3654_v27 = vperm.slane %v3649_v22, 0 }
0x1931   : > { %v3667_v56 = vadd.f32 %v3653_v16, %v3606_v18  ;;  %4752 = vtanh.f32 %v3660_v17  ;;  %v3664_v20 = vadd.f32 %v3652_v9, %v3603_v11  ;;  %v3666_v25 = vadd.f32 %v3653_v16, %v3603_v11 }
0x1932   : > { %4754 = vtanh.f32 %v3661_v19  ;;  %v3662_v29 = vadd.f32 %v3651_v33, %v3603_v11  ;;  %v3669_v36 = vadd.f32 %v3654_v27, %v3606_v18  ;;  %v3663_v40 = vadd.f32 %v3651_v33, %v3606_v18 }
0x1933   : > { %4756 = vtanh.f32 %v3667_v56  ;;  %v3665_v45 = vadd.f32 %v3652_v9, %v3606_v18  ;;  %v3668_v52 = vadd.f32 %v3654_v27, %v3603_v11 }
0x1934   : > { %4758 = vtanh.f32 %v3664_v20 }
0x1935   : > { %4760 = vtanh.f32 %v3666_v25 }
0x1936   : > { %4762 = vtanh.f32 %v3662_v29 }
0x1937   : > { %v4753_v23 = vpop.eup %4752  ;;  %4764 = vtanh.f32 %v3669_v36 }
0x1938   : > { %v3684_v24 = vmul.f32 %v4753_v23, %v4705_v21  ;;  %v4755_v26 = vpop.eup %4754  ;;  %4766 = vtanh.f32 %v3663_v40 }
0x1939   : > { %v4757_v28 = vpop.eup %4756  ;;  %v3685_v35 = vmul.f32 %v4755_v26, %v4705_v21  ;;  %4768 = vtanh.f32 %v3665_v45 }
0x193a   : > { %3694 = vadd.xlane.f32.xlu1 %v3684_v24  ;;  %v3691_v32 = vmul.f32 %v4757_v28, %v4705_v21  ;;  %v4759_v34 = vpop.eup %4758  ;;  %4770 = vtanh.f32 %v3668_v52 }
0x193b   : > { %v3688_v38 = vmul.f32 %v4759_v34, %v4705_v21  ;;  %v3696_v41 = vsel %vm2077_vm10, %v3685_v35, 0.0  ;;  %v4761_v42 = vpop.eup %4760 }
0x193c   : > { %v3711_v39 = vsel %vm2077_vm10, %v3691_v32, 0.0  ;;  %v4763_v43 = vpop.eup %4762  ;;  %v3690_v59 = vmul.f32 %v4761_v42, %v4705_v21 }
0x193d   : > { %3712 = vadd.xlane.f32.xlu0 %v3711_v39  ;;  %3704 = vadd.xlane.f32.xlu2 %v3688_v38  ;;  %v4765_v44 = vpop.eup %4764  ;;  %v3686_v46 = vmul.f32 %v4763_v43, %v4705_v21 }
0x193e   : > { %v4767_v47 = vpop.eup %4766  ;;  %v3693_v58 = vmul.f32 %v4765_v44, %v4705_v21 }
0x193f   : > { %v3687_v48 = vmul.f32 %v4767_v47, %v4705_v21  ;;  %v4769_v31 = vpop.eup %4768 }
0x1940   : > { %v3716_v49 = vsel %vm2077_vm10, %v3693_v58, 0.0  ;;  %v3689_v55 = vmul.f32 %v4769_v31, %v4705_v21  ;;  %v4771_v60 = vpop.eup %4770 }
0x1941   : > { %v3701_v51 = vsel %vm2077_vm10, %v3687_v48, 0.0  ;;  %v3692_v61 = vmul.f32 %v4771_v60, %v4705_v21 }
0x1942   : > { %3697 = vadd.xlane.f32.xlu1 %v3696_v41  ;;  %v3706_v57 = vsel %vm2077_vm10, %v3689_v55, 0.0  ;;  %vm3732_vm10 = vcmask 130112  }
0x1945   : > { %3709 = vadd.xlane.f32.xlu2 %v3690_v59 }
0x194a   : > { %3699 = vadd.xlane.f32.xlu1 %v3686_v46 }
0x194d   : > { %3717 = vadd.xlane.f32.xlu2 %v3716_v49 }
0x1952   : > { %3702 = vadd.xlane.f32.xlu1 %v3701_v51 }
0x195a   : > { %3707 = vadd.xlane.f32.xlu1 %v3706_v57 }
0x1962   : > { %3714 = vadd.xlane.f32.xlu1 %v3692_v61 }
0x19ad   : > { %v3695_v62 = vpop.xlane.xlu1 %3694 }
0x19ae   : > { %v3729_v10 = vperm.slane %v3695_v62, %v6782_v53 }
0x19b0   : > { %v3705_v1 = vpop.xlane.xlu2 %3704  ;;  %v3713_v11 = vpop.xlane.xlu0 %3712 }
0x19b1   : > { %v3737_v8 = vperm.slane %v3705_v1, %v6782_v53  ;;  %v3741_v17 = vperm.slane %v3713_v11, %v3730_v3 }
0x19b5   : > { %v3698_v63 = vpop.xlane.xlu1 %3697 }
0x19b6   : > { %v3731_v7 = vperm.slane %v3698_v63, %v3730_v3 }
0x19b8   : > { %v3710_v2 = vpop.xlane.xlu2 %3709  ;;  %v3733_v13 = vsel %vm3732_vm10, %v3731_v7, %v3729_v10 }
0x19b9   : > { %v3740_v14 = vperm.slane %v3710_v2, %v6782_v53 }
0x19bb   : > { %v3742_v50 = vsel %vm3732_vm10, %v3741_v17, %v3740_v14 }
0x19bd   : > { %v3700_v0 = vpop.xlane.xlu1 %3699 }
0x19be   : > { %v3734_v54 = vperm.slane %v3700_v0, %v6782_v53 }
0x19c0   : > { %v3718_v15 = vpop.xlane.xlu2 %3717 }
0x19c1   : > { %v3744_v19 = vperm.slane %v3718_v15, %v3730_v3 }
0x19c5   : > { %v3703_v30 = vpop.xlane.xlu1 %3702 }
0x19c6   : > { %v3735_v4 = vperm.slane %v3703_v30, %v3730_v3 }
0x19c8   : > { %v3736_v37 = vsel %vm3732_vm10, %v3735_v4, %v3734_v54 }
0x19c9   : > { %v3747_v16 = vsel %vm3746_vm12, %v3736_v37, %v3733_v13 }
0x19cd   : > { %v3708_v5 = vpop.xlane.xlu1 %3707 }
0x19ce   : > { %v3738_v6 = vperm.slane %v3708_v5, %v3730_v3 }
0x19d0   : > { %v3739_v12 = vsel %vm3732_vm10, %v3738_v6, %v3737_v8 }
0x19d1   : > { %v3749_v18 = vsel %vm3748_vm13, %v3739_v12, %v3747_v16 }
0x19d2   : > { %v3751_v21 = vsel %vm3750_vm14, %v3742_v50, %v3749_v18 }
0x19d5   : > { %v3715_v9 = vpop.xlane.xlu1 %3714 }
0x19d6   : > { %v3743_v56 = vperm.slane %v3715_v9, %v6782_v53 }
0x19d8   : > { %v3745_v20 = vsel %vm3732_vm10, %v3744_v19, %v3743_v56 }
0x19d9   : > { %v3753_v22 = vsel %vm3752_vm15, %v3745_v20, %v3751_v21 }
0x19da   : > { %v3755_v23 = vsel %vm2047_vm11, %v3753_v22, -1e+30 }
0x19db   : > { %v3756_v33 = vsel %vm2877_vm7, %v3755_v23, -inf }
0x19dc   : > { %3757 = vmax.xlane.f32.xlu0 %v3756_v33 }
0x1a4f   : > { %v3758_v24 = vpop.xlane.xlu0 %3757 }
0x1a50   : > { %v3759_v25 = vsub.f32 %v3755_v23, %v3758_v24 }
0x1a52   : > { %v3760_v26 = vmul.f32 1.442695, %v3759_v25 }
0x1a54   : > { %4772 = vpow2.f32 %v3760_v26 }
0x1a5a   : > { %v4773_v27 = vpop.eup %4772 }
0x1a5b   : > { %v3762_v53 = vsel %vm2877_vm7, %v4773_v27, 0.0 }
0x1a5c   : > { %3763 = vadd.xlane.f32.xlu1 %v3762_v53 }
0x1acf   : > { %v3764_v28 = vpop.xlane.xlu1 %3763 }
0x1ad0   : > { %4774 = vlog2.f32 %v3764_v28 }
0x1ad6   : > { %v4775_v29 = vpop.eup %4774 }
0x1ad7   : > { %v3766_v32 = vmul.f32 0.6931472, %v4775_v29 }
0x1ad9   : > { %v3767_v34 = vadd.f32 %v3766_v32, %v3758_v24 }
0x1adb   : > { %v3768_v35 = vsub.f32 %v3755_v23, %v3767_v34 }
0x1add   : > { %3769 = vst [vmem:[%s1815_s3] sm:$0x1f] %v3768_v35 }
0x1ade PF: > { %s134_s17 = sadd.s32 1, %s5932_s17  }
0x1adf   : > { %p131_p4 = scmp.ge.s32.totalorder %s134_s17, 4  }
0x1ae1   :  { %133 = sbr.rel (!%p131_p4) target bundleno = 132 (0x84), region = 405 }
0x1ae6   :  { %3789 = vsyncpa [#allocation7], 1 }
0x1ae7   :  { %3791 = vsyncpa [#allocation7 + $0x1], 1 }
0x1ae8   :  { %3792 = vsyncpa [#allocation9], 1 }
0x1ae9   :  { %3793 = vsyncpa [#allocation12], 1 }
0x1aea   :  { %3794 = vsyncpa [#allocation15], 1 }
0x1aeb   :  { %3795 = vsyncpa [#allocation18], 1 }
0x1aec   :  { %3796 = vsyncpa [#allocation21], 1 }
0x1aed   :  { %3797 = vsyncpa [#allocation24], 1 }
0x1aee   :  { %3798 = vsyncpa [#allocation27], 1 }
0x1aef   :  { %3799 = vsyncpa [#allocation30], 1 }
0x1af0   :  { %3800 = vsyncpa [#allocation33], 1 }
0x1af1   :  { %3801 = vsyncpa [#allocation36], 1 }
0x1af2   :  { %3802 = vsyncpa [#allocation39], 1 }
0x1af3   :  { %3803 = vsyncpa [#allocation42], 1 }
0x1af4   :  { %3804 = vsyncpa [#allocation45], 1 }
0x1af5   :  { %3805 = vsyncpa [#allocation48], 1 }
0x1af6   :  { %3806 = vsyncpa [#allocation51], 1 }
0x1af7   :  { %3807 = vsyncpa [#allocation54], 1 }
0x1af8   :  { %3808 = vsyncpa [#allocation57], 1 }
0x1af9   :  { %3809 = vsyncpa [#allocation60], 1 }

</bundles_post_ra>
